<compile_context>
chip_gen: v7x
topology: tpu7x:2x2x1
jax: 0.10.0
libtpu: 0.0.40
codegen_flags: <defaults>
</compile_context>

<pallas_src>
import jax
import jax.numpy as jnp
import numpy as np
from jax.experimental import pallas as pl
from jax.experimental.pallas import tpu as pltpu


# --------------------------------- helpers -----------------------------------

def _round_up(x, m):
    return ((x + m - 1) // m) * m


def _cdiv(a, b):
    return -(-a // b)


def _device_info():
    """(megacore?, vmem budget bytes) for the local TPU generation."""
    kind = ""
    try:
        kind = jax.devices()[0].device_kind.lower()
    except Exception:
        pass
    is_v7 = "7" in kind
    megacore = is_v7 or ("v4" in kind) or ("v5p" in kind)
    vmem_cap = (48 << 20) if is_v7 else (100 << 20)
    return megacore, vmem_cap


def _pick_tiling(B, sublane, megacore, bytes_per_row, weight_bytes, vmem_cap):
    """Choose (padded batch, batch tile).

    Single grid step for small batches on single-TC parts; >=2 steps on megacore parts so
    dimension_semantics=("parallel",) shards the batch across both TensorCores; TB shrunk
    until double-buffered batched blocks + weights fit ~80% of the VMEM budget.
    """
    Bp = _round_up(B, sublane)
    n_tiles = 2 if (megacore and Bp >= 2 * sublane) else 1
    TB = min(_round_up(_cdiv(Bp, n_tiles), sublane), 256)
    budget = int(vmem_cap * 0.8)
    while TB > sublane and (2 * TB * bytes_per_row + weight_bytes) > budget:
        TB = _round_up(_cdiv(TB, 2), sublane)
    Bp = _round_up(Bp, TB)
    return Bp, TB


# ------------------------------ fused kernel ---------------------------------

def _att2in2_kernel(xh_ref, c_ref, att_ref, patt_ref,
                    w_h2att_ref, b_h2att_ref, w_alpha_ref,
                    w_xh2h_ref, b_xh2h_ref, w_a2c_ref, b_a2c_ref,
                    h_out_ref, c_out_ref):
    """Fused soft-attention + Att2in2 LSTM cell update for one batch tile.

    xh_ref  : (TB, R+E)   -- [h_prev | xt] concatenated (h first, lane-aligned)
    c_ref   : (TB, R)       f32
    att_ref : (TB, S, R)    compute dtype (f32 or bf16)
    patt_ref: (TB, S, Hp)   compute dtype
    Weights may be bf16; all elementwise / softmax / gate math is kept in f32.
    """
    f32 = jnp.float32
    R = c_ref.shape[-1]
    S = att_ref.shape[1]
    TB = xh_ref.shape[0]

    xh = xh_ref[...]                      # (TB, R+E) compute dtype
    h = xh[:, :R]                         # previous hidden state (lane-aligned slice)

    # ------------------------------ attention --------------------------------
    # att_h = h2att(h)    (one MXU pass, f32 accumulation)
    att_h = jnp.dot(h, w_h2att_ref[...], preferred_element_type=f32) \
        + b_h2att_ref[...].astype(f32)                                     # (TB, Hp)

    # dot = tanh(p_att + att_h)  -- elementwise in f32 (EUP/VPU)
    dot = jnp.tanh(patt_ref[...].astype(f32) + att_h[:, None, :])          # (TB, S, Hp)

    # alpha_net as VPU broadcast-multiply + lane reduce.  alpha_net bias dropped:
    # softmax is shift-invariant.  Padded Hp lanes carry zero weights -> exact no-op.
    scores = jnp.sum(dot * w_alpha_ref[...].astype(f32), axis=-1)          # (TB, S)

    # numerically-stable softmax; normalization via EUP reciprocal (+ Newton steps so the
    # f32 path stays bit-tight against the reference)
    scores = scores - jnp.max(scores, axis=-1, keepdims=True)
    e = jnp.exp(scores)
    denom = jnp.sum(e, axis=-1, keepdims=True)                             # (TB, 1)
    inv = pl.reciprocal(denom, approx=True)
    inv = inv * (2.0 - denom * inv)
    inv = inv * (2.0 - denom * inv)
    weight = e * inv                                                       # (TB, S)
    # TODO(synk): optional att_masks renormalization path not implemented (None case only).

    # att_res = sum_s weight * att_feats, accumulated in sublane-sized chunks so the
    # (TB, S, R) product never materializes as one giant temporary at large S.
    CH = 8 if S % 8 == 0 else S
    acc = jnp.zeros((TB, R), f32)
    for ci in range(S // CH):                       # static trip count, static slices
        w_c = weight[:, ci * CH:(ci + 1) * CH]                             # (TB, CH)
        a_c = att_ref[:, ci * CH:(ci + 1) * CH, :].astype(f32)             # (TB, CH, R)
        acc = acc + jnp.sum(w_c[:, :, None] * a_c, axis=1)
    att_res = acc                                                          # (TB, R)

    # ------------------------------ LSTM update -------------------------------
    # One fused matmul replaces i2h(xt) + h2h(h): xh @ [w_h2h; w_i2h] + (b_i2h + b_h2h)
    sums = jnp.dot(xh, w_xh2h_ref[...], preferred_element_type=f32) \
        + b_xh2h_ref[...].astype(f32)                                      # (TB, 5R)

    sig = jax.nn.sigmoid(sums[:, :3 * R])
    in_gate = sig[:, 0 * R:1 * R]
    forget_gate = sig[:, 1 * R:2 * R]
    out_gate = sig[:, 2 * R:3 * R]

    a2c = jnp.dot(att_res.astype(w_a2c_ref.dtype), w_a2c_ref[...],
                  preferred_element_type=f32) + b_a2c_ref[...].astype(f32)  # (TB, 2R)
    in_transform = sums[:, 3 * R:5 * R] + a2c
    in_transform = jnp.maximum(in_transform[:, :R], in_transform[:, R:2 * R])

    next_c = forget_gate * c_ref[...].astype(f32) + in_gate * in_transform
    next_h = out_gate * jnp.tanh(next_c)

    h_out_ref[...] = next_h.astype(h_out_ref.dtype)
    c_out_ref[...] = next_c.astype(c_out_ref.dtype)


# ----------------------- one-time (hoisted) preparation ----------------------

def prepare_params(params, compute_dtype=jnp.float32):
    """One-time parameter preparation, hoisted OUT of the per-step decode path.

    Stacks [w_h2h; w_i2h], pre-sums the i2h/h2h biases, transposes w_alpha, zero-pads the
    att_hid axis to a lane multiple (exact no-op), and casts the large matrices to the
    compute dtype (e.g. bf16 on v6e/v7x).  Small biases stay f32.
    """
    H = params['w_h2att'].shape[1]
    Hp = _round_up(H, 128)
    pad_h = Hp - H
    cd = compute_dtype

    w_h2att = jnp.pad(params['w_h2att'], ((0, 0), (0, pad_h)))
    b_h2att = jnp.pad(params['b_h2att'], ((0, 0), (0, pad_h)))
    w_alpha_t = jnp.pad(params['w_alpha'].T, ((0, 0), (0, pad_h)))       # (1, Hp); b_alpha dropped
    w_xh2h = jnp.concatenate([params['w_h2h'], params['w_i2h']], axis=0)  # (R+E, 5R)
    b_xh2h = params['b_i2h'] + params['b_h2h']                            # (1, 5R)

    return {
        'w_h2att': w_h2att.astype(cd),
        'b_h2att': b_h2att.astype(jnp.float32),
        'w_alpha_t': w_alpha_t.astype(jnp.float32),
        'w_xh2h': w_xh2h.astype(cd),
        'b_xh2h': b_xh2h.astype(jnp.float32),
        'w_a2c': params['w_a2c'].astype(cd),
        'b_a2c': params['b_a2c'].astype(jnp.float32),
        'R': params['w_h2h'].shape[0],
        'E': params['w_i2h'].shape[0],
        'H': H, 'Hp': Hp, 'dtype': cd,
    }


def prepare_att_feats(att_feats, p_att_feats, prepped):
    """Per-image (NOT per-step) prep: pad the att_hid axis of p_att_feats and cast the
    big streamed attention tensors to the compute dtype."""
    pad_h = prepped['Hp'] - prepped['H']
    p = jnp.pad(p_att_feats, ((0, 0), (0, 0), (0, pad_h)))
    return att_feats.astype(prepped['dtype']), p.astype(prepped['dtype'])


# ------------------------------ Python wrapper --------------------------------

def att2in2_core_forward(xt, fc_feats, att_feats, p_att_feats, state, prepped,
                         att_masks=None):
    del fc_feats  # not used by Att2in2Core.forward (matches PyTorch)
    assert att_masks is None  # TODO(synk): masked-attention renormalization not wired in.

    h_prev = state[0][-1].astype(jnp.float32)
    c_prev = state[1][-1].astype(jnp.float32)
    B, R = h_prev.shape
    E = xt.shape[-1]
    S = att_feats.shape[1]
    Hp = p_att_feats.shape[-1]
    assert Hp == prepped['Hp'], "pass att feats through prepare_att_feats() first"
    cd = prepped['dtype']
    itemsize = jnp.dtype(cd).itemsize
    sublane = 16 if itemsize == 2 else 8

    # The ONLY per-step host-side prep: fused [h | xt] input.
    xh = jnp.concatenate([h_prev, xt.astype(jnp.float32)], axis=-1).astype(cd)   # (B, R+E)

    # ---- generation-aware tile / grid / VMEM choice --------------------------
    megacore, vmem_cap = _device_info()
    bytes_per_row = (S * R + S * Hp + (R + E)) * itemsize + 3 * R * 4
    weight_bytes = ((R * Hp + (R + E) * 5 * R + R * 2 * R) * itemsize
                    + (2 * Hp + 5 * R + 2 * R) * 4)
    Bp, TB = _pick_tiling(B, sublane, megacore, bytes_per_row, 2 * weight_bytes, vmem_cap)

    if Bp != B:   # pad batch to the tile multiple (zero rows are harmless, sliced off below)
        padb = lambda a: jnp.pad(a, ((0, Bp - B),) + ((0, 0),) * (a.ndim - 1))
        xh, c_prev = padb(xh), padb(c_prev)
        att_feats, p_att_feats = padb(att_feats), padb(p_att_feats)

    grid = (Bp // TB,)
    batched2 = lambda b: (b, 0)
    batched3 = lambda b: (b, 0, 0)
    full2 = lambda b: (0, 0)

    def run(single_buffer_weights):
        if single_buffer_weights:
            wspec = lambda shape: pl.BlockSpec(shape, full2, pipeline_mode=pl.Buffered(1))
        else:
            wspec = lambda shape: pl.BlockSpec(shape, full2)
        return pl.pallas_call(
            _att2in2_kernel,
            out_shape=(jax.ShapeDtypeStruct((Bp, R), jnp.float32),
                       jax.ShapeDtypeStruct((Bp, R), jnp.float32)),
            grid=grid,
            in_specs=[
                pl.BlockSpec((TB, R + E), batched2),       # xh
                pl.BlockSpec((TB, R), batched2),           # c_prev
                pl.BlockSpec((TB, S, R), batched3),        # att_feats
                pl.BlockSpec((TB, S, Hp), batched3),       # p_att_feats
                wspec((R, Hp)),                            # w_h2att
                wspec((1, Hp)),                            # b_h2att
                wspec((1, Hp)),                            # w_alpha (transposed, lane-dense)
                wspec((R + E, 5 * R)),                     # stacked [w_h2h; w_i2h]
                wspec((1, 5 * R)),                         # b_i2h + b_h2h
                wspec((R, 2 * R)),                         # w_a2c
                wspec((1, 2 * R)),                         # b_a2c
            ],
            out_specs=(pl.BlockSpec((TB, R), batched2),
                       pl.BlockSpec((TB, R), batched2)),
            compiler_params=pltpu.CompilerParams(
                dimension_semantics=("parallel",),
                vmem_limit_bytes=vmem_cap,
            ),
        )(xh, c_prev, att_feats, p_att_feats,
          prepped['w_h2att'], prepped['b_h2att'], prepped['w_alpha_t'],
          prepped['w_xh2h'], prepped['b_xh2h'], prepped['w_a2c'], prepped['b_a2c'])

    try:
        next_h, next_c = run(single_buffer_weights=True)
    except Exception:
        # TODO(synk): pl.Buffered(1) single-buffering unsupported on this jax/libtpu build;
        # falling back to default double-buffered weight blocks.
        next_h, next_c = run(single_buffer_weights=False)

    next_h, next_c = next_h[:B], next_c[:B]
    output = next_h  # TODO(synk): training-mode dropout not implemented (identity at eval).
    new_state = (next_h[None, ...], next_c[None, ...])
    return output, new_state


# ----------------------------- pure-JAX reference -----------------------------

def _reference_forward(xt, att_feats, p_att_feats, state, params):
    h, c = state[0][-1], state[1][-1]
    R = h.shape[-1]
    att_h = h @ params['w_h2att'] + params['b_h2att'][0]
    dot = jnp.tanh(p_att_feats + att_h[:, None, :])
    scores = (dot @ params['w_alpha'])[..., 0] + params['b_alpha'][0, 0]
    weight = jax.nn.softmax(scores, axis=1)
    att_res = jnp.einsum('bs,bsr->br', weight, att_feats)

    sums = xt @ params['w_i2h'] + params['b_i2h'][0] + h @ params['w_h2h'] + params['b_h2h'][0]
    sig = jax.nn.sigmoid(sums[:, :3 * R])
    in_g, f_g, o_g = sig[:, :R], sig[:, R:2 * R], sig[:, 2 * R:3 * R]
    it = sums[:, 3 * R:5 * R] + att_res @ params['w_a2c'] + params['b_a2c'][0]
    it = jnp.maximum(it[:, :R], it[:, R:2 * R])
    next_c = f_g * c + in_g * it
    next_h = o_g * jnp.tanh(next_c)
    return next_h, next_c


# ---------------------------------- main --------------------------------------

if __name__ == "__main__":
    # Small but TPU-friendly sizes (opt.* equivalents)
    B = 16                # batch
    E = 64                # input_encoding_size
    R = 128               # rnn_size (multiple of 128 -> lane-aligned gate slices)
    H = 64                # att_hid_size (lane-padded to 128 at prep time)
    S = 16                # att_size (number of attention locations)
    F = 128               # fc_feat_size (unused by this core)

    key = jax.random.PRNGKey(0)
    ks = jax.random.split(key, 16)

    def linear(kw, kb, fan_in, fan_out):
        bound = 1.0 / np.sqrt(fan_in)
        w = jax.random.uniform(kw, (fan_in, fan_out), jnp.float32, -bound, bound)
        b = jax.random.uniform(kb, (1, fan_out), jnp.float32, -bound, bound)
        return w, b

    params = {}
    params['w_i2h'],   params['b_i2h']   = linear(ks[0], ks[1], E, 5 * R)
    params['w_h2h'],   params['b_h2h']   = linear(ks[2], ks[3], R, 5 * R)
    params['w_a2c'],   params['b_a2c']   = linear(ks[4], ks[5], R, 2 * R)
    params['w_h2att'], params['b_h2att'] = linear(ks[6], ks[7], R, H)
    params['w_alpha'], params['b_alpha'] = linear(ks[8], ks[9], H, 1)

    xt          = jax.random.normal(ks[10], (B, E), jnp.float32)
    fc_feats    = jax.random.normal(ks[11], (B, F), jnp.float32)
    att_feats   = jax.random.normal(ks[12], (B, S, R), jnp.float32)
    p_att_feats = jax.random.normal(ks[13], (B, S, H), jnp.float32)
    h0          = jax.random.normal(ks[14], (1, B, R), jnp.float32) * 0.1
    c0          = jax.random.normal(ks[15], (1, B, R), jnp.float32) * 0.1
    state = (h0, c0)

    ref_h, ref_c = _reference_forward(xt, att_feats, p_att_feats, state, params)

    # ---------------- f32 path (tight correctness check) ----------------------
    prepped = prepare_params(params, jnp.float32)
    att_p, patt_p = prepare_att_feats(att_feats, p_att_feats, prepped)
    output, new_state = att2in2_core_forward(
        xt, fc_feats, att_p, patt_p, state, prepped, att_masks=None)
    output = jax.block_until_ready(output)
    new_state = jax.tree_util.tree_map(jax.block_until_ready, new_state)
    np.testing.assert_allclose(np.asarray(output), np.asarray(ref_h), rtol=1e-5, atol=1e-5)
    np.testing.assert_allclose(np.asarray(new_state[1][0]), np.asarray(ref_c),
                               rtol=1e-5, atol=1e-5)

    # -------- bf16 storage path (halved HBM traffic / bf16 MXU; loose check) --
    prepped_bf = prepare_params(params, jnp.bfloat16)
    att_b, patt_b = prepare_att_feats(att_feats, p_att_feats, prepped_bf)
    out_bf, state_bf = att2in2_core_forward(
        xt, fc_feats, att_b, patt_b, state, prepped_bf, att_masks=None)
    out_bf = jax.block_until_ready(out_bf)
    np.testing.assert_allclose(np.asarray(out_bf), np.asarray(ref_h), rtol=5e-2, atol=6e-2)

    print("KERNEL_OK")
</pallas_src>

<mosaic_0001>
module attributes {stable_mosaic.version = 11 : i64} {
  func.func @_att2in2_kernel(%arg0: i32, %arg1: memref<16x192xf32, #tpu.memory_space<vmem>>, %arg2: memref<16x128xf32, #tpu.memory_space<vmem>>, %arg3: memref<16x16x128xf32, #tpu.memory_space<vmem>>, %arg4: memref<16x16x128xf32, #tpu.memory_space<vmem>>, %arg5: memref<128x128xf32, #tpu.memory_space<vmem>>, %arg6: memref<1x128xf32, #tpu.memory_space<vmem>>, %arg7: memref<1x128xf32, #tpu.memory_space<vmem>>, %arg8: memref<192x640xf32, #tpu.memory_space<vmem>>, %arg9: memref<1x640xf32, #tpu.memory_space<vmem>>, %arg10: memref<128x256xf32, #tpu.memory_space<vmem>>, %arg11: memref<1x256xf32, #tpu.memory_space<vmem>>, %arg12: memref<16x128xf32, #tpu.memory_space<vmem>>, %arg13: memref<16x128xf32, #tpu.memory_space<vmem>>) attributes {dimension_semantics = [#tpu.dimension_semantics<parallel>], iteration_bounds = array<i64: 1>, scalar_prefetch = 0 : i64, scratch_operands = 0 : i64, tpu.core_type = #tpu.core_type<tc>, window_params = [{transform_indices = @transform_0, window_bounds = array<i64: 16, 192>}, {transform_indices = @transform_1, window_bounds = array<i64: 16, 128>}, {transform_indices = @transform_2, window_bounds = array<i64: 16, 16, 128>}, {transform_indices = @transform_3, window_bounds = array<i64: 16, 16, 128>}, {pipeline_mode = #tpu.pipeline_mode<synchronous>, transform_indices = @transform_4, window_bounds = array<i64: 128, 128>}, {pipeline_mode = #tpu.pipeline_mode<synchronous>, transform_indices = @transform_5, window_bounds = array<i64: 1, 128>}, {pipeline_mode = #tpu.pipeline_mode<synchronous>, transform_indices = @transform_6, window_bounds = array<i64: 1, 128>}, {pipeline_mode = #tpu.pipeline_mode<synchronous>, transform_indices = @transform_7, window_bounds = array<i64: 192, 640>}, {pipeline_mode = #tpu.pipeline_mode<synchronous>, transform_indices = @transform_8, window_bounds = array<i64: 1, 640>}, {pipeline_mode = #tpu.pipeline_mode<synchronous>, transform_indices = @transform_9, window_bounds = array<i64: 128, 256>}, {pipeline_mode = #tpu.pipeline_mode<synchronous>, transform_indices = @transform_10, window_bounds = array<i64: 1, 256>}, {transform_indices = @transform_11, window_bounds = array<i64: 16, 128>}, {transform_indices = @transform_12, window_bounds = array<i64: 16, 128>}]} {
    %c0 = arith.constant 0 : index
    %c0_0 = arith.constant 0 : index
    %0 = vector.load %arg1[%c0, %c0_0] : memref<16x192xf32, #tpu.memory_space<vmem>>, vector<16x192xf32>
    %1 = vector.extract_strided_slice %0 {offsets = [0, 0], sizes = [16, 128], strides = [1, 1]} : vector<16x192xf32> to vector<16x128xf32>
    %c0_1 = arith.constant 0 : index
    %c0_2 = arith.constant 0 : index
    %2 = vector.load %arg5[%c0_1, %c0_2] : memref<128x128xf32, #tpu.memory_space<vmem>>, vector<128x128xf32>
    %cst = arith.constant dense<0.000000e+00> : vector<16x128xf32>
    %3 = tpu.matmul %1, %2, %cst {dimension_numbers = #tpu.dot_dimension_numbers<[1], [0], [0], [1], [0, 0, 1, 1], [], []>} : vector<16x128xf32>, vector<128x128xf32>, vector<16x128xf32> -> vector<16x128xf32>
    %c0_3 = arith.constant 0 : index
    %c0_4 = arith.constant 0 : index
    %4 = vector.load %arg6[%c0_3, %c0_4] : memref<1x128xf32, #tpu.memory_space<vmem>>, vector<1x128xf32>
    %5 = vector.broadcast %4 : vector<1x128xf32> to vector<16x128xf32>
    %6 = arith.addf %3, %5 : vector<16x128xf32>
    %c0_5 = arith.constant 0 : index
    %c0_6 = arith.constant 0 : index
    %c0_7 = arith.constant 0 : index
    %7 = vector.load %arg4[%c0_5, %c0_6, %c0_7] : memref<16x16x128xf32, #tpu.memory_space<vmem>>, vector<16x16x128xf32>
    %8 = vector.shape_cast %6 : vector<16x128xf32> to vector<16x1x128xf32>
    %9 = vector.broadcast %8 : vector<16x1x128xf32> to vector<16x16x128xf32>
    %10 = arith.addf %7, %9 : vector<16x16x128xf32>
    %11 = math.tanh %10 : vector<16x16x128xf32>
    %c0_8 = arith.constant 0 : index
    %c0_9 = arith.constant 0 : index
    %12 = vector.load %arg7[%c0_8, %c0_9] : memref<1x128xf32, #tpu.memory_space<vmem>>, vector<1x128xf32>
    %13 = vector.shape_cast %12 : vector<1x128xf32> to vector<1x1x128xf32>
    %14 = vector.broadcast %13 : vector<1x1x128xf32> to vector<16x16x128xf32>
    %15 = arith.mulf %11, %14 : vector<16x16x128xf32>
    %cst_10 = arith.constant dense<0.000000e+00> : vector<16x16xf32>
    %16 = vector.multi_reduction <add>, %15, %cst_10 [2] : vector<16x16x128xf32> to vector<16x16xf32>
    %cst_11 = arith.constant dense<0xFF800000> : vector<16xf32>
    %17 = vector.multi_reduction <maximumf>, %16, %cst_11 [1] : vector<16x16xf32> to vector<16xf32>
    %18 = vector.shape_cast %17 : vector<16xf32> to vector<16x1xf32>
    %19 = vector.broadcast %18 : vector<16x1xf32> to vector<16x16xf32>
    %20 = arith.subf %16, %19 : vector<16x16xf32>
    %21 = math.exp %20 : vector<16x16xf32>
    %cst_12 = arith.constant dense<0.000000e+00> : vector<16xf32>
    %22 = vector.multi_reduction <add>, %21, %cst_12 [1] : vector<16x16xf32> to vector<16xf32>
    %23 = vector.shape_cast %22 : vector<16xf32> to vector<16x1xf32>
    %24 = tpu.reciprocal %23 {approx = true} : vector<16x1xf32> -> vector<16x1xf32>
    %25 = arith.mulf %23, %24 : vector<16x1xf32>
    %cst_13 = arith.constant 2.000000e+00 : f32
    %26 = vector.broadcast %cst_13 : f32 to vector<16x1xf32>
    %27 = arith.subf %26, %25 : vector<16x1xf32>
    %28 = arith.mulf %24, %27 : vector<16x1xf32>
    %29 = arith.mulf %23, %28 : vector<16x1xf32>
    %cst_14 = arith.constant 2.000000e+00 : f32
    %30 = vector.broadcast %cst_14 : f32 to vector<16x1xf32>
    %31 = arith.subf %30, %29 : vector<16x1xf32>
    %32 = arith.mulf %28, %31 : vector<16x1xf32>
    %33 = vector.broadcast %32 : vector<16x1xf32> to vector<16x16xf32>
    %34 = arith.mulf %21, %33 : vector<16x16xf32>
    %cst_15 = arith.constant 0.000000e+00 : f32
    %35 = vector.broadcast %cst_15 : f32 to vector<16x128xf32>
    %36 = vector.extract_strided_slice %34 {offsets = [0, 0], sizes = [16, 8], strides = [1, 1]} : vector<16x16xf32> to vector<16x8xf32>
    %c0_16 = arith.constant 0 : index
    %c0_17 = arith.constant 0 : index
    %c0_18 = arith.constant 0 : index
    %37 = vector.load %arg3[%c0_16, %c0_17, %c0_18] : memref<16x16x128xf32, #tpu.memory_space<vmem>>, vector<16x8x128xf32>
    %38 = vector.shape_cast %36 : vector<16x8xf32> to vector<16x8x1xf32>
    %39 = vector.broadcast %38 : vector<16x8x1xf32> to vector<16x8x128xf32>
    %40 = arith.mulf %39, %37 : vector<16x8x128xf32>
    %cst_19 = arith.constant dense<0.000000e+00> : vector<16x128xf32>
    %41 = vector.multi_reduction <add>, %40, %cst_19 [1] : vector<16x8x128xf32> to vector<16x128xf32>
    %42 = arith.addf %35, %41 : vector<16x128xf32>
    %43 = vector.extract_strided_slice %34 {offsets = [0, 8], sizes = [16, 8], strides = [1, 1]} : vector<16x16xf32> to vector<16x8xf32>
    %c0_20 = arith.constant 0 : index
    %c8 = arith.constant 8 : index
    %c0_21 = arith.constant 0 : index
    %44 = vector.load %arg3[%c0_20, %c8, %c0_21] : memref<16x16x128xf32, #tpu.memory_space<vmem>>, vector<16x8x128xf32>
    %45 = vector.shape_cast %43 : vector<16x8xf32> to vector<16x8x1xf32>
    %46 = vector.broadcast %45 : vector<16x8x1xf32> to vector<16x8x128xf32>
    %47 = arith.mulf %46, %44 : vector<16x8x128xf32>
    %cst_22 = arith.constant dense<0.000000e+00> : vector<16x128xf32>
    %48 = vector.multi_reduction <add>, %47, %cst_22 [1] : vector<16x8x128xf32> to vector<16x128xf32>
    %49 = arith.addf %42, %48 : vector<16x128xf32>
    %c0_23 = arith.constant 0 : index
    %c0_24 = arith.constant 0 : index
    %50 = vector.load %arg8[%c0_23, %c0_24] : memref<192x640xf32, #tpu.memory_space<vmem>>, vector<192x640xf32>
    %cst_25 = arith.constant dense<0.000000e+00> : vector<16x640xf32>
    %51 = tpu.matmul %0, %50, %cst_25 {dimension_numbers = #tpu.dot_dimension_numbers<[1], [0], [0], [1], [0, 0, 1, 1], [], []>} : vector<16x192xf32>, vector<192x640xf32>, vector<16x640xf32> -> vector<16x640xf32>
    %c0_26 = arith.constant 0 : index
    %c0_27 = arith.constant 0 : index
    %52 = vector.load %arg9[%c0_26, %c0_27] : memref<1x640xf32, #tpu.memory_space<vmem>>, vector<1x640xf32>
    %53 = vector.broadcast %52 : vector<1x640xf32> to vector<16x640xf32>
    %54 = arith.addf %51, %53 : vector<16x640xf32>
    %55 = vector.extract_strided_slice %54 {offsets = [0, 0], sizes = [16, 384], strides = [1, 1]} : vector<16x640xf32> to vector<16x384xf32>
    %56 = arith.negf %55 : vector<16x384xf32>
    %57 = math.exp %56 : vector<16x384xf32>
    %cst_28 = arith.constant 1.000000e+00 : f32
    %58 = vector.broadcast %cst_28 : f32 to vector<16x384xf32>
    %59 = arith.addf %58, %57 : vector<16x384xf32>
    %60 = arith.divf %58, %59 : vector<16x384xf32>
    %61 = vector.extract_strided_slice %60 {offsets = [0, 0], sizes = [16, 128], strides = [1, 1]} : vector<16x384xf32> to vector<16x128xf32>
    %62 = vector.extract_strided_slice %60 {offsets = [0, 128], sizes = [16, 128], strides = [1, 1]} : vector<16x384xf32> to vector<16x128xf32>
    %63 = vector.extract_strided_slice %60 {offsets = [0, 256], sizes = [16, 128], strides = [1, 1]} : vector<16x384xf32> to vector<16x128xf32>
    %c0_29 = arith.constant 0 : index
    %c0_30 = arith.constant 0 : index
    %64 = vector.load %arg10[%c0_29, %c0_30] : memref<128x256xf32, #tpu.memory_space<vmem>>, vector<128x256xf32>
    %cst_31 = arith.constant dense<0.000000e+00> : vector<16x256xf32>
    %65 = tpu.matmul %49, %64, %cst_31 {dimension_numbers = #tpu.dot_dimension_numbers<[1], [0], [0], [1], [0, 0, 1, 1], [], []>} : vector<16x128xf32>, vector<128x256xf32>, vector<16x256xf32> -> vector<16x256xf32>
    %c0_32 = arith.constant 0 : index
    %c0_33 = arith.constant 0 : index
    %66 = vector.load %arg11[%c0_32, %c0_33] : memref<1x256xf32, #tpu.memory_space<vmem>>, vector<1x256xf32>
    %67 = vector.broadcast %66 : vector<1x256xf32> to vector<16x256xf32>
    %68 = arith.addf %65, %67 : vector<16x256xf32>
    %69 = vector.extract_strided_slice %54 {offsets = [0, 384], sizes = [16, 256], strides = [1, 1]} : vector<16x640xf32> to vector<16x256xf32>
    %70 = arith.addf %69, %68 : vector<16x256xf32>
    %71 = vector.extract_strided_slice %70 {offsets = [0, 0], sizes = [16, 128], strides = [1, 1]} : vector<16x256xf32> to vector<16x128xf32>
    %72 = vector.extract_strided_slice %70 {offsets = [0, 128], sizes = [16, 128], strides = [1, 1]} : vector<16x256xf32> to vector<16x128xf32>
    %73 = arith.maximumf %71, %72 : vector<16x128xf32>
    %c0_34 = arith.constant 0 : index
    %c0_35 = arith.constant 0 : index
    %74 = vector.load %arg2[%c0_34, %c0_35] : memref<16x128xf32, #tpu.memory_space<vmem>>, vector<16x128xf32>
    %75 = arith.mulf %62, %74 : vector<16x128xf32>
    %76 = arith.mulf %61, %73 : vector<16x128xf32>
    %77 = arith.addf %75, %76 : vector<16x128xf32>
    %78 = math.tanh %77 : vector<16x128xf32>
    %79 = arith.mulf %63, %78 : vector<16x128xf32>
    %c0_36 = arith.constant 0 : index
    %c0_37 = arith.constant 0 : index
    %80 = vector.load %arg12[%c0_36, %c0_37] : memref<16x128xf32, #tpu.memory_space<vmem>>, vector<16x128xf32>
    tpu.vector_store %arg12[%c0_36, %c0_37], %79 {strides = array<i32>} : memref<16x128xf32, #tpu.memory_space<vmem>>, vector<16x128xf32>,
    %c0_38 = arith.constant 0 : index
    %c0_39 = arith.constant 0 : index
    %81 = vector.load %arg13[%c0_38, %c0_39] : memref<16x128xf32, #tpu.memory_space<vmem>>, vector<16x128xf32>
    tpu.vector_store %arg13[%c0_38, %c0_39], %77 {strides = array<i32>} : memref<16x128xf32, #tpu.memory_space<vmem>>, vector<16x128xf32>,
    return
  }
  func.func @transform_0(%arg0: i32) -> (i32, i32) {
    %c0_i32 = arith.constant 0 : i32
    %c0_i32_0 = arith.constant 0 : i32
    return %arg0, %c0_i32 : i32, i32
  }
  func.func @transform_1(%arg0: i32) -> (i32, i32) {
    %c0_i32 = arith.constant 0 : i32
    %c0_i32_0 = arith.constant 0 : i32
    return %arg0, %c0_i32 : i32, i32
  }
  func.func @transform_2(%arg0: i32) -> (i32, i32, i32) {
    %c0_i32 = arith.constant 0 : i32
    %c0_i32_0 = arith.constant 0 : i32
    %c0_i32_1 = arith.constant 0 : i32
    return %arg0, %c0_i32, %c0_i32_0 : i32, i32, i32
  }
  func.func @transform_3(%arg0: i32) -> (i32, i32, i32) {
    %c0_i32 = arith.constant 0 : i32
    %c0_i32_0 = arith.constant 0 : i32
    %c0_i32_1 = arith.constant 0 : i32
    return %arg0, %c0_i32, %c0_i32_0 : i32, i32, i32
  }
  func.func @transform_4(%arg0: i32) -> (i32, i32) {
    %c0_i32 = arith.constant 0 : i32
    %c0_i32_0 = arith.constant 0 : i32
    %c0_i32_1 = arith.constant 0 : i32
    return %c0_i32, %c0_i32_0 : i32, i32
  }
  func.func @transform_5(%arg0: i32) -> (i32, i32) {
    %c0_i32 = arith.constant 0 : i32
    %c0_i32_0 = arith.constant 0 : i32
    %c0_i32_1 = arith.constant 0 : i32
    return %c0_i32, %c0_i32_0 : i32, i32
  }
  func.func @transform_6(%arg0: i32) -> (i32, i32) {
    %c0_i32 = arith.constant 0 : i32
    %c0_i32_0 = arith.constant 0 : i32
    %c0_i32_1 = arith.constant 0 : i32
    return %c0_i32, %c0_i32_0 : i32, i32
  }
  func.func @transform_7(%arg0: i32) -> (i32, i32) {
    %c0_i32 = arith.constant 0 : i32
    %c0_i32_0 = arith.constant 0 : i32
    %c0_i32_1 = arith.constant 0 : i32
    return %c0_i32, %c0_i32_0 : i32, i32
  }
  func.func @transform_8(%arg0: i32) -> (i32, i32) {
    %c0_i32 = arith.constant 0 : i32
    %c0_i32_0 = arith.constant 0 : i32
    %c0_i32_1 = arith.constant 0 : i32
    return %c0_i32, %c0_i32_0 : i32, i32
  }
  func.func @transform_9(%arg0: i32) -> (i32, i32) {
    %c0_i32 = arith.constant 0 : i32
    %c0_i32_0 = arith.constant 0 : i32
    %c0_i32_1 = arith.constant 0 : i32
    return %c0_i32, %c0_i32_0 : i32, i32
  }
  func.func @transform_10(%arg0: i32) -> (i32, i32) {
    %c0_i32 = arith.constant 0 : i32
    %c0_i32_0 = arith.constant 0 : i32
    %c0_i32_1 = arith.constant 0 : i32
    return %c0_i32, %c0_i32_0 : i32, i32
  }
  func.func @transform_11(%arg0: i32) -> (i32, i32) {
    %c0_i32 = arith.constant 0 : i32
    %c0_i32_0 = arith.constant 0 : i32
    return %arg0, %c0_i32 : i32, i32
  }
  func.func @transform_12(%arg0: i32) -> (i32, i32) {
    %c0_i32 = arith.constant 0 : i32
    %c0_i32_0 = arith.constant 0 : i32
    return %arg0, %c0_i32 : i32, i32
  }
}

module attributes {stable_mosaic.version = 11 : i64} {
  func.func @_att2in2_kernel(%arg0: i32, %arg1: memref<16x192xf32, #tpu.memory_space<vmem>>, %arg2: memref<16x128xf32, #tpu.memory_space<vmem>>, %arg3: memref<16x16x128xf32, #tpu.memory_space<vmem>>, %arg4: memref<16x16x128xf32, #tpu.memory_space<vmem>>, %arg5: memref<128x128xf32, #tpu.memory_space<vmem>>, %arg6: memref<1x128xf32, #tpu.memory_space<vmem>>, %arg7: memref<1x128xf32, #tpu.memory_space<vmem>>, %arg8: memref<192x640xf32, #tpu.memory_space<vmem>>, %arg9: memref<1x640xf32, #tpu.memory_space<vmem>>, %arg10: memref<128x256xf32, #tpu.memory_space<vmem>>, %arg11: memref<1x256xf32, #tpu.memory_space<vmem>>, %arg12: memref<16x128xf32, #tpu.memory_space<vmem>>, %arg13: memref<16x128xf32, #tpu.memory_space<vmem>>) attributes {dimension_semantics = [#tpu.dimension_semantics<parallel>], iteration_bounds = array<i64: 1>, scalar_prefetch = 0 : i64, scratch_operands = 0 : i64, tpu.core_type = #tpu.core_type<tc>, window_params = [{transform_indices = @transform_0, window_bounds = array<i64: 16, 192>}, {transform_indices = @transform_1, window_bounds = array<i64: 16, 128>}, {transform_indices = @transform_2, window_bounds = array<i64: 16, 16, 128>}, {transform_indices = @transform_3, window_bounds = array<i64: 16, 16, 128>}, {pipeline_mode = #tpu.pipeline_mode<synchronous>, transform_indices = @transform_4, window_bounds = array<i64: 128, 128>}, {pipeline_mode = #tpu.pipeline_mode<synchronous>, transform_indices = @transform_5, window_bounds = array<i64: 1, 128>}, {pipeline_mode = #tpu.pipeline_mode<synchronous>, transform_indices = @transform_6, window_bounds = array<i64: 1, 128>}, {pipeline_mode = #tpu.pipeline_mode<synchronous>, transform_indices = @transform_7, window_bounds = array<i64: 192, 640>}, {pipeline_mode = #tpu.pipeline_mode<synchronous>, transform_indices = @transform_8, window_bounds = array<i64: 1, 640>}, {pipeline_mode = #tpu.pipeline_mode<synchronous>, transform_indices = @transform_9, window_bounds = array<i64: 128, 256>}, {pipeline_mode = #tpu.pipeline_mode<synchronous>, transform_indices = @transform_10, window_bounds = array<i64: 1, 256>}, {transform_indices = @transform_11, window_bounds = array<i64: 16, 128>}, {transform_indices = @transform_12, window_bounds = array<i64: 16, 128>}]} {
    %c0 = arith.constant 0 : index
    %c0_0 = arith.constant 0 : index
    %0 = vector.load %arg1[%c0, %c0_0] : memref<16x192xf32, #tpu.memory_space<vmem>>, vector<16x192xf32>
    %1 = vector.extract_strided_slice %0 {offsets = [0, 0], sizes = [16, 128], strides = [1, 1]} : vector<16x192xf32> to vector<16x128xf32>
    %c0_1 = arith.constant 0 : index
    %c0_2 = arith.constant 0 : index
    %2 = vector.load %arg5[%c0_1, %c0_2] : memref<128x128xf32, #tpu.memory_space<vmem>>, vector<128x128xf32>
    %cst = arith.constant dense<0.000000e+00> : vector<16x128xf32>
    %3 = tpu.matmul %1, %2, %cst {dimension_numbers = #tpu.dot_dimension_numbers<[1], [0], [0], [1], [0, 0, 1, 1], [], []>} : vector<16x128xf32>, vector<128x128xf32>, vector<16x128xf32> -> vector<16x128xf32>
    %c0_3 = arith.constant 0 : index
    %c0_4 = arith.constant 0 : index
    %4 = vector.load %arg6[%c0_3, %c0_4] : memref<1x128xf32, #tpu.memory_space<vmem>>, vector<1x128xf32>
    %5 = vector.broadcast %4 : vector<1x128xf32> to vector<16x128xf32>
    %6 = arith.addf %3, %5 : vector<16x128xf32>
    %c0_5 = arith.constant 0 : index
    %c0_6 = arith.constant 0 : index
    %c0_7 = arith.constant 0 : index
    %7 = vector.load %arg4[%c0_5, %c0_6, %c0_7] : memref<16x16x128xf32, #tpu.memory_space<vmem>>, vector<16x16x128xf32>
    %8 = vector.shape_cast %6 : vector<16x128xf32> to vector<16x1x128xf32>
    %9 = vector.broadcast %8 : vector<16x1x128xf32> to vector<16x16x128xf32>
    %10 = arith.addf %7, %9 : vector<16x16x128xf32>
    %11 = math.tanh %10 : vector<16x16x128xf32>
    %c0_8 = arith.constant 0 : index
    %c0_9 = arith.constant 0 : index
    %12 = vector.load %arg7[%c0_8, %c0_9] : memref<1x128xf32, #tpu.memory_space<vmem>>, vector<1x128xf32>
    %13 = vector.shape_cast %12 : vector<1x128xf32> to vector<1x1x128xf32>
    %14 = vector.broadcast %13 : vector<1x1x128xf32> to vector<16x16x128xf32>
    %15 = arith.mulf %11, %14 : vector<16x16x128xf32>
    %cst_10 = arith.constant dense<0.000000e+00> : vector<16x16xf32>
    %16 = vector.multi_reduction <add>, %15, %cst_10 [2] : vector<16x16x128xf32> to vector<16x16xf32>
    %cst_11 = arith.constant dense<0xFF800000> : vector<16xf32>
    %17 = vector.multi_reduction <maximumf>, %16, %cst_11 [1] : vector<16x16xf32> to vector<16xf32>
    %18 = vector.shape_cast %17 : vector<16xf32> to vector<16x1xf32>
    %19 = vector.broadcast %18 : vector<16x1xf32> to vector<16x16xf32>
    %20 = arith.subf %16, %19 : vector<16x16xf32>
    %21 = math.exp %20 : vector<16x16xf32>
    %cst_12 = arith.constant dense<0.000000e+00> : vector<16xf32>
    %22 = vector.multi_reduction <add>, %21, %cst_12 [1] : vector<16x16xf32> to vector<16xf32>
    %23 = vector.shape_cast %22 : vector<16xf32> to vector<16x1xf32>
    %24 = tpu.reciprocal %23 {approx = true} : vector<16x1xf32> -> vector<16x1xf32>
    %25 = arith.mulf %23, %24 : vector<16x1xf32>
    %cst_13 = arith.constant 2.000000e+00 : f32
    %26 = vector.broadcast %cst_13 : f32 to vector<16x1xf32>
    %27 = arith.subf %26, %25 : vector<16x1xf32>
    %28 = arith.mulf %24, %27 : vector<16x1xf32>
    %29 = arith.mulf %23, %28 : vector<16x1xf32>
    %cst_14 = arith.constant 2.000000e+00 : f32
    %30 = vector.broadcast %cst_14 : f32 to vector<16x1xf32>
    %31 = arith.subf %30, %29 : vector<16x1xf32>
    %32 = arith.mulf %28, %31 : vector<16x1xf32>
    %33 = vector.broadcast %32 : vector<16x1xf32> to vector<16x16xf32>
    %34 = arith.mulf %21, %33 : vector<16x16xf32>
    %cst_15 = arith.constant 0.000000e+00 : f32
    %35 = vector.broadcast %cst_15 : f32 to vector<16x128xf32>
    %36 = vector.extract_strided_slice %34 {offsets = [0, 0], sizes = [16, 8], strides = [1, 1]} : vector<16x16xf32> to vector<16x8xf32>
    %c0_16 = arith.constant 0 : index
    %c0_17 = arith.constant 0 : index
    %c0_18 = arith.constant 0 : index
    %37 = vector.load %arg3[%c0_16, %c0_17, %c0_18] : memref<16x16x128xf32, #tpu.memory_space<vmem>>, vector<16x8x128xf32>
    %38 = vector.shape_cast %36 : vector<16x8xf32> to vector<16x8x1xf32>
    %39 = vector.broadcast %38 : vector<16x8x1xf32> to vector<16x8x128xf32>
    %40 = arith.mulf %39, %37 : vector<16x8x128xf32>
    %cst_19 = arith.constant dense<0.000000e+00> : vector<16x128xf32>
    %41 = vector.multi_reduction <add>, %40, %cst_19 [1] : vector<16x8x128xf32> to vector<16x128xf32>
    %42 = arith.addf %35, %41 : vector<16x128xf32>
    %43 = vector.extract_strided_slice %34 {offsets = [0, 8], sizes = [16, 8], strides = [1, 1]} : vector<16x16xf32> to vector<16x8xf32>
    %c0_20 = arith.constant 0 : index
    %c8 = arith.constant 8 : index
    %c0_21 = arith.constant 0 : index
    %44 = vector.load %arg3[%c0_20, %c8, %c0_21] : memref<16x16x128xf32, #tpu.memory_space<vmem>>, vector<16x8x128xf32>
    %45 = vector.shape_cast %43 : vector<16x8xf32> to vector<16x8x1xf32>
    %46 = vector.broadcast %45 : vector<16x8x1xf32> to vector<16x8x128xf32>
    %47 = arith.mulf %46, %44 : vector<16x8x128xf32>
    %cst_22 = arith.constant dense<0.000000e+00> : vector<16x128xf32>
    %48 = vector.multi_reduction <add>, %47, %cst_22 [1] : vector<16x8x128xf32> to vector<16x128xf32>
    %49 = arith.addf %42, %48 : vector<16x128xf32>
    %c0_23 = arith.constant 0 : index
    %c0_24 = arith.constant 0 : index
    %50 = vector.load %arg8[%c0_23, %c0_24] : memref<192x640xf32, #tpu.memory_space<vmem>>, vector<192x640xf32>
    %cst_25 = arith.constant dense<0.000000e+00> : vector<16x640xf32>
    %51 = tpu.matmul %0, %50, %cst_25 {dimension_numbers = #tpu.dot_dimension_numbers<[1], [0], [0], [1], [0, 0, 1, 1], [], []>} : vector<16x192xf32>, vector<192x640xf32>, vector<16x640xf32> -> vector<16x640xf32>
    %c0_26 = arith.constant 0 : index
    %c0_27 = arith.constant 0 : index
    %52 = vector.load %arg9[%c0_26, %c0_27] : memref<1x640xf32, #tpu.memory_space<vmem>>, vector<1x640xf32>
    %53 = vector.broadcast %52 : vector<1x640xf32> to vector<16x640xf32>
    %54 = arith.addf %51, %53 : vector<16x640xf32>
    %55 = vector.extract_strided_slice %54 {offsets = [0, 0], sizes = [16, 384], strides = [1, 1]} : vector<16x640xf32> to vector<16x384xf32>
    %56 = arith.negf %55 : vector<16x384xf32>
    %57 = math.exp %56 : vector<16x384xf32>
    %cst_28 = arith.constant 1.000000e+00 : f32
    %58 = vector.broadcast %cst_28 : f32 to vector<16x384xf32>
    %59 = arith.addf %58, %57 : vector<16x384xf32>
    %60 = arith.divf %58, %59 : vector<16x384xf32>
    %61 = vector.extract_strided_slice %60 {offsets = [0, 0], sizes = [16, 128], strides = [1, 1]} : vector<16x384xf32> to vector<16x128xf32>
    %62 = vector.extract_strided_slice %60 {offsets = [0, 128], sizes = [16, 128], strides = [1, 1]} : vector<16x384xf32> to vector<16x128xf32>
    %63 = vector.extract_strided_slice %60 {offsets = [0, 256], sizes = [16, 128], strides = [1, 1]} : vector<16x384xf32> to vector<16x128xf32>
    %c0_29 = arith.constant 0 : index
    %c0_30 = arith.constant 0 : index
    %64 = vector.load %arg10[%c0_29, %c0_30] : memref<128x256xf32, #tpu.memory_space<vmem>>, vector<128x256xf32>
    %cst_31 = arith.constant dense<0.000000e+00> : vector<16x256xf32>
    %65 = tpu.matmul %49, %64, %cst_31 {dimension_numbers = #tpu.dot_dimension_numbers<[1], [0], [0], [1], [0, 0, 1, 1], [], []>} : vector<16x128xf32>, vector<128x256xf32>, vector<16x256xf32> -> vector<16x256xf32>
    %c0_32 = arith.constant 0 : index
    %c0_33 = arith.constant 0 : index
    %66 = vector.load %arg11[%c0_32, %c0_33] : memref<1x256xf32, #tpu.memory_space<vmem>>, vector<1x256xf32>
    %67 = vector.broadcast %66 : vector<1x256xf32> to vector<16x256xf32>
    %68 = arith.addf %65, %67 : vector<16x256xf32>
    %69 = vector.extract_strided_slice %54 {offsets = [0, 384], sizes = [16, 256], strides = [1, 1]} : vector<16x640xf32> to vector<16x256xf32>
    %70 = arith.addf %69, %68 : vector<16x256xf32>
    %71 = vector.extract_strided_slice %70 {offsets = [0, 0], sizes = [16, 128], strides = [1, 1]} : vector<16x256xf32> to vector<16x128xf32>
    %72 = vector.extract_strided_slice %70 {offsets = [0, 128], sizes = [16, 128], strides = [1, 1]} : vector<16x256xf32> to vector<16x128xf32>
    %73 = arith.maximumf %71, %72 : vector<16x128xf32>
    %c0_34 = arith.constant 0 : index
    %c0_35 = arith.constant 0 : index
    %74 = vector.load %arg2[%c0_34, %c0_35] : memref<16x128xf32, #tpu.memory_space<vmem>>, vector<16x128xf32>
    %75 = arith.mulf %62, %74 : vector<16x128xf32>
    %76 = arith.mulf %61, %73 : vector<16x128xf32>
    %77 = arith.addf %75, %76 : vector<16x128xf32>
    %78 = math.tanh %77 : vector<16x128xf32>
    %79 = arith.mulf %63, %78 : vector<16x128xf32>
    %c0_36 = arith.constant 0 : index
    %c0_37 = arith.constant 0 : index
    %80 = vector.load %arg12[%c0_36, %c0_37] : memref<16x128xf32, #tpu.memory_space<vmem>>, vector<16x128xf32>
    tpu.vector_store %arg12[%c0_36, %c0_37], %79 {strides = array<i32>} : memref<16x128xf32, #tpu.memory_space<vmem>>, vector<16x128xf32>,
    %c0_38 = arith.constant 0 : index
    %c0_39 = arith.constant 0 : index
    %81 = vector.load %arg13[%c0_38, %c0_39] : memref<16x128xf32, #tpu.memory_space<vmem>>, vector<16x128xf32>
    tpu.vector_store %arg13[%c0_38, %c0_39], %77 {strides = array<i32>} : memref<16x128xf32, #tpu.memory_space<vmem>>, vector<16x128xf32>,
    return
  }
  func.func @transform_0(%arg0: i32) -> (i32, i32) {
    %c0_i32 = arith.constant 0 : i32
    %c0_i32_0 = arith.constant 0 : i32
    return %arg0, %c0_i32 : i32, i32
  }
  func.func @transform_1(%arg0: i32) -> (i32, i32) {
    %c0_i32 = arith.constant 0 : i32
    %c0_i32_0 = arith.constant 0 : i32
    return %arg0, %c0_i32 : i32, i32
  }
  func.func @transform_2(%arg0: i32) -> (i32, i32, i32) {
    %c0_i32 = arith.constant 0 : i32
    %c0_i32_0 = arith.constant 0 : i32
    %c0_i32_1 = arith.constant 0 : i32
    return %arg0, %c0_i32, %c0_i32_0 : i32, i32, i32
  }
  func.func @transform_3(%arg0: i32) -> (i32, i32, i32) {
    %c0_i32 = arith.constant 0 : i32
    %c0_i32_0 = arith.constant 0 : i32
    %c0_i32_1 = arith.constant 0 : i32
    return %arg0, %c0_i32, %c0_i32_0 : i32, i32, i32
  }
  func.func @transform_4(%arg0: i32) -> (i32, i32) {
    %c0_i32 = arith.constant 0 : i32
    %c0_i32_0 = arith.constant 0 : i32
    %c0_i32_1 = arith.constant 0 : i32
    return %c0_i32, %c0_i32_0 : i32, i32
  }
  func.func @transform_5(%arg0: i32) -> (i32, i32) {
    %c0_i32 = arith.constant 0 : i32
    %c0_i32_0 = arith.constant 0 : i32
    %c0_i32_1 = arith.constant 0 : i32
    return %c0_i32, %c0_i32_0 : i32, i32
  }
  func.func @transform_6(%arg0: i32) -> (i32, i32) {
    %c0_i32 = arith.constant 0 : i32
    %c0_i32_0 = arith.constant 0 : i32
    %c0_i32_1 = arith.constant 0 : i32
    return %c0_i32, %c0_i32_0 : i32, i32
  }
  func.func @transform_7(%arg0: i32) -> (i32, i32) {
    %c0_i32 = arith.constant 0 : i32
    %c0_i32_0 = arith.constant 0 : i32
    %c0_i32_1 = arith.constant 0 : i32
    return %c0_i32, %c0_i32_0 : i32, i32
  }
  func.func @transform_8(%arg0: i32) -> (i32, i32) {
    %c0_i32 = arith.constant 0 : i32
    %c0_i32_0 = arith.constant 0 : i32
    %c0_i32_1 = arith.constant 0 : i32
    return %c0_i32, %c0_i32_0 : i32, i32
  }
  func.func @transform_9(%arg0: i32) -> (i32, i32) {
    %c0_i32 = arith.constant 0 : i32
    %c0_i32_0 = arith.constant 0 : i32
    %c0_i32_1 = arith.constant 0 : i32
    return %c0_i32, %c0_i32_0 : i32, i32
  }
  func.func @transform_10(%arg0: i32) -> (i32, i32) {
    %c0_i32 = arith.constant 0 : i32
    %c0_i32_0 = arith.constant 0 : i32
    %c0_i32_1 = arith.constant 0 : i32
    return %c0_i32, %c0_i32_0 : i32, i32
  }
  func.func @transform_11(%arg0: i32) -> (i32, i32) {
    %c0_i32 = arith.constant 0 : i32
    %c0_i32_0 = arith.constant 0 : i32
    return %arg0, %c0_i32 : i32, i32
  }
  func.func @transform_12(%arg0: i32) -> (i32, i32) {
    %c0_i32 = arith.constant 0 : i32
    %c0_i32_0 = arith.constant 0 : i32
    return %arg0, %c0_i32 : i32, i32
  }
}

</mosaic_0001>

<bundles_post_ra>
// kernel: tpu_custom_call.1
= control target key start
LH: loop header
LB: loop body
LE: loop exit
PB: predicated region body
PF: predicated region fallthrough
CT: control target
= control target key end

     0   :  { %18 = vsyncpa [#allocation3], 0  ;;  %s4341_s0 = inlined_call_operand.hbm [shape: f32[16,192], index: 0, kind: input, shape index: {}]   ;;  %s4342_s1 = inlined_call_operand.hbm [shape: f32[16,128], index: 1, kind: input, shape index: {}]   ;;  %s4343_s2 = inlined_call_operand.hbm [shape: f32[16,16,128], index: 2, kind: input, shape index: {}]   ;;  %s4344_s3 = inlined_call_operand.hbm [shape: f32[16,16,128], index: 3, kind: input, shape index: {}]   ;;  %s4345_s4 = inlined_call_operand.hbm [shape: f32[128,128], index: 4, kind: input, shape index: {}]   ;;  %s4346_s5 = inlined_call_operand.hbm [shape: f32[1,128], index: 5, kind: input, shape index: {}]   ;;  %s4347_s6 = inlined_call_operand.hbm [shape: f32[1,128], index: 6, kind: input, shape index: {}]   ;;  %s4348_s7 = inlined_call_operand.hbm [shape: f32[192,640], index: 7, kind: input, shape index: {}]   ;;  %s4349_s8 = inlined_call_operand.hbm [shape: f32[1,640], index: 8, kind: input, shape index: {}]   ;;  %s4350_s9 = inlined_call_operand.hbm [shape: f32[128,256], index: 9, kind: input, shape index: {}]   ;;  %s4351_s10 = inlined_call_operand.hbm [shape: f32[1,256], index: 10, kind: input, shape index: {}]   ;;  %s4352_s11 = inlined_call_operand.hbm [shape: f32[16,128], index: 11, kind: output, shape index: {0}]   ;;  %s4353_s12 = inlined_call_operand.hbm [shape: f32[16,128], index: 12, kind: output, shape index: {1}]  }
   0x1   :  { %19 = vsyncpa [#allocation6], 0 }
   0x2   :  { %20 = vsyncpa [#allocation9], 0 }
   0x3   :  { %21 = vsyncpa [#allocation12], 0 }
   0x4   :  { %22 = vsyncpa [#allocation15], 0 }
   0x5   :  { %23 = vsyncpa [#allocation18], 0 }
   0x6   :  { %24 = vsyncpa [#allocation4], 0 }
   0x7   :  { %25 = vsyncpa [#allocation22], 0  ;;  %s3306_s21 = smov [#allocation5]   ;;  %s3004_s25 = scalar_lea.hbm %s4342_s1, 256 }
   0x8   :  { %s43_s22 = sshll.u32 %s3306_s21, 4  ;;  %p3005_p0 = scmp.ne.s32.totalorder %s4342_s1, %s3004_s25  ;;  %s44_s22 = int_to_ptr.vmem [resolvable:$true] %s43_s22 }
   0x9   :  { %p3008_p1 = scmp.lt.u32.totalorder %s3004_s25, %s4342_s1 }
   0xb   :  { %p3010_p2 = pnand %p3008_p1, %p3005_p0 }
   0xd   :  { %3013 = shalt.err (!%p3010_p2)
}
   0xe   :  { %s3014_s30 = scalar_lea.vmem %s44_s22, 256  ;;  %p3019_p4 = scmp.lt.s32.totalorder %s44_s22, %s44_s22 }
   0xf   :  { %p3015_p3 = scmp.ne.s32.totalorder %s44_s22, %s3014_s30  ;;  %p3020_p5 = scmp.lt.s32.totalorder %s3014_s30, %s3014_s30 }
  0x11   :  { %p3021_p6 = por %p3020_p5, %p3019_p4 }
  0x13   :  { %p3022_p7 = pnand %p3021_p6, %p3015_p3 }
  0x15   :  { %3025 = shalt.err (!%p3022_p7)
}
  0x16   :  { %s3307_s13 = smov 128   ;;  %s3308_s14 = smov 8  }
  0x17   :  { %49 = dma.hbm_to_vmem [thread:$0]  %s4342_s1, 256, %s44_s22, [#allocation6], %s3307_s13, %s3307_s13, %s3308_s14  }
  0x18   :  { %s3309_s17 = smov [#allocation8]   ;;  %s3310_s19 = smov [#allocation11]  }
  0x19   :  { %s67_s18 = sshll.u32 %s3309_s17, 4  ;;  %s92_s20 = sshll.u32 %s3310_s19, 4  ;;  %s68_s18 = int_to_ptr.vmem [resolvable:$true] %s67_s18  ;;  %s93_s20 = int_to_ptr.vmem [resolvable:$true] %s92_s20 }
  0x1a   :  { %s3026_s24 = scalar_lea.hbm %s4344_s3, 4096 }
  0x1b   :  { %p3027_p8 = scmp.ne.s32.totalorder %s4344_s3, %s3026_s24  ;;  %p3030_p9 = scmp.lt.u32.totalorder %s3026_s24, %s4344_s3 }
  0x1d   :  { %p3032_p10 = pnand %p3030_p9, %p3027_p8 }
  0x1f   :  { %3035 = shalt.err (!%p3032_p10)
}
  0x20   :  { %s3036_s1 = scalar_lea.vmem %s68_s18, 4096  ;;  %p3041_p12 = scmp.lt.s32.totalorder %s68_s18, %s68_s18 }
  0x21   :  { %p3037_p11 = scmp.ne.s32.totalorder %s68_s18, %s3036_s1  ;;  %p3042_p13 = scmp.lt.s32.totalorder %s3036_s1, %s3036_s1 }
  0x23   :  { %p3043_p0 = por %p3042_p13, %p3041_p12 }
  0x25   :  { %p3044_p1 = pnand %p3043_p0, %p3037_p11 }
  0x27   :  { %3047 = shalt.err (!%p3044_p1)
}
  0x28   :  { %73 = dma.hbm_to_vmem [thread:$0]  %s4344_s3, 4096, %s68_s18, [#allocation9], %s3307_s13, %s3307_s13, %s3308_s14  }
  0x29   :  { %s3048_s16 = scalar_lea.hbm %s4346_s5, 16 }
  0x2a   :  { %p3049_p2 = scmp.ne.s32.totalorder %s4346_s5, %s3048_s16  ;;  %p3052_p3 = scmp.lt.u32.totalorder %s3048_s16, %s4346_s5 }
  0x2c   :  { %p3054_p4 = pnand %p3052_p3, %p3049_p2 }
  0x2e   :  { %3057 = shalt.err (!%p3054_p4)
}
  0x2f   :  { %s3058_s24 = scalar_lea.vmem %s93_s20, 16  ;;  %s3062_s25 = scalar_lea.vmem %s93_s20, 32 }
  0x30   :  { %p3059_p5 = scmp.ne.s32.totalorder %s93_s20, %s3058_s24  ;;  %p3063_p6 = scmp.lt.s32.totalorder %s93_s20, %s93_s20 }
  0x31   :  { %p3064_p7 = scmp.lt.s32.totalorder %s3062_s25, %s3058_s24 }
  0x33   :  { %p3065_p8 = por %p3064_p7, %p3063_p6 }
  0x35   :  { %p3066_p9 = pnand %p3065_p8, %p3059_p5 }
  0x37   :  { %3069 = shalt.err (!%p3066_p9)
}
  0x38   :  { %95 = dma.hbm_to_vmem [thread:$0]  %s4346_s5, 16, %s93_s20, [#allocation12]  }
  0x39   :  { %s3311_s26 = smov [#allocation14]   ;;  %s3070_s22 = scalar_lea.hbm %s4348_s7, 15360 }
  0x3a   :  { %s111_s27 = sshll.u32 %s3311_s26, 4  ;;  %p3071_p10 = scmp.ne.s32.totalorder %s4348_s7, %s3070_s22  ;;  %s112_s27 = int_to_ptr.vmem [resolvable:$true] %s111_s27 }
  0x3b   :  { %p3074_p11 = scmp.lt.u32.totalorder %s3070_s22, %s4348_s7 }
  0x3d   :  { %p3076_p12 = pnand %p3074_p11, %p3071_p10 }
  0x3f   :  { %3079 = shalt.err (!%p3076_p12)
}
  0x40   :  { %s3080_s17 = scalar_lea.vmem %s112_s27, 15360  ;;  %p3085_p0 = scmp.lt.s32.totalorder %s112_s27, %s112_s27 }
  0x41   :  { %p3081_p13 = scmp.ne.s32.totalorder %s112_s27, %s3080_s17  ;;  %p3086_p1 = scmp.lt.s32.totalorder %s3080_s17, %s3080_s17 }
  0x43   :  { %p3087_p2 = por %p3086_p1, %p3085_p0 }
  0x45   :  { %p3088_p3 = pnand %p3087_p2, %p3081_p13 }
  0x47   :  { %3091 = shalt.err (!%p3088_p3)
}
  0x48   :  { %s3312_s5 = smov 640   ;;  %s3313_s20 = smov 40  }
  0x49   :  { %117 = dma.hbm_to_vmem [thread:$0]  %s4348_s7, 15360, %s112_s27, [#allocation15], %s3312_s5, %s3312_s5, %s3313_s20  }
  0x4a   :  { %s3314_s23 = smov [#allocation17]   ;;  %s3315_s25 = smov [#allocation2]  }
  0x4b   :  { %s133_s24 = sshll.u32 %s3314_s23, 4  ;;  %s31_s3 = sshll.u32 %s3315_s25, 4  ;;  %s134_s24 = int_to_ptr.vmem [resolvable:$true] %s133_s24  ;;  %s3448_s3 = int_to_ptr.vmem [resolvable:$true] %s31_s3 }
  0x4c   :  { %s3092_s28 = scalar_lea.hbm %s4350_s9, 4096 }
  0x4d   :  { %p3093_p4 = scmp.ne.s32.totalorder %s4350_s9, %s3092_s28  ;;  %p3096_p5 = scmp.lt.u32.totalorder %s3092_s28, %s4350_s9 }
  0x4f   :  { %p3098_p6 = pnand %p3096_p5, %p3093_p4 }
  0x51   :  { %3101 = shalt.err (!%p3098_p6)
}
  0x52   :  { %s3102_s7 = scalar_lea.vmem %s134_s24, 4096  ;;  %p3107_p8 = scmp.lt.s32.totalorder %s134_s24, %s134_s24 }
  0x53   :  { %p3103_p7 = scmp.ne.s32.totalorder %s134_s24, %s3102_s7  ;;  %p3108_p9 = scmp.lt.s32.totalorder %s3102_s7, %s3102_s7 }
  0x55   :  { %p3109_p10 = por %p3108_p9, %p3107_p8 }
  0x57   :  { %p3110_p11 = pnand %p3109_p10, %p3103_p7 }
  0x59   :  { %3113 = shalt.err (!%p3110_p11)
}
  0x5a   :  { %s3316_s27 = smov 256   ;;  %s3317_s15 = smov 16  }
  0x5b   :  { %139 = dma.hbm_to_vmem [thread:$0]  %s4350_s9, 4096, %s134_s24, [#allocation18], %s3316_s27, %s3316_s27, %s3317_s15  }
  0x5c   :  { %s3114_s19 = scalar_lea.hbm %s4341_s0, 512 }
  0x5d   :  { %p3115_p12 = scmp.ne.s32.totalorder %s4341_s0, %s3114_s19  ;;  %p3118_p13 = scmp.lt.u32.totalorder %s3114_s19, %s4341_s0 }
  0x5f   :  { %p3120_p0 = pnand %p3118_p13, %p3115_p12 }
  0x61   :  { %3123 = shalt.err (!%p3120_p0)
}
  0x62   :  { %s3124_s26 = scalar_lea.vmem %s3448_s3, 512  ;;  %p3129_p2 = scmp.lt.s32.totalorder %s3448_s3, %s3448_s3 }
  0x63   :  { %p3125_p1 = scmp.ne.s32.totalorder %s3448_s3, %s3124_s26  ;;  %p3130_p3 = scmp.lt.s32.totalorder %s3124_s26, %s3124_s26 }
  0x65   :  { %p3131_p4 = por %p3130_p3, %p3129_p2 }
  0x67   :  { %p3132_p5 = pnand %p3131_p4, %p3125_p1 }
  0x69   :  { %3135 = shalt.err (!%p3132_p5)
}
  0x6a   :  { %37 = dma.hbm_to_vmem [thread:$0]  %s4341_s0, 512, %s3448_s3, [#allocation3], %s3316_s27, %s3316_s27, %s3317_s15  }
  0x6b   :  { %s3318_s28 = smov [#allocation7]   ;;  %s3319_s22 = smov [#allocation10]  }
  0x6c   :  { %s55_s1 = sshll.u32 %s3318_s28, 4  ;;  %s79_s29 = sshll.u32 %s3319_s22, 4  ;;  %s56_s1 = int_to_ptr.vmem [resolvable:$true] %s55_s1  ;;  %s3479_s29 = int_to_ptr.vmem [resolvable:$true] %s79_s29 }
  0x6d   :  { %s3136_s16 = scalar_lea.hbm %s4343_s2, 4096 }
  0x6e   :  { %p3137_p6 = scmp.ne.s32.totalorder %s4343_s2, %s3136_s16  ;;  %p3140_p7 = scmp.lt.u32.totalorder %s3136_s16, %s4343_s2 }
  0x70   :  { %p3142_p8 = pnand %p3140_p7, %p3137_p6 }
  0x72   :  { %3145 = shalt.err (!%p3142_p8)
}
  0x73   :  { %s3146_s0 = scalar_lea.vmem %s56_s1, 4096  ;;  %p3151_p10 = scmp.lt.s32.totalorder %s56_s1, %s56_s1 }
  0x74   :  { %p3147_p9 = scmp.ne.s32.totalorder %s56_s1, %s3146_s0  ;;  %p3152_p11 = scmp.lt.s32.totalorder %s3146_s0, %s3146_s0 }
  0x76   :  { %p3153_p12 = por %p3152_p11, %p3151_p10 }
  0x78   :  { %p3154_p13 = pnand %p3153_p12, %p3147_p9 }
  0x7a   :  { %3157 = shalt.err (!%p3154_p13)
}
  0x7b   :  { %61 = dma.hbm_to_vmem [thread:$0]  %s4343_s2, 4096, %s56_s1, [#allocation6], %s3307_s13, %s3307_s13, %s3308_s14  }
  0x7c   :  { %s3158_s23 = scalar_lea.hbm %s4345_s4, 2048 }
  0x7d   :  { %p3159_p0 = scmp.ne.s32.totalorder %s4345_s4, %s3158_s23  ;;  %p3162_p1 = scmp.lt.u32.totalorder %s3158_s23, %s4345_s4 }
  0x7f   :  { %p3164_p2 = pnand %p3162_p1, %p3159_p0 }
  0x81   :  { %3167 = shalt.err (!%p3164_p2)
}
  0x82   :  { %s3168_s24 = scalar_lea.vmem %s3479_s29, 2048  ;;  %p3173_p4 = scmp.lt.s32.totalorder %s3479_s29, %s3479_s29 }
  0x83   :  { %p3169_p3 = scmp.ne.s32.totalorder %s3479_s29, %s3168_s24  ;;  %p3174_p5 = scmp.lt.s32.totalorder %s3168_s24, %s3168_s24 }
  0x85   :  { %p3175_p6 = por %p3174_p5, %p3173_p4 }
  0x87   :  { %p3176_p7 = pnand %p3175_p6, %p3169_p3 }
  0x89   :  { %3179 = shalt.err (!%p3176_p7)
}
  0x8a   :  { %85 = dma.hbm_to_vmem [thread:$0]  %s4345_s4, 2048, %s3479_s29, [#allocation9], %s3307_s13, %s3307_s13, %s3308_s14  }
  0x8b   :  { %s3320_s1 = smov [#allocation13]   ;;  %s3321_s30 = smov [#allocation16]  }
  0x8c   :  { %s102_s22 = sshll.u32 %s3320_s1, 4  ;;  %s124_s7 = sshll.u32 %s3321_s30, 4  ;;  %s103_s22 = int_to_ptr.vmem [resolvable:$true] %s102_s22  ;;  %s125_s7 = int_to_ptr.vmem [resolvable:$true] %s124_s7 }
  0x8d   :  { %s3180_s5 = scalar_lea.hbm %s4347_s6, 16 }
  0x8e   :  { %p3181_p8 = scmp.ne.s32.totalorder %s4347_s6, %s3180_s5  ;;  %p3184_p9 = scmp.lt.u32.totalorder %s3180_s5, %s4347_s6 }
  0x90   :  { %p3186_p10 = pnand %p3184_p9, %p3181_p8 }
  0x92   :  { %3189 = shalt.err (!%p3186_p10)
}
  0x93   :  { %s3190_s4 = scalar_lea.vmem %s103_s22, 16  ;;  %s3194_s29 = scalar_lea.vmem %s103_s22, 32 }
  0x94   :  { %p3191_p11 = scmp.ne.s32.totalorder %s103_s22, %s3190_s4  ;;  %p3195_p12 = scmp.lt.s32.totalorder %s103_s22, %s103_s22 }
  0x95   :  { %p3196_p13 = scmp.lt.s32.totalorder %s3194_s29, %s3190_s4 }
  0x97   :  { %p3197_p0 = por %p3196_p13, %p3195_p12 }
  0x99   :  { %p3198_p1 = pnand %p3197_p0, %p3191_p11 }
  0x9b   :  { %3201 = shalt.err (!%p3198_p1)
}
  0x9c   :  { %105 = dma.hbm_to_vmem [thread:$0]  %s4347_s6, 16, %s103_s22, [#allocation12]  }
  0x9d   :  { %s3202_s25 = scalar_lea.hbm %s4349_s8, 80 }
  0x9e   :  { %p3203_p2 = scmp.ne.s32.totalorder %s4349_s8, %s3202_s25  ;;  %p3206_p3 = scmp.lt.u32.totalorder %s3202_s25, %s4349_s8 }
  0xa0   :  { %p3208_p4 = pnand %p3206_p3, %p3203_p2 }
  0xa2   :  { %3211 = shalt.err (!%p3208_p4)
}
  0xa3   :  { %s3212_s2 = scalar_lea.vmem %s125_s7, 80  ;;  %s3216_s28 = scalar_lea.vmem %s125_s7, 96 }
  0xa4   :  { %p3213_p5 = scmp.ne.s32.totalorder %s125_s7, %s3212_s2  ;;  %p3217_p6 = scmp.lt.s32.totalorder %s125_s7, %s125_s7 }
  0xa5   :  { %p3218_p7 = scmp.lt.s32.totalorder %s3216_s28, %s3212_s2 }
  0xa7   :  { %p3219_p8 = por %p3218_p7, %p3217_p6 }
  0xa9   :  { %p3220_p9 = pnand %p3219_p8, %p3213_p5 }
  0xab   :  { %3223 = shalt.err (!%p3220_p9)
}
  0xac   :  { %127 = dma.hbm_to_vmem [thread:$0]  %s4349_s8, 80, %s125_s7, [#allocation15]  }
  0xad   :  { %s3322_s22 = smov [#allocation19]   ;;  %s3224_s5 = scalar_lea.hbm %s4351_s10, 32 }
  0xae   :  { %s146_s30 = sshll.u32 %s3322_s22, 4  ;;  %p3225_p10 = scmp.ne.s32.totalorder %s4351_s10, %s3224_s5  ;;  %s147_s30 = int_to_ptr.vmem [resolvable:$true] %s146_s30 }
  0xaf   :  { %p3228_p11 = scmp.lt.u32.totalorder %s3224_s5, %s4351_s10 }
  0xb1   :  { %p3230_p12 = pnand %p3228_p11, %p3225_p10 }
  0xb3   :  { %3233 = shalt.err (!%p3230_p12)
}
  0xb4   :  { %s3234_s4 = scalar_lea.vmem %s147_s30, 32  ;;  %p3239_p0 = scmp.lt.s32.totalorder %s147_s30, %s147_s30 }
  0xb5   :  { %p3235_p13 = scmp.ne.s32.totalorder %s147_s30, %s3234_s4  ;;  %p3240_p1 = scmp.lt.s32.totalorder %s3234_s4, %s3234_s4 }
  0xb7   :  { %p3241_p2 = por %p3240_p1, %p3239_p0 }
  0xb9   :  { %p3242_p3 = pnand %p3241_p2, %p3235_p13 }
  0xbb   :  { %3245 = shalt.err (!%p3242_p3)
}
  0xbc   :  { %149 = dma.hbm_to_vmem [thread:$0]  %s4351_s10, 32, %s147_s30, [#allocation18]  }
  0xbd   :  { %3290 = dma.done.wait [#allocation3], 512  }
  0xbe   :  { %3291 = vsyncadd [#allocation3], 4294966784 }
  0xbf   :  { %3292 = dma.done.wait [#allocation6], 4352  }
  0xc0   :  { %3293 = vsyncadd [#allocation6], 4294962944 }
  0xc1   :  { %3294 = dma.done.wait [#allocation9], 6144  }
  0xc2   :  { %3295 = vsyncadd [#allocation9], 4294961152 }
  0xc3   :  { %3296 = dma.done.wait [#allocation12], 32  }
  0xc4   :  { %3297 = vsyncadd [#allocation12], 4294967264 }
  0xc5   :  { %3298 = dma.done.wait [#allocation15], 15440  }
  0xc6   :  { %3299 = vsyncadd [#allocation15], 4294951856 }
  0xc7   :  { %3300 = dma.done.wait [#allocation18], 4128  }
  0xc8   :  { %3301 = vsyncadd [#allocation18], 4294963168  ;;  %v187_v0 = vld [vmem:[#allocation10] sm:$0xff]  ;;  %v188_v1 = vld [vmem:[#allocation10 + $0x8] sm:$0xff]  ;;  %v3323_v26 = vmov 1966171168   ;;  %v323_v28 = vlaneseq }
  0xc9   :  { %v189_v2 = vld [vmem:[#allocation10 + $0x10] sm:$0xff]  ;;  %v2621_v3 = vpack.c.bf16 %v188_v1, %v187_v0  ;;  %v190_v4 = vld [vmem:[#allocation10 + $0x18] sm:$0xff]  ;;  %v191_v6 = vld [vmem:[#allocation10 + $0x20] sm:$0xff]  ;;  %v321_v27 = vunpack.c.l.s4 %v3323_v26  ;;  %vm707_vm0 = vcmask 130112   ;;  %vm844_vm1 = vcmask 1041409   ;;  %s3327_s10 = smov [#allocation21]  }
  0xca   :  { %v2625_v5 = vpack.c.bf16 %v190_v4, %v189_v2  ;;  %v192_v7 = vld [vmem:[#allocation10 + $0x28] sm:$0xff]  ;;  %v183_v9 = vld [vmem:[#allocation2] sm:$0xff]  ;;  %v194_v11 = vld [vmem:[#allocation10 + $0x38] sm:$0xff]  ;;  %v3553_v30 = vshrl.u32 %v323_v28, 7  ;;  %vm846_vm2 = vcmask 1042434   ;;  %vm848_vm3 = vcmask 1043459  }
  0xcb   :  { %2622 = vmatprep.subr.bf16.mxu0 %v2621_v3  ;;  %v2629_v8 = vpack.c.bf16 %v192_v7, %v191_v6  ;;  %v193_v10 = vld [vmem:[#allocation10 + $0x30] sm:$0xff]  ;;  %2618 = vmatprep.mubr.f32.mxu0 %v183_v9  ;;  %v195_v13 = vld [vmem:[#allocation10 + $0x40] sm:$0xff]  ;;  %v196_v14 = vld [vmem:[#allocation10 + $0x48] sm:$0xff]  ;;  %v322_v29 = vunpack.c.0.s8 %v321_v27  ;;  %vm850_vm4 = vcmask 1044484   ;;  %vm852_vm5 = vcmask 1045509   ;;  %s2533_s29 = sshll.u32 %s3327_s10, 4  ;;  %s2534_s29 = int_to_ptr.vmem [resolvable:$true] %s2533_s29 }
  0xcc   :  { %2624 = vmatpush3.bf16.msra.mxu0 %v2621_v3  ;;  %v2633_v12 = vpack.c.bf16 %v194_v11, %v193_v10  ;;  %v2637_v15 = vpack.c.bf16 %v196_v14, %v195_v13  ;;  %v197_v16 = vld [vmem:[#allocation10 + $0x50] sm:$0xff]  ;;  %v198_v17 = vld [vmem:[#allocation10 + $0x58] sm:$0xff]  ;;  %v199_v19 = vld [vmem:[#allocation10 + $0x60] sm:$0xff]  ;;  %v3560_v37 = vsub.s32 0, %v3553_v30  ;;  %vm854_vm6 = vcmask 1046534   ;;  %s3246_s27 = scalar_lea.vmem %s2534_s29, 256  ;;  %p3251_p5 = scmp.lt.s32.totalorder %s2534_s29, %s2534_s29 }
  0xcd   :  { %2626 = vmatprep.subr.bf16.mxu0 %v2625_v5  ;;  %v2641_v18 = vpack.c.bf16 %v198_v17, %v197_v16  ;;  %v200_v20 = vld [vmem:[#allocation10 + $0x68] sm:$0xff]  ;;  %v201_v22 = vld [vmem:[#allocation10 + $0x70] sm:$0xff]  ;;  %v202_v23 = vld [vmem:[#allocation10 + $0x78] sm:$0xff]  ;;  %v3556_v32 = vsub.s32 %v322_v29, %v3553_v30  ;;  %vm856_vm7 = vcmask 1047559   ;;  %vm867_vm8 = vcmask 130048   ;;  %p3247_p4 = scmp.ne.s32.totalorder %s2534_s29, %s3246_s27  ;;  %p3252_p6 = scmp.lt.s32.totalorder %s3246_s27, %s3246_s27 }
  0xce   :  { %v2645_v21 = vpack.c.bf16 %v200_v20, %v199_v19  ;;  %v2649_v24 = vpack.c.bf16 %v202_v23, %v201_v22  ;;  %v185_v25 = vld [vmem:[#allocation2 + $0x10] sm:$0xff]  ;;  %v302_v46 = vld [vmem:[#allocation8 + $0x88] sm:$0xff]  ;;  %v304_v50 = vld [vmem:[#allocation8 + $0x98] sm:$0xff]  ;;  %vm2069_vm9 = vcmask 523264  }
  0xcf   :  { %v2554_v31 = vld [vmem:[#allocation11] ss:$0 sm:$0xff]  ;;  %v306_v58 = vld [vmem:[#allocation8 + $0xa8] sm:$0xff]  ;;  %v3584_v9 = vld [vmem:[#allocation13] ss:$0 sm:$0xff]  ;;  %p3253_p7 = por %p3252_p6, %p3251_p5 }
  0xd0   :  { %2628 = vmatpush3.bf16.msra.mxu0 %v2625_v5  ;;  %v301_v43 = vld [vmem:[#allocation8 + $0x80] sm:$0xff]  ;;  %v310_v62 = vld [vmem:[#allocation8 + $0xc8] sm:$0xff]  ;;  %v303_v5 = vld [vmem:[#allocation8 + $0x90] sm:$0xff] }
  0xd1   :  { %2630 = vmatprep.subr.bf16.mxu0 %v2629_v8  ;;  %v285_v61 = vld [vmem:[#allocation8] sm:$0xff]  ;;  %v286_v1 = vld [vmem:[#allocation8 + $0x8] sm:$0xff]  ;;  %v288_v19 = vld [vmem:[#allocation8 + $0x18] sm:$0xff]  ;;  %p3254_p8 = pnand %p3253_p7, %p3247_p4 }
  0xd2   :  { %v305_v14 = vld [vmem:[#allocation8 + $0xa0] sm:$0xff]  ;;  %v290_v29 = vld [vmem:[#allocation8 + $0x28] sm:$0xff] }
  0xd3   :  { %v309_v23 = vld [vmem:[#allocation8 + $0xc0] sm:$0xff] }
  0xd4   :  { %2632 = vmatpush3.bf16.msra.mxu0 %v2629_v8  ;;  %v287_v8 = vld [vmem:[#allocation8 + $0x10] sm:$0xff] }
  0xd5   :  { %2634 = vmatprep.subr.bf16.mxu0 %v2633_v12 }
  0xd8   :  { %2636 = vmatpush3.bf16.msra.mxu0 %v2633_v12 }
  0xd9   :  { %2638 = vmatprep.subr.bf16.mxu0 %v2637_v15 }
  0xdc   :  { %2640 = vmatpush3.bf16.msra.mxu0 %v2637_v15 }
  0xdd   :  { %2642 = vmatprep.subr.bf16.mxu0 %v2641_v18 }
  0xe0   :  { %2644 = vmatpush3.bf16.msra.mxu0 %v2641_v18 }
  0xe1   :  { %2646 = vmatprep.subr.bf16.mxu0 %v2645_v21 }
  0xe4   :  { %2648 = vmatpush3.bf16.msra.mxu0 %v2645_v21 }
  0xe5   :  { %2650 = vmatprep.subr.bf16.mxu0 %v2649_v24 }
  0xe8   :  { %2652 = vmatpush3.bf16.msra.mxu0 %v2649_v24 }
  0xeb   :  { %2619 = vmatmul.mubr.f32.vlgmr.msra.gmra.mrb[0].mxu0 %v185_v25 }
 0x1be   :  { %v2620_v33 = vpop.f32.mrb[0].mxu0 }
 0x1bf   :  { %v282_v34 = vadd.f32 %v2620_v33, %v2554_v31  ;;  %v276_v35 = vpop.f32.mrb[1].mxu0 }
 0x1c0   :  { %v277_v38 = vadd.f32 %v2554_v31, %v276_v35 }
 0x1c1   :  { %v375_v36 = vrot.slane %v282_v34, %v3556_v32  ;;  %v368_v39 = vcombine.high %v282_v34, %v282_v34 }
 0x1c2   :  { %v326_v45 = vrot.slane %v277_v38, %v3556_v32  ;;  %v319_v4 = vcombine.high %v277_v38, %v277_v38  ;;  %v289_v38 = vld [vmem:[#allocation8 + $0x20] sm:$0xff] }
 0x1c3   :  { %v383_v40 = vcombine.high %v375_v36, %v375_v36  ;;  %v391_v41 = vrot.slane %v375_v36, %v3556_v32  ;;  %v382_v47 = vrot.slane %v368_v39, %v3556_v32 }
 0x1c4   :  { %v342_v53 = vrot.slane %v326_v45, %v3556_v32  ;;  %v334_v57 = vcombine.high %v326_v45, %v326_v45  ;;  %v3587_v12 = vrot.slane %v319_v4, %v3556_v32 }
 0x1c5   :  { %v3564_v42 = vrot.slane %v383_v40, %v3556_v32  ;;  %v452_v44 = vrot.slane %v391_v41, %v3560_v37  ;;  %v413_v48 = vcombine.high %v391_v41, %v391_v41  ;;  %v3573_v54 = vrot.slane %v382_v47, %v3556_v32 }
 0x1c6   :  { %v420_v59 = vrot.slane %v342_v53, %v3560_v37  ;;  %v3580_v0 = vrot.slane %v334_v57, %v3556_v32  ;;  %v364_v15 = vcombine.high %v342_v53, %v342_v53  ;;  %v384_v18 = vcombine.high %v382_v47, %v382_v47 }
 0x1c7   :  { %v456_v49 = vrot.slane %v3564_v42, %v3560_v37  ;;  %v513_v51 = vadd.f32 %v452_v44, %v301_v43  ;;  %v514_v52 = vadd.f32 %v452_v44, %v302_v46  ;;  %v460_v55 = vrot.slane %v413_v48, %v3560_v37  ;;  %v294_v44 = vld [vmem:[#allocation8 + $0x48] sm:$0xff] }
 0x1c8   :  { %v468_v60 = vrot.slane %v3573_v54, %v3560_v37  ;;  %v497_v2 = vadd.f32 %v420_v59, %v285_v61  ;;  %v424_v6 = vrot.slane %v3580_v0, %v3560_v37  ;;  %v498_v7 = vadd.f32 %v420_v59, %v286_v1 }
 0x1c9   :  { %v516_v56 = vadd.f32 %v456_v49, %v304_v50  ;;  %2842 = vtanh.f32 %v513_v51  ;;  %v518_v63 = vadd.f32 %v460_v55, %v306_v58  ;;  %v515_v11 = vadd.f32 %v456_v49, %v303_v5  ;;  %v293_v49 = vld [vmem:[#allocation8 + $0x40] sm:$0xff]  ;;  %v315_v58 = vld [vmem:[#allocation8 + $0xf0] sm:$0xff] }
 0x1ca   :  { %2844 = vtanh.f32 %v514_v52  ;;  %v522_v3 = vadd.f32 %v468_v60, %v310_v62  ;;  %v499_v16 = vadd.f32 %v424_v6, %v287_v8  ;;  %v517_v22 = vadd.f32 %v460_v55, %v305_v14  ;;  %v308_v52 = vld [vmem:[#allocation8 + $0xb8] sm:$0xff] }
 0x1cb   :  { %2846 = vtanh.f32 %v516_v56  ;;  %v3593_v24 = vrot.slane %v3587_v12, %v3556_v32  ;;  %v428_v25 = vrot.slane %v364_v15, %v3560_v37  ;;  %v500_v26 = vadd.f32 %v424_v6, %v288_v19  ;;  %v314_v15 = vld [vmem:[#allocation8 + $0xe8] sm:$0xff]  ;;  %v313_v19 = vld [vmem:[#allocation8 + $0xe0] sm:$0xff] }
 0x1cc   :  { %2848 = vtanh.f32 %v518_v63  ;;  %v412_v27 = vrot.slane %v384_v18, %v3556_v32  ;;  %v521_v34 = vadd.f32 %v468_v60, %v309_v23  ;;  %v415_v36 = vcombine.high %v3564_v42, %v3564_v42  ;;  %v307_v60 = vld [vmem:[#allocation8 + $0xb0] sm:$0xff]  ;;  %v292_v23 = vld [vmem:[#allocation8 + $0x38] sm:$0xff] }
 0x1cd   :  { %2850 = vtanh.f32 %v497_v2  ;;  %v436_v39 = vrot.slane %v3593_v24, %v3560_v37  ;;  %v502_v40 = vadd.f32 %v428_v25, %v290_v29  ;;  %v501_v48 = vadd.f32 %v428_v25, %v289_v38  ;;  %v312_v2 = vld [vmem:[#allocation8 + $0xd8] sm:$0xff] }
 0x1ce   :  { %2852 = vtanh.f32 %v522_v3  ;;  %v416_v43 = vcombine.high %v412_v27, %v412_v27  ;;  %v464_v42 = vrot.slane %v415_v36, %v3560_v37  ;;  %v414_v61 = vcombine.high %v3573_v54, %v3573_v54  ;;  %v311_v54 = vld [vmem:[#allocation8 + $0xd0] sm:$0xff]  ;;  %v296_v36 = vld [vmem:[#allocation8 + $0x58] sm:$0xff] }
 0x1cf   :  { %2854 = vtanh.f32 %v498_v7  ;;  %v506_v50 = vadd.f32 %v436_v39, %v294_v44  ;;  %v505_v59 = vadd.f32 %v436_v39, %v293_v49  ;;  %v472_v62 = vrot.slane %v412_v27, %v3560_v37 }
 0x1d0   :  { %2856 = vtanh.f32 %v515_v11  ;;  %v3606_v53 = vrot.slane %v416_v43, %v3560_v37  ;;  %v520_v63 = vadd.f32 %v464_v42, %v308_v52  ;;  %v519_v7 = vadd.f32 %v464_v42, %v307_v60  ;;  %v298_v42 = vld [vmem:[#allocation8 + $0x68] sm:$0xff] }
 0x1d1   :  { %2858 = vtanh.f32 %v499_v16  ;;  %v335_v8 = vcombine.high %v3587_v12, %v3587_v12  ;;  %v524_v11 = vadd.f32 %v472_v62, %v312_v2  ;;  %v523_v12 = vadd.f32 %v472_v62, %v311_v54  ;;  %v299_v2 = vld [vmem:[#allocation8 + $0x70] sm:$0xff] }
 0x1d2   :  { %2860 = vtanh.f32 %v517_v22  ;;  %v527_v5 = vadd.f32 %v3606_v53, %v315_v58 }
 0x1d3   :  { %v2843_v10 = vpop.eup %2842  ;;  %2862 = vtanh.f32 %v500_v26 }
 0x1d4   :  { %v2845_v13 = vpop.eup %2844  ;;  %v584_v17 = vmul.f32 %v2843_v10, %v3584_v9  ;;  %2864 = vtanh.f32 %v521_v34  ;;  %v476_v10 = vrot.slane %v414_v61, %v3560_v37  ;;  %v300_v61 = vld [vmem:[#allocation8 + $0x78] sm:$0xff] }
 0x1d5   :  { %v585_v20 = vmul.f32 %v2845_v13, %v3584_v9  ;;  %v2847_v21 = vpop.eup %2846  ;;  %2866 = vtanh.f32 %v502_v40  ;;  %v366_v13 = vcombine.high %v3580_v0, %v3580_v0 }
 0x1d6   :  { %632 = vadd.xlane.f32.xlu0 %v584_v17  ;;  %v587_v31 = vmul.f32 %v2847_v21, %v3584_v9  ;;  %v2849_v33 = vpop.eup %2848  ;;  %2868 = vtanh.f32 %v501_v48  ;;  %v363_v21 = vrot.slane %v335_v8, %v3556_v32  ;;  %v525_v29 = vadd.f32 %v476_v10, %v313_v19 }
 0x1d7   :  { %634 = vadd.xlane.f32.xlu1 %v585_v20  ;;  %v2851_v35 = vpop.eup %2850  ;;  %v589_v46 = vmul.f32 %v2849_v33, %v3584_v9  ;;  %2870 = vtanh.f32 %v506_v50  ;;  %v526_v20 = vadd.f32 %v476_v10, %v314_v15  ;;  %v432_v22 = vrot.slane %v366_v13, %v3560_v37 }
 0x1d8   :  { %v2853_v41 = vpop.eup %2852  ;;  %v568_v45 = vmul.f32 %v2851_v35, %v3584_v9  ;;  %2872 = vtanh.f32 %v505_v59  ;;  %v365_v33 = vcombine.high %v3593_v24, %v3593_v24  ;;  %v440_v32 = vrot.slane %v363_v21, %v3560_v37 }
 0x1d9   :  { %v2855_v47 = vpop.eup %2854  ;;  %v593_v56 = vmul.f32 %v2853_v41, %v3584_v9  ;;  %2874 = vtanh.f32 %v520_v63  ;;  %v504_v34 = vadd.f32 %v432_v22, %v292_v23  ;;  %v367_v43 = vcombine.high %v363_v21, %v363_v21 }
 0x1da   :  { %600 = vadd.xlane.f32.xlu0 %v568_v45  ;;  %v2857_v51 = vpop.eup %2856  ;;  %v569_v55 = vmul.f32 %v2855_v47, %v3584_v9  ;;  %2876 = vtanh.f32 %v527_v5  ;;  %v295_v45 = vld [vmem:[#allocation8 + $0x50] sm:$0xff]  ;;  %v444_v24 = vrot.slane %v365_v33, %v3560_v37 }
 0x1db   :  { %638 = vadd.xlane.f32.xlu1 %v587_v31  ;;  %v2859_v57 = vpop.eup %2858  ;;  %v586_v3 = vmul.f32 %v2857_v51, %v3584_v9  ;;  %2878 = vtanh.f32 %v519_v7  ;;  %v291_v31 = vld [vmem:[#allocation8 + $0x30] sm:$0xff]  ;;  %v507_v52 = vadd.f32 %v440_v32, %v295_v45 }
 0x1dc   :  { %v2861_v1 = vpop.eup %2860  ;;  %v570_v4 = vmul.f32 %v2859_v57, %v3584_v9  ;;  %2880 = vtanh.f32 %v524_v11  ;;  %v503_v44 = vadd.f32 %v432_v22, %v291_v31  ;;  %v510_v57 = vadd.f32 %v444_v24, %v298_v42 }
 0x1dd   :  { %v2863_v6 = vpop.eup %2862  ;;  %v588_v16 = vmul.f32 %v2861_v1, %v3584_v9  ;;  %2882 = vtanh.f32 %v523_v12 }
 0x1de   :  { %602 = vadd.xlane.f32.xlu0 %v569_v55  ;;  %v2865_v14 = vpop.eup %2864  ;;  %v571_v17 = vmul.f32 %v2863_v6, %v3584_v9  ;;  %2884 = vtanh.f32 %v526_v20  ;;  %v297_v55 = vld [vmem:[#allocation8 + $0x60] sm:$0xff]  ;;  %v316_v6 = vld [vmem:[#allocation8 + $0xf8] sm:$0xff] }
 0x1df   :  { %642 = vadd.xlane.f32.xlu1 %v589_v46  ;;  %v2867_v18 = vpop.eup %2866  ;;  %v592_v25 = vmul.f32 %v2865_v14, %v3584_v9  ;;  %2886 = vtanh.f32 %v525_v29  ;;  %v508_v46 = vadd.f32 %v440_v32, %v296_v36  ;;  %v509_v63 = vadd.f32 %v444_v24, %v297_v55 }
 0x1e0   :  { %v2869_v0 = vpop.eup %2868  ;;  %v573_v26 = vmul.f32 %v2867_v18, %v3584_v9  ;;  %2888 = vtanh.f32 %v504_v34  ;;  %v528_v54 = vadd.f32 %v3606_v53, %v316_v6 }
 0x1e1   :  { %v2871_v27 = vpop.eup %2870  ;;  %v572_v38 = vmul.f32 %v2869_v0, %v3584_v9  ;;  %2890 = vtanh.f32 %v503_v44 }
 0x1e2   :  { %636 = vadd.xlane.f32.xlu0 %v586_v3  ;;  %v2873_v35 = vpop.eup %2872  ;;  %v577_v39 = vmul.f32 %v2871_v27, %v3584_v9  ;;  %2892 = vtanh.f32 %v508_v46 }
 0x1e3   :  { %650 = vadd.xlane.f32.xlu1 %v593_v56  ;;  %v2875_v40 = vpop.eup %2874  ;;  %v576_v49 = vmul.f32 %v2873_v35, %v3584_v9  ;;  %v448_v56 = vrot.slane %v367_v43, %v3560_v37  ;;  %2894 = vtanh.f32 %v507_v52 }
 0x1e4   :  { %v2877_v41 = vpop.eup %2876  ;;  %v591_v50 = vmul.f32 %v2875_v40, %v3584_v9  ;;  %2896 = vtanh.f32 %v510_v57 }
 0x1e5   :  { %v3634_v47 = vmul.f32 %v2877_v41, %v3584_v9  ;;  %v2879_v48 = vpop.eup %2878  ;;  %v512_v1 = vadd.f32 %v448_v56, %v300_v61  ;;  %2898 = vtanh.f32 %v509_v63  ;;  %v511_v8 = vadd.f32 %v448_v56, %v299_v2 }
 0x1e6   :  { %640 = vadd.xlane.f32.xlu0 %v588_v16  ;;  %v2881_v51 = vpop.eup %2880  ;;  %v590_v59 = vmul.f32 %v2879_v48, %v3584_v9  ;;  %v697_v48 = vand.u32 127, %v323_v28 }
 0x1e7   :  { %604 = vadd.xlane.f32.xlu1 %v570_v4  ;;  %v2883_v58 = vpop.eup %2882  ;;  %v595_v60 = vmul.f32 %v2881_v51, %v3584_v9  ;;  %2900 = vtanh.f32 %v512_v1 }
 0x1e8   :  { %v2885_v62 = vpop.eup %2884  ;;  %v594_v4 = vmul.f32 %v2883_v58, %v3584_v9  ;;  %2902 = vtanh.f32 %v511_v8  ;;  %v3703_v55 = vsub.s32 %v697_v48, %v3553_v30 }
 0x1e9   :  { %v2887_v3 = vpop.eup %2886  ;;  %v597_v5 = vmul.f32 %v2885_v62, %v3584_v9  ;;  %2904 = vtanh.f32 %v528_v54 }
 0x1ea   :  { %648 = vadd.xlane.f32.xlu0 %v592_v25  ;;  %v2889_v7 = vpop.eup %2888  ;;  %v596_v11 = vmul.f32 %v2887_v3, %v3584_v9 }
 0x1eb   :  { %606 = vadd.xlane.f32.xlu1 %v571_v17  ;;  %v2891_v10 = vpop.eup %2890  ;;  %v575_v13 = vmul.f32 %v2889_v7, %v3584_v9 }
 0x1ec   :  { %v2893_v14 = vpop.eup %2892  ;;  %v574_v16 = vmul.f32 %v2891_v10, %v3584_v9 }
 0x1ed   :  { %v2895_v15 = vpop.eup %2894  ;;  %v579_v17 = vmul.f32 %v2893_v14, %v3584_v9 }
 0x1ee   :  { %608 = vadd.xlane.f32.xlu0 %v572_v38  ;;  %v2897_v18 = vpop.eup %2896  ;;  %v578_v53 = vmul.f32 %v2895_v15, %v3584_v9 }
 0x1ef   :  { %610 = vadd.xlane.f32.xlu1 %v573_v26  ;;  %v2899_v12 = vpop.eup %2898  ;;  %v581_v19 = vmul.f32 %v2897_v18, %v3584_v9 }
 0x1f0   :  { %v580_v22 = vmul.f32 %v2899_v12, %v3584_v9 }
 0x1f1   :  { %v2901_v20 = vpop.eup %2900 }
 0x1f2   :  { %616 = vadd.xlane.f32.xlu0 %v576_v49  ;;  %v2903_v21 = vpop.eup %2902  ;;  %v583_v0 = vmul.f32 %v2901_v20, %v3584_v9 }
 0x1f3   :  { %618 = vadd.xlane.f32.xlu1 %v577_v39  ;;  %v2905_v23 = vpop.eup %2904  ;;  %v582_v25 = vmul.f32 %v2903_v21, %v3584_v9 }
 0x1f4   :  { %v599_v26 = vmul.f32 %v2905_v23, %v3584_v9 }
 0x1f6   :  { %644 = vadd.xlane.f32.xlu0 %v590_v59 }
 0x1f7   :  { %646 = vadd.xlane.f32.xlu1 %v591_v50  ;;  %v702_v50 = vadd.s32 4294967288, %v697_v48 }
 0x1f9   :  { %v3706_v56 = vsub.s32 %v702_v50, %v3553_v30 }
 0x1fa   :  { %652 = vadd.xlane.f32.xlu0 %v594_v4 }
 0x1fb   :  { %654 = vadd.xlane.f32.xlu1 %v595_v60 }
 0x1fe   :  { %656 = vadd.xlane.f32.xlu0 %v596_v11 }
 0x1ff   :  { %658 = vadd.xlane.f32.xlu1 %v597_v5 }
 0x202   :  { %612 = vadd.xlane.f32.xlu0 %v574_v16 }
 0x203   :  { %614 = vadd.xlane.f32.xlu1 %v575_v13 }
 0x206   :  { %620 = vadd.xlane.f32.xlu0 %v578_v53 }
 0x207   :  { %622 = vadd.xlane.f32.xlu1 %v579_v17 }
 0x20a   :  { %624 = vadd.xlane.f32.xlu0 %v580_v22 }
 0x20b   :  { %626 = vadd.xlane.f32.xlu1 %v581_v19 }
 0x20e   :  { %628 = vadd.xlane.f32.xlu0 %v582_v25 }
 0x20f   :  { %630 = vadd.xlane.f32.xlu1 %v583_v0 }
 0x212   :  { %660 = vadd.xlane.f32.xlu0 %v3634_v47 }
 0x213   :  { %662 = vadd.xlane.f32.xlu1 %v599_v26 }
 0x263   :  { %v3657_v29 = vpop.xlane.xlu0 %632 }
 0x264   :  { %v3655_v27 = vpop.xlane.xlu1 %634  ;;  %v775_v59 = vrot.slane %v3657_v29, %v3703_v55 }
 0x265   :  { %v779_v28 = vrot.slane %v3655_v27, %v3706_v56 }
 0x267   :  { %v3661_v33 = vpop.xlane.xlu0 %600  ;;  %v780_v54 = vsel %vm707_vm0, %v779_v28, %v775_v59 }
 0x268   :  { %v3659_v31 = vpop.xlane.xlu1 %638  ;;  %v701_v2 = vrot.slane %v3661_v33, %v3703_v55 }
 0x269   :  { %v788_v6 = vrot.slane %v3659_v31, %v3706_v56 }
 0x26b   :  { %v3665_v34 = vpop.xlane.xlu0 %602 }
 0x26c   :  { %v3663_v32 = vpop.xlane.xlu1 %642  ;;  %v706_v60 = vrot.slane %v3665_v34, %v3706_v56 }
 0x26d   :  { %v797_v10 = vrot.slane %v3663_v32, %v3706_v56 }
 0x26e   :  { %v708_v11 = vsel %vm707_vm0, %v706_v60, %v701_v2 }
 0x26f   :  { %v3669_v36 = vpop.xlane.xlu0 %636 }
 0x270   :  { %v3667_v35 = vpop.xlane.xlu1 %650  ;;  %v784_v62 = vrot.slane %v3669_v36, %v3703_v55 }
 0x272   :  { %v789_v14 = vsel %vm707_vm0, %v788_v6, %v784_v62 }
 0x273   :  { %v3673_v38 = vpop.xlane.xlu0 %640  ;;  %v858_v26 = vsel %vm844_vm1, %v789_v14, %v780_v54 }
 0x274   :  { %v3671_v9 = vpop.xlane.xlu1 %604  ;;  %v793_v15 = vrot.slane %v3673_v38, %v3703_v55 }
 0x275   :  { %v712_v3 = vrot.slane %v3671_v9, %v3703_v55 }
 0x276   :  { %v798_v28 = vsel %vm707_vm0, %v797_v10, %v793_v15  ;;  %v815_v15 = vrot.slane %v3667_v35, %v3706_v56 }
 0x277   :  { %v3677_v40 = vpop.xlane.xlu0 %648 }
 0x278   :  { %v3675_v39 = vpop.xlane.xlu1 %606  ;;  %v811_v59 = vrot.slane %v3677_v40, %v3703_v55 }
 0x279   :  { %v716_v61 = vrot.slane %v3675_v39, %v3706_v56 }
 0x27b   :  { %v3681_v43 = vpop.xlane.xlu0 %608  ;;  %v717_v13 = vsel %vm707_vm0, %v716_v61, %v712_v3 }
 0x27c   :  { %v3679_v41 = vpop.xlane.xlu1 %610  ;;  %v721_v63 = vrot.slane %v3681_v43, %v3703_v55  ;;  %v845_v20 = vsel %vm844_vm1, %v717_v13, %v708_v11  ;;  %v859_v11 = vsel %vm846_vm2, %v798_v28, %v858_v26 }
 0x27d   :  { %v725_v1 = vrot.slane %v3679_v41, %v3706_v56 }
 0x27f   :  { %v3685_v45 = vpop.xlane.xlu0 %616  ;;  %v726_v16 = vsel %vm707_vm0, %v725_v1, %v721_v63 }
 0x280   :  { %v3683_v44 = vpop.xlane.xlu1 %618  ;;  %v739_v22 = vrot.slane %v3685_v45, %v3703_v55  ;;  %v847_v48 = vsel %vm846_vm2, %v726_v16, %v845_v20  ;;  %v816_v20 = vsel %vm707_vm0, %v815_v15, %v811_v59 }
 0x281   :  { %v743_v21 = vrot.slane %v3683_v44, %v3706_v56 }
 0x283   :  { %v3689_v46 = vpop.xlane.xlu0 %644  ;;  %v744_v3 = vsel %vm707_vm0, %v743_v21, %v739_v22 }
 0x284   :  { %v3687_v24 = vpop.xlane.xlu1 %646  ;;  %v802_v18 = vrot.slane %v3689_v46, %v3703_v55 }
 0x285   :  { %v806_v17 = vrot.slane %v3687_v24, %v3706_v56 }
 0x287   :  { %v3694_v42 = vpop.xlane.xlu0 %652  ;;  %v807_v62 = vsel %vm707_vm0, %v806_v17, %v802_v18 }
 0x288   :  { %v3691_v47 = vpop.xlane.xlu1 %654  ;;  %v820_v63 = vrot.slane %v3694_v42, %v3703_v55  ;;  %v860_v16 = vsel %vm848_vm3, %v807_v62, %v859_v11  ;;  %v3834_v11 = vsub.s32 2, %v3553_v30 }
 0x289   :  { %v824_v60 = vrot.slane %v3691_v47, %v3706_v56 }
 0x28b   :  { %v3698_v51 = vpop.xlane.xlu0 %656  ;;  %v825_v18 = vsel %vm707_vm0, %v824_v60, %v820_v63  ;;  %v3324_v63 = vmov 0  }
 0x28c   :  { %v3696_v49 = vpop.xlane.xlu1 %658  ;;  %2841 = vset.pattern.permute.xlu0 %v3324_v63  ;;  %2840 = vset.pattern.permute.xlu1 %v3324_v63 }
 0x28f   :  { %v3708_v57 = vpop.xlane.xlu0 %612 }
 0x290   :  { %v3700_v52 = vpop.xlane.xlu1 %614  ;;  %v730_v5 = vrot.slane %v3708_v57, %v3703_v55 }
 0x291   :  { %v734_v4 = vrot.slane %v3700_v52, %v3706_v56 }
 0x293   :  { %v3736_v7 = vpop.xlane.xlu0 %620  ;;  %v735_v12 = vsel %vm707_vm0, %v734_v4, %v730_v5  ;;  %v833_v4 = vrot.slane %v3696_v49, %v3706_v56  ;;  %v829_v5 = vrot.slane %v3698_v51, %v3703_v55 }
 0x294   :  { %v3710_v58 = vpop.xlane.xlu1 %622  ;;  %v748_v19 = vrot.slane %v3736_v7, %v3703_v55  ;;  %v849_v61 = vsel %vm848_vm3, %v735_v12, %v847_v48 }
 0x295   :  { %v752_v53 = vrot.slane %v3710_v58, %v3706_v56  ;;  %v851_v14 = vsel %vm850_vm4, %v744_v3, %v849_v61  ;;  %v3827_v3 = vsub.s32 1, %v3553_v30 }
 0x297   :  { %v3765_v23 = vpop.xlane.xlu0 %624  ;;  %v753_v1 = vsel %vm707_vm0, %v752_v53, %v748_v19 }
 0x298   :  { %v3738_v8 = vpop.xlane.xlu1 %626  ;;  %v757_v50 = vrot.slane %v3765_v23, %v3703_v55  ;;  %v853_v17 = vsel %vm852_vm5, %v753_v1, %v851_v14 }
 0x299   :  { %v761_v0 = vrot.slane %v3738_v8, %v3706_v56 }
 0x29b   :  { %v3790_v6 = vpop.xlane.xlu0 %628  ;;  %v762_v10 = vsel %vm707_vm0, %v761_v0, %v757_v50  ;;  %v834_v0 = vsel %vm707_vm0, %v833_v4, %v829_v5  ;;  %v861_v50 = vsel %vm850_vm4, %v816_v20, %v860_v16 }
 0x29c   :  { %v3767_v25 = vpop.xlane.xlu1 %630  ;;  %v766_v13 = vrot.slane %v3790_v6, %v3703_v55  ;;  %v855_v19 = vsel %vm854_vm6, %v762_v10, %v853_v17  ;;  %v862_v28 = vsel %vm852_vm5, %v825_v18, %v861_v50  ;;  %v3841_v18 = vsub.s32 3, %v3553_v30 }
 0x29d   :  { %v770_v2 = vrot.slane %v3767_v25, %v3706_v56  ;;  %v863_v59 = vsel %vm854_vm6, %v834_v0, %v862_v28 }
 0x29f   :  { %v771_v53 = vsel %vm707_vm0, %v770_v2, %v766_v13  ;;  %v3809_v21 = vpop.xlane.xlu0 %660 }
 0x2a0   :  { %v3792_v54 = vpop.xlane.xlu1 %662  ;;  %v857_v22 = vsel %vm856_vm7, %v771_v53, %v855_v19  ;;  %v838_v26 = vrot.slane %v3809_v21, %v3703_v55 }
 0x2a1   :  { %v842_v12 = vrot.slane %v3792_v54, %v3706_v56  ;;  %v868_v48 = vsel %vm867_vm8, %v857_v22, -inf }
 0x2a2   :  { %869 = vmax.xlane.f32.xlu0 %v868_v48 }
 0x2a3   :  { %v843_v60 = vsel %vm707_vm0, %v842_v12, %v838_v26  ;;  %v3855_v26 = vsub.s32 5, %v3553_v30 }
 0x2a4   :  { %v864_v61 = vsel %vm856_vm7, %v843_v60, %v863_v59 }
 0x2a5   :  { %v871_v62 = vsel %vm867_vm8, %v864_v61, -inf }
 0x2a6   :  { %872 = vmax.xlane.f32.xlu1 %v871_v62 }
 0x333   :  { %v3822_v1 = vpop.xlane.xlu1 %872 }
 0x334   :  { %v911_v2 = vrot.slane %v3822_v1, %v3560_v37  ;;  %v915_v4 = vrot.slane %v3822_v1, %v3827_v3  ;;  %v919_v13 = vrot.slane %v3822_v1, %v3834_v11 }
 0x336   :  { %v972_v5 = vsub.f32 %v3657_v29, %v911_v2  ;;  %v973_v10 = vsub.f32 %v3655_v27, %v911_v2  ;;  %v974_v14 = vsub.f32 %v3669_v36, %v915_v4  ;;  %v975_v16 = vsub.f32 %v3659_v31, %v915_v4 }
 0x337   :  { %v923_v29 = vrot.slane %v3822_v1, %v3841_v18  ;;  %v976_v27 = vsub.f32 %v3673_v38, %v919_v13  ;;  %v977_v53 = vsub.f32 %v3663_v32, %v919_v13  ;;  %v3848_v36 = vsub.s32 4, %v3553_v30 }
 0x338   :  { %v1020_v15 = vmul.f32 1.442695, %v972_v5  ;;  %v1022_v17 = vmul.f32 1.442695, %v973_v10  ;;  %v1024_v12 = vmul.f32 1.442695, %v974_v14  ;;  %v931_v32 = vrot.slane %v3822_v1, %v3855_v26 }
 0x339   :  { %v1026_v19 = vmul.f32 1.442695, %v975_v16  ;;  %v927_v31 = vrot.slane %v3822_v1, %v3848_v36  ;;  %v978_v20 = vsub.f32 %v3689_v46, %v923_v29  ;;  %v1028_v22 = vmul.f32 1.442695, %v976_v27 }
 0x33a   :  { %2906 = vpow2.f32 %v1020_v15  ;;  %v979_v0 = vsub.f32 %v3687_v24, %v923_v29  ;;  %v1030_v38 = vmul.f32 1.442695, %v977_v53  ;;  %v3864_v24 = vsub.s32 6, %v3553_v30 }
 0x33b   :  { %2908 = vpow2.f32 %v1022_v17  ;;  %v980_v48 = vsub.f32 %v3677_v40, %v927_v31  ;;  %v1032_v50 = vmul.f32 1.442695, %v978_v20  ;;  %v981_v28 = vsub.f32 %v3667_v35, %v927_v31  ;;  %v3873_v35 = vpop.xlane.xlu0 %869 }
 0x33c   :  { %2910 = vpow2.f32 %v1024_v12  ;;  %v1034_v46 = vmul.f32 1.442695, %v979_v0  ;;  %v935_v61 = vrot.slane %v3822_v1, %v3864_v24  ;;  %v982_v40 = vsub.f32 %v3694_v42, %v931_v32 }
 0x33d   :  { %2912 = vpow2.f32 %v1026_v19  ;;  %v1036_v62 = vmul.f32 1.442695, %v980_v48  ;;  %v983_v63 = vsub.f32 %v3691_v47, %v931_v32  ;;  %v1038_v2 = vmul.f32 1.442695, %v981_v28 }
 0x33e   :  { %2914 = vpow2.f32 %v1028_v22  ;;  %v879_v10 = vrot.slane %v3873_v35, %v3560_v37  ;;  %v984_v42 = vsub.f32 %v3698_v51, %v935_v61  ;;  %v1040_v13 = vmul.f32 1.442695, %v982_v40 }
 0x33f   :  { %2916 = vpow2.f32 %v1030_v38  ;;  %v985_v14 = vsub.f32 %v3696_v49, %v935_v61  ;;  %v1042_v47 = vmul.f32 1.442695, %v983_v63  ;;  %v883_v17 = vrot.slane %v3873_v35, %v3827_v3 }
 0x340   :  { %2918 = vpow2.f32 %v1032_v50  ;;  %v957_v29 = vsub.f32 %v3665_v34, %v879_v10  ;;  %v1044_v51 = vmul.f32 1.442695, %v984_v42  ;;  %v3897_v49 = vrot.slane %v3873_v35, %v3848_v36 }
 0x341   :  { %2920 = vpow2.f32 %v1034_v46  ;;  %v956_v27 = vsub.f32 %v3661_v33, %v879_v10  ;;  %v1046_v12 = vmul.f32 1.442695, %v985_v14  ;;  %v958_v34 = vsub.f32 %v3671_v9, %v883_v17 }
 0x342   :  { %2922 = vpow2.f32 %v1036_v62  ;;  %v990_v31 = vmul.f32 1.442695, %v957_v29  ;;  %v3909_v20 = vrot.slane %v3873_v35, %v3855_v26  ;;  %v965_v33 = vsub.f32 %v3683_v44, %v3897_v49 }
 0x343   :  { %2924 = vpow2.f32 %v1038_v2  ;;  %v988_v22 = vmul.f32 1.442695, %v956_v27  ;;  %v3918_v32 = vsub.s32 7, %v3553_v30  ;;  %v887_v9 = vrot.slane %v3873_v35, %v3834_v11 }
 0x344   :  { %v3861_v60 = vpop.eup %2906  ;;  %2926 = vpow2.f32 %v1040_v13  ;;  %v959_v48 = vsub.f32 %v3675_v39, %v883_v17  ;;  %v992_v50 = vmul.f32 1.442695, %v958_v34  ;;  %v3927_v44 = vrot.slane %v3873_v35, %v3864_v24 }
 0x345   :  { %v3866_v59 = vpop.eup %2908  ;;  %1133 = vperm.xlu1 %2840, %v3861_v60   ;;  %2928 = vpow2.f32 %v1042_v47  ;;  %4370 = vst [vmem:[#allocation31_spill] sm:$0xff] %v3918_v32  ;;  %v967_v28 = vsub.f32 %v3710_v58, %v3909_v20  ;;  %v1006_v30 = vmul.f32 1.442695, %v965_v33  ;;  %v960_v39 = vsub.f32 %v3681_v43, %v887_v9 }
 0x346   :  { %1136 = vperm.xlu0 %2841, %v3866_v59   ;;  %v3876_v4 = vpop.eup %2910  ;;  %2930 = vpow2.f32 %v1044_v51  ;;  %v994_v40 = vmul.f32 1.442695, %v959_v48  ;;  %v3940_v62 = vrot.slane %v3873_v35, %v3918_v32  ;;  %v969_v58 = vsub.f32 %v3738_v8, %v3927_v44 }
 0x347   :  { %v3878_v5 = vpop.eup %2912  ;;  %2932 = vpow2.f32 %v1046_v12  ;;  %v1010_v63 = vmul.f32 1.442695, %v967_v28  ;;  %v891_v43 = vrot.slane %v3873_v35, %v3841_v18  ;;  %v961_v42 = vsub.f32 %v3679_v41, %v887_v9 }
 0x348   :  { %v3886_v15 = vpop.eup %2914  ;;  %2934 = vpow2.f32 %v990_v31  ;;  %v996_v13 = vmul.f32 1.442695, %v960_v39  ;;  %v971_v8 = vsub.f32 %v3767_v25, %v3940_v62  ;;  %v1014_v14 = vmul.f32 1.442695, %v969_v58 }
 0x349   :  { %1139 = vperm.xlu1 %2840, %v3876_v4   ;;  %v3888_v16 = vpop.eup %2916  ;;  %2936 = vpow2.f32 %v988_v22  ;;  %v939_v47 = vrot.slane %v3822_v1, %v3918_v32  ;;  %v962_v41 = vsub.f32 %v3708_v57, %v891_v43  ;;  %v998_v35 = vmul.f32 1.442695, %v961_v42 }
 0x34a   :  { %1142 = vperm.xlu0 %2841, %v3878_v5   ;;  %v3900_v53 = vpop.eup %2918  ;;  %2938 = vpow2.f32 %v992_v50  ;;  %v1018_v51 = vmul.f32 1.442695, %v971_v8  ;;  %v963_v1 = vsub.f32 %v3700_v52, %v891_v43  ;;  %v966_v48 = vsub.f32 %v3736_v7, %v3909_v20 }
 0x34b   :  { %v3902_v19 = vpop.eup %2920  ;;  %2940 = vpow2.f32 %v1006_v30  ;;  %v987_v25 = vsub.f32 %v3792_v54, %v939_v47  ;;  %v1000_v34 = vmul.f32 1.442695, %v962_v41  ;;  %v964_v54 = vsub.f32 %v3685_v45, %v3897_v49 }
 0x34c   :  { %v3913_v0 = vpop.eup %2922  ;;  %2942 = vpow2.f32 %v994_v40  ;;  %v1002_v22 = vmul.f32 1.442695, %v963_v1  ;;  %v968_v49 = vsub.f32 %v3765_v23, %v3927_v44  ;;  %v1008_v30 = vmul.f32 1.442695, %v966_v48 }
 0x34d   :  { %1145 = vperm.xlu1 %2840, %v3886_v15   ;;  %v3915_v38 = vpop.eup %2924  ;;  %2944 = vpow2.f32 %v1010_v63  ;;  %v1050_v57 = vmul.f32 1.442695, %v987_v25  ;;  %v1004_v50 = vmul.f32 1.442695, %v964_v54  ;;  %v970_v20 = vsub.f32 %v3790_v6, %v3940_v62 }
 0x34e   :  { %1148 = vperm.xlu0 %2841, %v3888_v16   ;;  %v3931_v46 = vpop.eup %2926  ;;  %2946 = vpow2.f32 %v996_v13  ;;  %v1012_v40 = vmul.f32 1.442695, %v968_v49  ;;  %v986_v44 = vsub.f32 %v3809_v21, %v939_v47 }
 0x34f   :  { %v3933_v61 = vpop.eup %2928  ;;  %2948 = vpow2.f32 %v1014_v14  ;;  %v1016_v23 = vmul.f32 1.442695, %v970_v20 }
 0x350   :  { %v3944_v2 = vpop.eup %2930  ;;  %2950 = vpow2.f32 %v998_v35  ;;  %v1048_v43 = vmul.f32 1.442695, %v986_v44 }
 0x351   :  { %1151 = vperm.xlu1 %2840, %v3900_v53   ;;  %v3946_v10 = vpop.eup %2932  ;;  %2952 = vpow2.f32 %v1018_v51 }
 0x352   :  { %1154 = vperm.xlu0 %2841, %v3902_v19   ;;  %4371 = vst [vmem:[#allocation32_spill] sm:$0xff] %v3946_v10  ;;  %v3957_v17 = vpop.eup %2934  ;;  %2954 = vpow2.f32 %v1000_v34 }
 0x353   :  { %v3959_v29 = vpop.eup %2936  ;;  %2956 = vpow2.f32 %v1050_v57 }
 0x354   :  { %v3965_v27 = vpop.eup %2938  ;;  %2958 = vpow2.f32 %v1002_v22 }
 0x355   :  { %1157 = vperm.xlu1 %2840, %v3913_v0   ;;  %v3967_v12 = vpop.eup %2940  ;;  %2960 = vpow2.f32 %v1004_v50 }
 0x356   :  { %1160 = vperm.xlu0 %2841, %v3915_v38   ;;  %4372 = vst [vmem:[#allocation33_spill] sm:$0xff] %v3967_v12  ;;  %v3972_v31 = vpop.eup %2942  ;;  %2962 = vpow2.f32 %v1008_v30 }
 0x357   :  { %4373 = vst [vmem:[#allocation34_spill] sm:$0xff] %v3972_v31  ;;  %v3974_v33 = vpop.eup %2944  ;;  %2964 = vpow2.f32 %v1012_v40 }
 0x358   :  { %4374 = vst [vmem:[#allocation35_spill] sm:$0xff] %v3974_v33  ;;  %v3980_v52 = vpop.eup %2946  ;;  %2966 = vpow2.f32 %v1016_v23 }
 0x359   :  { %1163 = vperm.xlu1 %2840, %v3931_v46   ;;  %v3982_v9 = vpop.eup %2948  ;;  %2968 = vpow2.f32 %v1048_v43 }
 0x35a   :  { %1166 = vperm.xlu0 %2841, %v3933_v61   ;;  %4375 = vst [vmem:[#allocation36_spill] sm:$0xff] %v3982_v9  ;;  %v3988_v28 = vpop.eup %2950 }
 0x35b   :  { %4376 = vst [vmem:[#allocation37_spill] sm:$0xff] %v3988_v28  ;;  %v3990_v45 = vpop.eup %2952 }
 0x35c   :  { %4377 = vst [vmem:[#allocation38_spill] sm:$0xff] %v3990_v45  ;;  %v3996_v39 = vpop.eup %2954 }
 0x35d   :  { %1169 = vperm.xlu1 %2840, %v3944_v2   ;;  %v3998_v7 = vpop.eup %2956 }
 0x35e   :  { %1172 = vperm.xlu0 %2841, %v3946_v10   ;;  %4378 = vst [vmem:[#allocation39_spill] sm:$0xff] %v3998_v7  ;;  %v4004_v58 = vpop.eup %2958 }
 0x35f   :  { %4379 = vst [vmem:[#allocation40_spill] sm:$0xff] %v4004_v58  ;;  %v4008_v63 = vpop.eup %2960 }
 0x360   :  { %4380 = vst [vmem:[#allocation41_spill] sm:$0xff] %v4008_v63  ;;  %v4011_v42 = vpop.eup %2962 }
 0x361   :  { %1088 = vperm.xlu1 %2840, %v3957_v17   ;;  %4381 = vst [vmem:[#allocation42_spill] sm:$0xff] %v4011_v42  ;;  %v4014_v6 = vpop.eup %2964 }
 0x362   :  { %1085 = vperm.xlu0 %2841, %v3959_v29   ;;  %4382 = vst [vmem:[#allocation43_spill] sm:$0xff] %v4014_v6  ;;  %v4017_v62 = vpop.eup %2966 }
 0x363   :  { %4383 = vst [vmem:[#allocation44_spill] sm:$0xff] %v4017_v62  ;;  %v4020_v21 = vpop.eup %2968 }
 0x364   :  { %4384 = vst [vmem:[#allocation45_spill] sm:$0xff] %v4020_v21 }
 0x365   :  { %1091 = vperm.xlu1 %2840, %v3965_v27  }
 0x366   :  { %1112 = vperm.xlu0 %2841, %v3967_v12  }
 0x369   :  { %1094 = vperm.xlu1 %2840, %v3972_v31  }
 0x36a   :  { %1118 = vperm.xlu0 %2841, %v3974_v33  }
 0x36d   :  { %1097 = vperm.xlu1 %2840, %v3980_v52  }
 0x36e   :  { %1124 = vperm.xlu0 %2841, %v3982_v9  }
 0x371   :  { %1100 = vperm.xlu1 %2840, %v3988_v28  }
 0x372   :  { %1130 = vperm.xlu0 %2841, %v3990_v45  }
 0x375   :  { %1103 = vperm.xlu1 %2840, %v3996_v39  }
 0x376   :  { %1178 = vperm.xlu0 %2841, %v3998_v7  }
 0x379   :  { %1106 = vperm.xlu1 %2840, %v4004_v58  }
 0x37d   :  { %1109 = vperm.xlu1 %2840, %v4008_v63  }
 0x381   :  { %1115 = vperm.xlu1 %2840, %v4011_v42  }
 0x385   :  { %1121 = vperm.xlu1 %2840, %v4014_v6  }
 0x389   :  { %1127 = vperm.xlu1 %2840, %v4017_v62  }
 0x38d   :  { %1175 = vperm.xlu1 %2840, %v4020_v21  }
 0x3c4   :  { %v1134_v13 = vpop.permute.xlu1 %1133 }
 0x3c5   :  { %v1137_v8 = vpop.permute.xlu0 %1136  ;;  %v1255_v10 = vrot.slane %v1134_v13, %v3703_v55 }
 0x3c6   :  { %v1259_v45 = vrot.slane %v1137_v8, %v3706_v56 }
 0x3c8   :  { %v1140_v14 = vpop.permute.xlu1 %1139  ;;  %v1260_v28 = vsel %vm707_vm0, %v1259_v45, %v1255_v10 }
 0x3c9   :  { %v1143_v47 = vpop.permute.xlu0 %1142  ;;  %v1264_v62 = vrot.slane %v1140_v14, %v3703_v55 }
 0x3ca   :  { %v1268_v32 = vrot.slane %v1143_v47, %v3706_v56 }
 0x3cc   :  { %v1146_v41 = vpop.permute.xlu1 %1145 }
 0x3cd   :  { %v1149_v35 = vpop.permute.xlu0 %1148  ;;  %v1273_v12 = vrot.slane %v1146_v41, %v3703_v55  ;;  %v1269_v41 = vsel %vm707_vm0, %v1268_v32, %v1264_v62 }
 0x3ce   :  { %v1277_v9 = vrot.slane %v1149_v35, %v3706_v56 }
 0x3d0   :  { %v4023_v51 = vpop.permute.xlu1 %1151  ;;  %v1278_v35 = vsel %vm707_vm0, %v1277_v9, %v1273_v12 }
 0x3d1   :  { %v4025_v25 = vpop.permute.xlu0 %1154  ;;  %v1282_v10 = vrot.slane %v4023_v51, %v3703_v55 }
 0x3d4   :  { %v4027_v1 = vpop.permute.xlu1 %1157 }
 0x3d5   :  { %v4031_v57 = vpop.permute.xlu0 %1160  ;;  %v1291_v32 = vrot.slane %v4027_v1, %v3703_v55 }
 0x3d8   :  { %v4029_v34 = vpop.permute.xlu1 %1163 }
 0x3d9   :  { %v4035_v22 = vpop.permute.xlu0 %1166 }
 0x3dc   :  { %v4033_v54 = vpop.permute.xlu1 %1169 }
 0x3dd   :  { %v4037_v49 = vpop.permute.xlu0 %1172 }
 0x3e0   :  { %v1089_v48 = vpop.permute.xlu1 %1088 }
 0x3e1   :  { %v1086_v20 = vpop.permute.xlu0 %1085  ;;  %v1187_v13 = vrot.slane %v1089_v48, %v3706_v56 }
 0x3e2   :  { %v1183_v8 = vrot.slane %v1086_v20, %v3703_v55 }
 0x3e4   :  { %v1092_v50 = vpop.permute.xlu1 %1091  ;;  %v1188_v51 = vsel %vm707_vm0, %v1187_v13, %v1183_v8 }
 0x3e5   :  { %v1113_v44 = vpop.permute.xlu0 %1112  ;;  %v1192_v14 = vrot.slane %v1092_v50, %v3703_v55 }
 0x3e6   :  { %v1223_v12 = vrot.slane %v1113_v44, %v3706_v56 }
 0x3e8   :  { %v1095_v30 = vpop.permute.xlu1 %1094 }
 0x3e9   :  { %v1119_v7 = vpop.permute.xlu0 %1118  ;;  %v1196_v6 = vrot.slane %v1095_v30, %v3706_v56 }
 0x3eb   :  { %v1197_v45 = vsel %vm707_vm0, %v1196_v6, %v1192_v14  ;;  %v1232_v6 = vrot.slane %v1119_v7, %v3706_v56 }
 0x3ec   :  { %v1098_v40 = vpop.permute.xlu1 %1097 }
 0x3ed   :  { %v1125_v58 = vpop.permute.xlu0 %1124  ;;  %v1201_v63 = vrot.slane %v1098_v40, %v3703_v55  ;;  %v1324_v40 = vsel %vm844_vm1, %v1197_v45, %v1188_v51 }
 0x3ee   :  { %v1241_v1 = vrot.slane %v1125_v58, %v3706_v56 }
 0x3f0   :  { %v1101_v23 = vpop.permute.xlu1 %1100 }
 0x3f1   :  { %v1205_v42 = vrot.slane %v1101_v23, %v3706_v56 }
 0x3f3   :  { %v1206_v9 = vsel %vm707_vm0, %v1205_v42, %v1201_v63  ;;  %v1300_v63 = vrot.slane %v4029_v34, %v3703_v55  ;;  %v1304_v42 = vrot.slane %v4035_v22, %v3706_v56 }
 0x3f4   :  { %v1104_v43 = vpop.permute.xlu1 %1103  ;;  %v1325_v7 = vsel %vm846_vm2, %v1206_v9, %v1324_v40  ;;  %v1923_v40 = vld [vmem:[#allocation14 + $0x8] sm:$0xff] }
 0x3f5   :  { %v1210_v48 = vrot.slane %v1104_v43, %v3703_v55  ;;  %v1309_v43 = vrot.slane %v4033_v54, %v3703_v55 }
 0x3f8   :  { %v1107_v21 = vpop.permute.xlu1 %1106 }
 0x3f9   :  { %v1214_v47 = vrot.slane %v1107_v21, %v3706_v56  ;;  %v1286_v21 = vrot.slane %v4025_v25, %v3706_v56  ;;  %v1295_v25 = vrot.slane %v4031_v57, %v3706_v56  ;;  %v1313_v57 = vrot.slane %v4037_v49, %v3706_v56 }
 0x3fb   :  { %v1215_v50 = vsel %vm707_vm0, %v1214_v47, %v1210_v48  ;;  %v1287_v34 = vsel %vm707_vm0, %v1286_v21, %v1282_v10  ;;  %v1296_v54 = vsel %vm707_vm0, %v1295_v25, %v1291_v32  ;;  %v1314_v9 = vsel %vm707_vm0, %v1313_v57, %v1309_v43  ;;  %v1932_v43 = vld [vmem:[#allocation14 + $0x50] sm:$0xff]  ;;  %v1937_v57 = vld [vmem:[#allocation14 + $0x78] sm:$0xff] }
 0x3fc   :  { %v1110_v33 = vpop.permute.xlu1 %1109  ;;  %v1326_v58 = vsel %vm848_vm3, %v1215_v50, %v1325_v7 }
 0x3fd   :  { %v1219_v30 = vrot.slane %v1110_v33, %v3703_v55  ;;  %v1131_v33 = vpop.permute.xlu0 %1130 }
 0x3fe   :  { %v1250_v14 = vrot.slane %v1131_v33, %v3706_v56 }
 0x3ff   :  { %v1224_v23 = vsel %vm707_vm0, %v1223_v12, %v1219_v30  ;;  %v1331_v30 = vsel %vm844_vm1, %v1269_v41, %v1260_v28 }
 0x400   :  { %v1116_v31 = vpop.permute.xlu1 %1115  ;;  %v1327_v22 = vsel %vm850_vm4, %v1224_v23, %v1326_v58  ;;  %v1332_v48 = vsel %vm846_vm2, %v1278_v35, %v1331_v30  ;;  %v1922_v23 = vld [vmem:[#allocation14] sm:$0xff]  ;;  %v1943_v58 = vld [vmem:[#allocation14 + $0xa8] sm:$0xff] }
 0x401   :  { %v1228_v20 = vrot.slane %v1116_v31, %v3703_v55  ;;  %v1179_v45 = vpop.permute.xlu0 %1178  ;;  %v1333_v21 = vsel %vm848_vm3, %v1287_v34, %v1332_v48  ;;  %v1958_v30 = vld [vmem:[#allocation14 + $0x120] sm:$0xff]  ;;  %v1924_v48 = vld [vmem:[#allocation14 + $0x10] sm:$0xff] }
 0x402   :  { %v1334_v41 = vsel %vm850_vm4, %v1296_v54, %v1333_v21  ;;  %v1322_v32 = vrot.slane %v1179_v45, %v3706_v56  ;;  %v1925_v54 = vld [vmem:[#allocation14 + $0x18] sm:$0xff]  ;;  %v1930_v45 = vld [vmem:[#allocation14 + $0x40] sm:$0xff] }
 0x403   :  { %v1233_v44 = vsel %vm707_vm0, %v1232_v6, %v1228_v20  ;;  %v1305_v20 = vsel %vm707_vm0, %v1304_v42, %v1300_v63  ;;  %v1927_v63 = vld [vmem:[#allocation14 + $0x28] sm:$0xff]  ;;  %v1938_v42 = vld [vmem:[#allocation14 + $0x80] sm:$0xff] }
 0x404   :  { %v1122_v62 = vpop.permute.xlu1 %1121  ;;  %v1328_v49 = vsel %vm852_vm5, %v1233_v44, %v1327_v22  ;;  %v1335_v51 = vsel %vm852_vm5, %v1305_v20, %v1334_v41  ;;  %v2655_v7 = vpack.c.bf16 %v1927_v63, %v1922_v23  ;;  %v1947_v22 = vld [vmem:[#allocation14 + $0xc8] sm:$0xff]  ;;  %v1929_v20 = vld [vmem:[#allocation14 + $0x38] sm:$0xff] }
 0x405   :  { %v1237_v31 = vrot.slane %v1122_v62, %v3703_v55  ;;  %v1336_v50 = vsel %vm854_vm6, %v1314_v9, %v1335_v51  ;;  %v2703_v21 = vpack.c.bf16 %v1929_v20, %v1924_v48  ;;  %v1935_v9 = vld [vmem:[#allocation14 + $0x68] sm:$0xff]  ;;  %v1934_v51 = vld [vmem:[#allocation14 + $0x60] sm:$0xff]  ;;  %v1973_v23 = vld [vmem:[#allocation14 + $0x198] sm:$0xff] }
 0x406   :  { %v1963_v41 = vld [vmem:[#allocation14 + $0x148] sm:$0xff] }
 0x407   :  { %v1242_v13 = vsel %vm707_vm0, %v1241_v1, %v1237_v31  ;;  %v1928_v1 = vld [vmem:[#allocation14 + $0x30] sm:$0xff] }
 0x408   :  { %v1128_v8 = vpop.permute.xlu1 %1127  ;;  %v1329_v10 = vsel %vm854_vm6, %v1242_v13, %v1328_v49  ;;  %v2653_v56 = vpack.c.bf16 %v1928_v1, %v1923_v40  ;;  %v1948_v13 = vld [vmem:[#allocation14 + $0xd0] sm:$0xff]  ;;  %v2701_v49 = vpack.c.bf16 %v1930_v45, %v1925_v54  ;;  %v1962_v40 = vld [vmem:[#allocation14 + $0x140] sm:$0xff]  ;;  %v1967_v1 = vld [vmem:[#allocation14 + $0x168] sm:$0xff] }
 0x409   :  { %v1246_v47 = vrot.slane %v1128_v8, %v3703_v55  ;;  %v2659_v8 = vpack.c.bf16 %v1937_v57, %v1932_v43  ;;  %v2661_v34 = vpack.c.bf16 %v1948_v13, %v1943_v58  ;;  %v2671_v63 = vpack.c.bf16 %v1967_v1, %v1962_v40  ;;  %v1982_v40 = vld [vmem:[#allocation14 + $0x1e0] sm:$0xff] }
 0x40a   :  { %2654 = vmatprep.subr.bf16.mxu1 %v2653_v56  ;;  %2702 = vmatprep.subr.bf16.mxu0 %v2701_v49  ;;  %v1978_v56 = vld [vmem:[#allocation14 + $0x1c0] sm:$0xff] }
 0x40b   :  { %v1251_v12 = vsel %vm707_vm0, %v1250_v14, %v1246_v47  ;;  %2656 = vmatpush1.bf16.msra.mxu1 %v2655_v7  ;;  %v1942_v14 = vld [vmem:[#allocation14 + $0xa0] sm:$0xff]  ;;  %v1953_v47 = vld [vmem:[#allocation14 + $0xf8] sm:$0xff]  ;;  %2704 = vmatpush1.bf16.msra.mxu0 %v2703_v21 }
 0x40c   :  { %v1176_v33 = vpop.permute.xlu1 %1175  ;;  %v1330_v28 = vsel %vm856_vm7, %v1251_v12, %v1329_v10  ;;  %v2663_v12 = vpack.c.bf16 %v1947_v22, %v1942_v14  ;;  %v1952_v10 = vld [vmem:[#allocation14 + $0xf0] sm:$0xff]  ;;  %v1977_v7 = vld [vmem:[#allocation14 + $0x1b8] sm:$0xff] }
 0x40d   :  { %v1318_v62 = vrot.slane %v1176_v33, %v3703_v55  ;;  %v1340_v35 = vsel %vm867_vm8, %v1330_v28, 0.0  ;;  %v1933_v55 = vld [vmem:[#allocation14 + $0x58] sm:$0xff]  ;;  %v2665_v33 = vpack.c.bf16 %v1958_v30, %v1953_v47 }
 0x40e   :  { %1341 = vadd.xlane.f32.xlu1 %v1340_v35  ;;  %v2657_v44 = vpack.c.bf16 %v1938_v42, %v1933_v55  ;;  %v1957_v28 = vld [vmem:[#allocation14 + $0x118] sm:$0xff]  ;;  %v2673_v55 = vpack.c.bf16 %v1978_v56, %v1973_v23  ;;  %v1972_v42 = vld [vmem:[#allocation14 + $0x190] sm:$0xff]  ;;  %v1987_v56 = vld [vmem:[#allocation14 + $0x208] sm:$0xff] }
 0x40f   :  { %v1323_v6 = vsel %vm707_vm0, %v1322_v32, %v1318_v62  ;;  %v1940_v32 = vld [vmem:[#allocation14 + $0x90] sm:$0xff] }
 0x410   :  { %v1337_v31 = vsel %vm856_vm7, %v1323_v6, %v1336_v50  ;;  %2658 = vmatprep.subr.bf16.mxu1 %v2657_v44  ;;  %v1968_v62 = vld [vmem:[#allocation14 + $0x170] sm:$0xff]  ;;  %v2705_v35 = vpack.c.bf16 %v1940_v32, %v1935_v9  ;;  %v1939_v6 = vld [vmem:[#allocation14 + $0x88] sm:$0xff]  ;;  %v2675_v44 = vpack.c.bf16 %v1977_v7, %v1972_v42  ;;  %v2679_v42 = vpack.c.bf16 %v1987_v56, %v1982_v40 }
 0x411   :  { %v1343_v25 = vsel %vm867_vm8, %v1337_v31, 0.0  ;;  %2660 = vmatpush1.bf16.msra.mxu1 %v2659_v8  ;;  %v2707_v50 = vpack.c.bf16 %v1939_v6, %v1934_v51  ;;  %v2667_v31 = vpack.c.bf16 %v1957_v28, %v1952_v10  ;;  %v1988_v6 = vld [vmem:[#allocation14 + $0x210] sm:$0xff] }
 0x412   :  { %1344 = vadd.xlane.f32.xlu0 %v1343_v25  ;;  %2662 = vmatprep.subr.bf16.mxu1 %v2661_v34  ;;  %v2669_v25 = vpack.c.bf16 %v1968_v62, %v1963_v41 }
 0x413   :  { %2706 = vmatprep.subr.bf16.mxu0 %v2705_v35 }
 0x414   :  { %2708 = vmatpush1.bf16.msra.mxu0 %v2707_v50 }
 0x415   :  { %2664 = vmatpush1.bf16.msra.mxu1 %v2663_v12 }
 0x416   :  { %2666 = vmatprep.subr.bf16.mxu1 %v2665_v33 }
 0x419   :  { %2668 = vmatpush1.bf16.msra.mxu1 %v2667_v31  ;;  %v1945_v31 = vld [vmem:[#allocation14 + $0xb8] sm:$0xff] }
 0x41a   :  { %2670 = vmatprep.subr.bf16.mxu1 %v2669_v25  ;;  %v1950_v25 = vld [vmem:[#allocation14 + $0xe0] sm:$0xff] }
 0x41b   :  { %v2709_v23 = vpack.c.bf16 %v1950_v25, %v1945_v31  ;;  %v1980_v31 = vld [vmem:[#allocation14 + $0x1d0] sm:$0xff] }
 0x41c   :  { %v2012_v25 = vld [vmem:[#allocation14 + $0x2d0] sm:$0xff] }
 0x41d   :  { %2672 = vmatpush1.bf16.msra.mxu1 %v2671_v63  ;;  %v1944_v63 = vld [vmem:[#allocation14 + $0xb0] sm:$0xff]  ;;  %2710 = vmatprep.subr.bf16.mxu0 %v2709_v23  ;;  %v1979_v23 = vld [vmem:[#allocation14 + $0x1c8] sm:$0xff] }
 0x41e   :  { %2674 = vmatprep.subr.bf16.mxu1 %v2673_v55  ;;  %v1949_v55 = vld [vmem:[#allocation14 + $0xd8] sm:$0xff] }
 0x41f   :  { %v2711_v7 = vpack.c.bf16 %v1949_v55, %v1944_v63  ;;  %v2023_v55 = vld [vmem:[#allocation14 + $0x328] sm:$0xff] }
 0x421   :  { %2676 = vmatpush1.bf16.msra.mxu1 %v2675_v44  ;;  %v1993_v44 = vld [vmem:[#allocation14 + $0x238] sm:$0xff]  ;;  %2712 = vmatpush1.bf16.msra.mxu0 %v2711_v7  ;;  %v1990_v7 = vld [vmem:[#allocation14 + $0x220] sm:$0xff] }
 0x49b   :  { %v1342_v57 = vpop.xlane.xlu1 %1341 }
 0x49f   :  { %v1345_v43 = vpop.xlane.xlu0 %1344 }
 0x4a0   :  { %2970 = vrcp.f32 %v1345_v43 }
 0x4a1   :  { %2972 = vrcp.f32 %v1342_v57 }
 0x4aa   :  { %v2971_v58 = vpop.eup %2970 }
 0x4ab   :  { %v1349_v13 = vmul.f32 %v2971_v58, %v1345_v43  ;;  %v2973_v8 = vpop.eup %2972 }
 0x4ac   :  { %v1348_v22 = vmul.f32 %v2973_v8, %v1342_v57 }
 0x4ad   :  { %v1351_v34 = vsub.f32 2.0, %v1349_v13 }
 0x4ae   :  { %v1350_v54 = vsub.f32 2.0, %v1348_v22  ;;  %v1997_v22 = vld [vmem:[#allocation14 + $0x258] sm:$0xff] }
 0x4af   :  { %v1353_v14 = vmul.f32 %v2971_v58, %v1351_v34  ;;  %v1992_v34 = vld [vmem:[#allocation14 + $0x230] sm:$0xff] }
 0x4b0   :  { %v1352_v20 = vmul.f32 %v2973_v8, %v1350_v54  ;;  %v1960_v8 = vld [vmem:[#allocation14 + $0x130] sm:$0xff]  ;;  %v2683_v54 = vpack.c.bf16 %v1997_v22, %v1992_v34  ;;  %v2033_v22 = vld [vmem:[#allocation14 + $0x378] sm:$0xff] }
 0x4b1   :  { %v1355_v47 = vmul.f32 %v1353_v14, %v1345_v43  ;;  %v1998_v43 = vld [vmem:[#allocation14 + $0x260] sm:$0xff] }
 0x4b2   :  { %v1354_v21 = vmul.f32 %v1352_v20, %v1342_v57  ;;  %v2681_v13 = vpack.c.bf16 %v1998_v43, %v1993_v44 }
 0x4b3   :  { %v1357_v30 = vsub.f32 2.0, %v1355_v47  ;;  %v1954_v47 = vld [vmem:[#allocation14 + $0x100] sm:$0xff] }
 0x4b4   :  { %v1356_v32 = vsub.f32 2.0, %v1354_v21  ;;  %v1965_v21 = vld [vmem:[#allocation14 + $0x158] sm:$0xff] }
 0x4b5   :  { %v4111_v45 = vmul.f32 %v1357_v30, %v1353_v14  ;;  %v1959_v30 = vld [vmem:[#allocation14 + $0x128] sm:$0xff] }
 0x4b7   :  { %v1401_v49 = vrot.slane %v4111_v45, %v3827_v3  ;;  %v1397_v48 = vrot.slane %v4111_v45, %v3560_v37  ;;  %v1413_v28 = vrot.slane %v4111_v45, %v3848_v36  ;;  %v1405_v41 = vrot.slane %v4111_v45, %v3834_v11 }
 0x4b8   :  { %v4129_v62 = vrot.slane %v4111_v45, %v3855_v26  ;;  %v4138_v51 = vrot.slane %v4111_v45, %v3864_v24 }
 0x4b9   :  { %v1460_v12 = vmul.f32 %v3876_v4, %v1401_v49  ;;  %v1458_v10 = vmul.f32 %v3861_v60, %v1397_v48  ;;  %v1459_v9 = vmul.f32 %v3866_v59, %v1397_v48  ;;  %v1461_v33 = vmul.f32 %v3878_v5, %v1401_v49  ;;  %v2008_v48 = vld [vmem:[#allocation14 + $0x2b0] sm:$0xff] }
 0x4ba   :  { %v1466_v4 = vmul.f32 %v3913_v0, %v1413_v28  ;;  %v1462_v60 = vmul.f32 %v3886_v15, %v1405_v41  ;;  %v4131_v59 = vmul.f32 %v1356_v32, %v1352_v20  ;;  %v1468_v5 = vmul.f32 %v3931_v46, %v4129_v62  ;;  %v1983_v0 = vld [vmem:[#allocation14 + $0x1e8] sm:$0xff] }
 0x4bb   :  { %1537 = vperm.xlu1 %2840, %v1460_v12   ;;  %1532 = vperm.xlu0 %2841, %v1458_v10   ;;  %v1463_v35 = vmul.f32 %v3888_v16, %v1405_v41  ;;  %v1409_v15 = vrot.slane %v4111_v45, %v3841_v18  ;;  %v2677_v50 = vpack.c.bf16 %v1988_v6, %v1983_v0  ;;  %v2007_v32 = vld [vmem:[#allocation14 + $0x2a8] sm:$0xff] }
 0x4bc   :  { %v1470_v46 = vmul.f32 %v3944_v2, %v4138_v51  ;;  %v4147_v1 = vrot.slane %v4131_v59, %v3827_v3  ;;  %v1955_v2 = vld [vmem:[#allocation14 + $0x108] sm:$0xff]  ;;  %v4154_v58 = vrot.slane %v4131_v59, %v3560_v37  ;;  %v2715_v49 = vpack.c.bf16 %v1959_v30, %v1954_v47  ;;  %v4385_v47 = vld [vmem:[#allocation41_spill] sm:$0xff] }
 0x4bd   :  { %v1464_v16 = vmul.f32 %v3900_v53, %v1409_v15  ;;  %2678 = vmatprep.subr.bf16.mxu1 %v2677_v50  ;;  %v1465_v57 = vmul.f32 %v3902_v19, %v1409_v15  ;;  %v2713_v14 = vpack.c.bf16 %v1960_v8, %v1955_v2  ;;  %v2003_v19 = vld [vmem:[#allocation14 + $0x288] sm:$0xff]  ;;  %v1467_v12 = vmul.f32 %v3915_v38, %v1413_v28  ;;  %v2013_v38 = vld [vmem:[#allocation14 + $0x2d8] sm:$0xff] }
 0x4be   :  { %2680 = vmatpush1.bf16.msra.mxu1 %v2679_v42  ;;  %v1444_v53 = vmul.f32 %v3965_v27, %v4147_v1  ;;  %v4158_v27 = vrot.slane %v4131_v59, %v3834_v11  ;;  %v1443_v20 = vmul.f32 %v3957_v17, %v4154_v58  ;;  %v2685_v10 = vpack.c.bf16 %v2008_v48, %v2003_v19  ;;  %v2018_v17 = vld [vmem:[#allocation14 + $0x300] sm:$0xff]  ;;  %v1975_v50 = vld [vmem:[#allocation14 + $0x1a8] sm:$0xff]  ;;  %v1985_v42 = vld [vmem:[#allocation14 + $0x1f8] sm:$0xff] }
 0x4bf   :  { %1756 = vperm.xlu1 %2840, %v1459_v9   ;;  %1761 = vperm.xlu0 %2841, %v1461_v33   ;;  %v1970_v9 = vld [vmem:[#allocation14 + $0x180] sm:$0xff]  ;;  %v4165_v15 = vrot.slane %v4131_v59, %v3841_v18  ;;  %v1469_v0 = vmul.f32 %v3933_v61, %v4129_v62  ;;  %v2689_v6 = vpack.c.bf16 %v2018_v17, %v2013_v38  ;;  %v2028_v62 = vld [vmem:[#allocation14 + $0x350] sm:$0xff]  ;;  %v1989_v8 = vld [vmem:[#allocation14 + $0x218] sm:$0xff] }
 0x4c0   :  { %2682 = vmatprep.subr.bf16.mxu1 %v2681_v13  ;;  %2714 = vmatprep.subr.bf16.mxu0 %v2713_v14  ;;  %v2002_v33 = vld [vmem:[#allocation14 + $0x280] sm:$0xff]  ;;  %v2717_v41 = vpack.c.bf16 %v1970_v9, %v1965_v21  ;;  %v1446_v28 = vmul.f32 %v3980_v52, %v4158_v27  ;;  %v2721_v40 = vpack.c.bf16 %v1980_v31, %v1975_v50  ;;  %v1984_v13 = vld [vmem:[#allocation14 + $0x1f0] sm:$0xff]  ;;  %v1999_v9 = vld [vmem:[#allocation14 + $0x268] sm:$0xff] }
 0x4c1   :  { %2716 = vmatpush1.bf16.msra.mxu0 %v2715_v49  ;;  %v1448_v52 = vmul.f32 %v3996_v39, %v4165_v15  ;;  %v4175_v61 = vrot.slane %v4131_v59, %v3848_v36  ;;  %v1442_v44 = vmul.f32 %v3959_v29, %v4154_v58  ;;  %v2693_v43 = vpack.c.bf16 %v2028_v62, %v2023_v55  ;;  %v2038_v29 = vld [vmem:[#allocation14 + $0x3a0] sm:$0xff]  ;;  %v1995_v58 = vld [vmem:[#allocation14 + $0x248] sm:$0xff]  ;;  %v2000_v48 = vld [vmem:[#allocation14 + $0x270] sm:$0xff] }
 0x4c2   :  { %2684 = vmatpush1.bf16.msra.mxu1 %v2683_v54  ;;  %2718 = vmatprep.subr.bf16.mxu0 %v2717_v41  ;;  %v2725_v2 = vpack.c.bf16 %v1990_v7, %v1985_v42  ;;  %v2727_v34 = vpack.c.bf16 %v1989_v8, %v1984_v13  ;;  %v4181_v14 = vrot.slane %v4131_v59, %v3855_v26  ;;  %v4386_v54 = vld [vmem:[#allocation34_spill] sm:$0xff]  ;;  %v2004_v17 = vld [vmem:[#allocation14 + $0x290] sm:$0xff]  ;;  %v1931_v50 = vld [vmem:[#allocation14 + $0x48] sm:$0xff] }
 0x4c3   :  { %1552 = vperm.xlu1 %2840, %v1466_v4   ;;  %1542 = vperm.xlu0 %2841, %v1462_v60   ;;  %v1964_v4 = vld [vmem:[#allocation14 + $0x150] sm:$0xff]  ;;  %v1969_v60 = vld [vmem:[#allocation14 + $0x178] sm:$0xff]  ;;  %v1450_v30 = vmul.f32 %v4385_v47, %v4175_v61  ;;  %v1445_v49 = vmul.f32 %v4386_v54, %v4147_v1  ;;  %v2697_v19 = vpack.c.bf16 %v2038_v29, %v2033_v22  ;;  %v1994_v21 = vld [vmem:[#allocation14 + $0x240] sm:$0xff] }
 0x4c4   :  { %2686 = vmatprep.subr.bf16.mxu1 %v2685_v10  ;;  %v2729_v10 = vpack.c.bf16 %v2000_v48, %v1995_v58  ;;  %v1389_v41 = vrot.slane %v4131_v59, %v3864_v24  ;;  %v2010_v1 = vld [vmem:[#allocation14 + $0x2c0] sm:$0xff]  ;;  %v2019_v62 = vld [vmem:[#allocation14 + $0x308] sm:$0xff]  ;;  %v1936_v42 = vld [vmem:[#allocation14 + $0x70] sm:$0xff] }
 0x4c5   :  { %v4392_v13 = vld [vmem:[#allocation33_spill] sm:$0xff]  ;;  %v4393_v8 = vld [vmem:[#allocation31_spill] sm:$0xff]  ;;  %v2024_v29 = vld [vmem:[#allocation14 + $0x330] sm:$0xff] }
 0x4c6   :  { %v2029_v58 = vld [vmem:[#allocation14 + $0x358] sm:$0xff]  ;;  %v1946_v47 = vld [vmem:[#allocation14 + $0xc0] sm:$0xff]  ;;  %v1951_v54 = vld [vmem:[#allocation14 + $0xe8] sm:$0xff] }
 0x4c7   :  { %1557 = vperm.xlu1 %2840, %v1468_v5   ;;  %1766 = vperm.xlu0 %2841, %v1463_v35   ;;  %v2687_v5 = vpack.c.bf16 %v2007_v32, %v2002_v33  ;;  %v2719_v35 = vpack.c.bf16 %v1969_v60, %v1964_v4  ;;  %v2731_v33 = vpack.c.bf16 %v1999_v9, %v1994_v21  ;;  %v2005_v32 = vld [vmem:[#allocation14 + $0x298] sm:$0xff]  ;;  %v4387_v4 = vld [vmem:[#allocation42_spill] sm:$0xff]  ;;  %v2039_v21 = vld [vmem:[#allocation14 + $0x3a8] sm:$0xff] }
 0x4c8   :  { %v1452_v60 = vmul.f32 %v4387_v4, %v4181_v14  ;;  %v2733_v38 = vpack.c.bf16 %v2010_v1, %v2005_v32  ;;  %v1956_v9 = vld [vmem:[#allocation14 + $0x110] sm:$0xff]  ;;  %v2344_v4 = vld [vmem:[#allocation17 + $0x18] sm:$0xff] }
 0x4c9   :  { %2688 = vmatpush1.bf16.msra.mxu1 %v2687_v5  ;;  %2720 = vmatpush1.bf16.msra.mxu0 %v2719_v35  ;;  %v4388_v5 = vld [vmem:[#allocation37_spill] sm:$0xff]  ;;  %v2342_v1 = vld [vmem:[#allocation17 + $0x8] sm:$0xff] }
 0x4ca   :  { %2690 = vmatprep.subr.bf16.mxu1 %v2689_v6  ;;  %2722 = vmatprep.subr.bf16.mxu0 %v2721_v40  ;;  %v1447_v35 = vmul.f32 %v4388_v5, %v4158_v27  ;;  %v4193_v6 = vld [vmem:[#allocation2 + $0x8] sm:$0xff]  ;;  %v4389_v40 = vld [vmem:[#allocation43_spill] sm:$0xff] }
 0x4cb   :  { %1562 = vperm.xlu1 %2840, %v1470_v46   ;;  %1547 = vperm.xlu0 %2841, %v1464_v16   ;;  %v2017_v46 = vld [vmem:[#allocation14 + $0x2f8] sm:$0xff]  ;;  %v1974_v16 = vld [vmem:[#allocation14 + $0x1a0] sm:$0xff]  ;;  %v2020_v27 = vld [vmem:[#allocation14 + $0x310] sm:$0xff] }
 0x4cc   :  { %v2691_v56 = vpack.c.bf16 %v2017_v46, %v2012_v25  ;;  %v2723_v63 = vpack.c.bf16 %v1979_v23, %v1974_v16  ;;  %2556 = vmatprep.mubr.msk.f32.mxu1 %vm2069_vm9, %v4193_v6  ;;  %v2015_v25 = vld [vmem:[#allocation14 + $0x2e8] sm:$0xff]  ;;  %v1454_v46 = vmul.f32 %v4389_v40, %v1389_v41  ;;  %v4390_v16 = vld [vmem:[#allocation40_spill] sm:$0xff]  ;;  %2558 = vmatprep.mubr.msk.f32.mxu0 %vm2069_vm9, %v4193_v6  ;;  %v4398_v40 = vld [vmem:[#allocation45_spill] sm:$0xff] }
 0x4cd   :  { %v1449_v23 = vmul.f32 %v4390_v16, %v4165_v15  ;;  %v2737_v55 = vpack.c.bf16 %v2020_v27, %v2015_v25  ;;  %v2025_v15 = vld [vmem:[#allocation14 + $0x338] sm:$0xff]  ;;  %v2346_v27 = vld [vmem:[#allocation17 + $0x28] sm:$0xff] }
 0x4ce   :  { %2692 = vmatpush1.bf16.msra.mxu1 %v2691_v56  ;;  %2724 = vmatpush1.bf16.msra.mxu0 %v2723_v63  ;;  %v3325_v56 = vmov 0.0|0.0   ;;  %v4201_v63 = vld [vmem:[#allocation2] sm:$0xff] }
 0x4cf   :  { %1497 = vperm.xlu1 %2840, %v1444_v53   ;;  %1771 = vperm.xlu0 %2841, %v1465_v57   ;;  %v2022_v53 = vld [vmem:[#allocation14 + $0x320] sm:$0xff]  ;;  %v2027_v57 = vld [vmem:[#allocation14 + $0x348] sm:$0xff] }
 0x4d0   :  { %v2695_v39 = vpack.c.bf16 %v2027_v57, %v2022_v53  ;;  %2694 = vmatprep.subr.bf16.mxu1 %v2693_v43  ;;  %2726 = vmatprep.subr.bf16.mxu0 %v2725_v2  ;;  %v2030_v2 = vld [vmem:[#allocation14 + $0x360] sm:$0xff]  ;;  %v4391_v53 = vld [vmem:[#allocation36_spill] sm:$0xff] }
 0x4d1   :  { %v1455_v57 = vmul.f32 %v4391_v53, %v1389_v41  ;;  %v2741_v22 = vpack.c.bf16 %v2030_v2, %v2025_v15  ;;  %v1961_v41 = vld [vmem:[#allocation14 + $0x138] sm:$0xff]  ;;  %v1986_v53 = vld [vmem:[#allocation14 + $0x200] sm:$0xff] }
 0x4d2   :  { %2696 = vmatpush1.bf16.msra.mxu1 %v2695_v39  ;;  %2728 = vmatpush1.bf16.msra.mxu0 %v2727_v34  ;;  %v1451_v39 = vmul.f32 %v4392_v13, %v4175_v61  ;;  %v1393_v34 = vrot.slane %v4131_v59, %v4393_v8  ;;  %v2035_v61 = vld [vmem:[#allocation14 + $0x388] sm:$0xff]  ;;  %v4394_v59 = vld [vmem:[#allocation44_spill] sm:$0xff]  ;;  %v2759_v32 = vpack.c.bf16 %v1961_v41, %v1956_v9  ;;  %v2352_v15 = vld [vmem:[#allocation17 + $0x58] sm:$0xff] }
 0x4d3   :  { %1716 = vperm.xlu1 %2840, %v1443_v20   ;;  %1776 = vperm.xlu0 %2841, %v1467_v12   ;;  %v2032_v20 = vld [vmem:[#allocation14 + $0x370] sm:$0xff]  ;;  %v2037_v12 = vld [vmem:[#allocation14 + $0x398] sm:$0xff] }
 0x4d4   :  { %v2699_v26 = vpack.c.bf16 %v2037_v12, %v2032_v20  ;;  %2698 = vmatprep.subr.bf16.mxu1 %v2697_v19  ;;  %2730 = vmatprep.subr.bf16.mxu0 %v2729_v10  ;;  %v2040_v19 = vld [vmem:[#allocation14 + $0x3b0] sm:$0xff]  ;;  %v1456_v48 = vmul.f32 %v4394_v59, %v1393_v34  ;;  %v4395_v20 = vld [vmem:[#allocation35_spill] sm:$0xff] }
 0x4d5   :  { %v1453_v12 = vmul.f32 %v4395_v20, %v4181_v14  ;;  %v2745_v10 = vpack.c.bf16 %v2040_v19, %v2035_v61  ;;  %v4397_v14 = vld [vmem:[#allocation32_spill] sm:$0xff] }
 0x4d6   :  { %2700 = vmatpush1.bf16.msra.mxu1 %v2699_v26  ;;  %2732 = vmatpush1.bf16.msra.mxu0 %v2731_v33  ;;  %v2034_v26 = vld [vmem:[#allocation14 + $0x380] sm:$0xff]  ;;  %v2355_v19 = vld [vmem:[#allocation17 + $0x70] sm:$0xff]  ;;  %v2358_v20 = vld [vmem:[#allocation17 + $0x88] sm:$0xff] }
 0x4d7   :  { %1502 = vperm.xlu1 %2840, %v1446_v28   ;;  %1781 = vperm.xlu0 %2841, %v1469_v0   ;;  %v2009_v28 = vld [vmem:[#allocation14 + $0x2b8] sm:$0xff]  ;;  %v1926_v0 = vld [vmem:[#allocation14 + $0x20] sm:$0xff]  ;;  %v2747_v33 = vpack.c.bf16 %v2039_v21, %v2034_v26  ;;  %v2011_v21 = vld [vmem:[#allocation14 + $0x2c8] sm:$0xff] }
 0x4d8   :  { %v2735_v24 = vpack.c.bf16 %v2009_v28, %v2004_v17  ;;  %v2750_v31 = vpack.c.bf16 %v1931_v50, %v1926_v0  ;;  %2734 = vmatprep.subr.bf16.mxu0 %v2733_v38  ;;  %2749 = vmatprep.subr.bf16.mxu1 %v3325_v56  ;;  %v1425_v38 = vrot.slane %v4111_v45, %v4393_v8  ;;  %v1966_v28 = vld [vmem:[#allocation14 + $0x160] sm:$0xff]  ;;  %v1971_v0 = vld [vmem:[#allocation14 + $0x188] sm:$0xff]  ;;  %v2343_v50 = vld [vmem:[#allocation17 + $0x10] sm:$0xff] }
 0x4d9   :  { %2141 = vmatmul.mubr.f32.vlgmr.msra.gmra.mrb[0].mxu1 %v4201_v63  ;;  %v2785_v17 = vpack.c.bf16 %v2344_v4, %v2342_v1  ;;  %v2348_v45 = vld [vmem:[#allocation17 + $0x38] sm:$0xff]  ;;  %v2351_v8 = vld [vmem:[#allocation17 + $0x50] sm:$0xff]  ;;  %v2362_v1 = vld [vmem:[#allocation17 + $0xa8] sm:$0xff] }
 0x4da   :  { %2736 = vmatpush1.bf16.msra.mxu0 %v2735_v24  ;;  %2751 = vmatpush1.bf16.msra.mxu1 %v2750_v31  ;;  %v2341_v24 = vld [vmem:[#allocation17] sm:$0xff]  ;;  %v2762_v31 = vpack.c.bf16 %v1971_v0, %v1966_v28  ;;  %v2359_v41 = vld [vmem:[#allocation17 + $0x90] sm:$0xff]  ;;  %v2364_v4 = vld [vmem:[#allocation17 + $0xb8] sm:$0xff] }
 0x4db   :  { %1507 = vperm.xlu1 %2840, %v1448_v52   ;;  %1492 = vperm.xlu0 %2841, %v1442_v44   ;;  %v2014_v52 = vld [vmem:[#allocation14 + $0x2e0] sm:$0xff]  ;;  %v1941_v44 = vld [vmem:[#allocation14 + $0x98] sm:$0xff]  ;;  %v2787_v25 = vpack.c.bf16 %v2343_v50, %v2341_v24 }
 0x4dc   :  { %v2739_v7 = vpack.c.bf16 %v2019_v62, %v2014_v52  ;;  %v2753_v43 = vpack.c.bf16 %v1941_v44, %v1936_v42  ;;  %2738 = vmatprep.subr.bf16.mxu0 %v2737_v55  ;;  %2752 = vmatprep.subr.bf16.mxu1 %v3325_v56  ;;  %v1981_v55 = vld [vmem:[#allocation14 + $0x1d8] sm:$0xff]  ;;  %v2789_v52 = vpack.c.bf16 %v2348_v45, %v2346_v27  ;;  %v2345_v42 = vld [vmem:[#allocation17 + $0x20] sm:$0xff] }
 0x4dd   :  { %v2006_v26 = vld [vmem:[#allocation14 + $0x2a0] sm:$0xff]  ;;  %v2367_v27 = vld [vmem:[#allocation17 + $0xd0] sm:$0xff] }
 0x4de   :  { %2740 = vmatpush1.bf16.msra.mxu0 %v2739_v7  ;;  %2754 = vmatpush1.bf16.msra.mxu1 %v2753_v43  ;;  %v2347_v7 = vld [vmem:[#allocation17 + $0x30] sm:$0xff]  ;;  %v2350_v43 = vld [vmem:[#allocation17 + $0x48] sm:$0xff]  ;;  %v2774_v9 = vpack.c.bf16 %v2011_v21, %v2006_v26  ;;  %v2368_v28 = vld [vmem:[#allocation17 + $0xd8] sm:$0xff] }
 0x4df   :  { %1512 = vperm.xlu1 %2840, %v1450_v30   ;;  %1721 = vperm.xlu0 %2841, %v1445_v49   ;;  %v2743_v30 = vpack.c.bf16 %v2029_v58, %v2024_v29  ;;  %v2756_v49 = vpack.c.bf16 %v1951_v54, %v1946_v47  ;;  %v2791_v44 = vpack.c.bf16 %v2347_v7, %v2345_v42  ;;  %v2356_v29 = vld [vmem:[#allocation17 + $0x78] sm:$0xff]  ;;  %v1996_v47 = vld [vmem:[#allocation14 + $0x250] sm:$0xff]  ;;  %v2353_v54 = vld [vmem:[#allocation17 + $0x60] sm:$0xff] }
 0x4e0   :  { %2742 = vmatprep.subr.bf16.mxu0 %v2741_v22  ;;  %2755 = vmatprep.subr.bf16.mxu1 %v3325_v56  ;;  %v2793_v2 = vpack.c.bf16 %v2352_v15, %v2350_v43  ;;  %v2354_v22 = vld [vmem:[#allocation17 + $0x68] sm:$0xff]  ;;  %v2799_v59 = vpack.c.bf16 %v2355_v19, %v2353_v54  ;;  %v2026_v50 = vld [vmem:[#allocation14 + $0x340] sm:$0xff]  ;;  %v2371_v42 = vld [vmem:[#allocation17 + $0xf0] sm:$0xff] }
 0x4e1   :  { %v2797_v58 = vpack.c.bf16 %v2356_v29, %v2354_v22  ;;  %v1483_v43 = vld [vmem:[#allocation7 + $0x90] sm:$0xff]  ;;  %v1486_v54 = vld [vmem:[#allocation7 + $0xc0] sm:$0xff]  ;;  %v1708_v26 = vld [vmem:[#allocation7 + $0xa8] sm:$0xff] }
 0x4e2   :  { %2744 = vmatpush1.bf16.msra.mxu0 %v2743_v30  ;;  %2757 = vmatpush1.bf16.msra.mxu1 %v2756_v49  ;;  %v2001_v30 = vld [vmem:[#allocation14 + $0x278] sm:$0xff]  ;;  %v4228_v49 = vld [vmem:[#allocation2 + $0x18] sm:$0xff] }
 0x4e3   :  { %1517 = vperm.xlu1 %2840, %v1452_v60   ;;  %1726 = vperm.xlu0 %2841, %v1447_v35   ;;  %v4396_v60 = vld [vmem:[#allocation38_spill] sm:$0xff]  ;;  %v1471_v35 = vmul.f32 %v4397_v14, %v4138_v51  ;;  %v1472_v51 = vmul.f32 %v4398_v40, %v1425_v38  ;;  %v2771_v61 = vpack.c.bf16 %v2001_v30, %v1996_v47  ;;  %v2021_v14 = vld [vmem:[#allocation14 + $0x318] sm:$0xff]  ;;  %v2370_v40 = vld [vmem:[#allocation17 + $0xe8] sm:$0xff] }
 0x4e4   :  { %2746 = vmatprep.subr.bf16.mxu0 %v2745_v10  ;;  %2758 = vmatprep.subr.bf16.mxu1 %v3325_v56  ;;  %v1457_v5 = vmul.f32 %v4396_v60, %v1393_v34  ;;  %v2805_v60 = vpack.c.bf16 %v2364_v4, %v2362_v1 }
 0x4e5   :  { %2557 = vmatprep.mubr.msk.f32.mxu1 %vm2069_vm9, %v4228_v49 }
 0x4e6   :  { %2748 = vmatpush1.bf16.msra.mxu0 %v2747_v33  ;;  %2760 = vmatpush1.bf16.msra.mxu1 %v2759_v32  ;;  %v2357_v33 = vld [vmem:[#allocation17 + $0x80] sm:$0xff] }
 0x4e7   :  { %1522 = vperm.xlu1 %2840, %v1454_v46   ;;  %1731 = vperm.xlu0 %2841, %v1449_v23   ;;  %v4399_v46 = vld [vmem:[#allocation39_spill] sm:$0xff]  ;;  %v1976_v23 = vld [vmem:[#allocation14 + $0x1b0] sm:$0xff]  ;;  %v2803_v32 = vpack.c.bf16 %v2359_v41, %v2357_v33 }
 0x4e8   :  { %2761 = vmatprep.subr.bf16.mxu1 %v3325_v56  ;;  %2786 = vmatprep.subr.bf16.mxu0 %v2785_v17  ;;  %v1473_v16 = vmul.f32 %v4399_v46, %v1425_v38  ;;  %v2765_v62 = vpack.c.bf16 %v1981_v55, %v1976_v23  ;;  %v2363_v38 = vld [vmem:[#allocation17 + $0xb0] sm:$0xff]  ;;  %v2366_v17 = vld [vmem:[#allocation17 + $0xc8] sm:$0xff]  ;;  %v3326_v46 = vmov 0.0  }
 0x4e9   :  { %2218 = vmatmul.mubr.f32.vlgmr.msra.gmra.mrb[2].mxu0 %v4201_v63  ;;  %v2809_v24 = vpack.c.bf16 %v2368_v28, %v2366_v17  ;;  %v2036_v23 = vld [vmem:[#allocation14 + $0x390] sm:$0xff]  ;;  %v1488_v17 = vld [vmem:[#allocation7 + $0xe0] sm:$0xff] }
 0x4ea   :  { %2763 = vmatpush1.bf16.msra.mxu1 %v2762_v31  ;;  %2788 = vmatpush1.bf16.msra.mxu0 %v2787_v25  ;;  %v2031_v31 = vld [vmem:[#allocation14 + $0x368] sm:$0xff] }
 0x4eb   :  { %1746 = vperm.xlu1 %2840, %v1455_v57   ;;  %1736 = vperm.xlu0 %2841, %v1451_v39   ;;  %v1991_v57 = vld [vmem:[#allocation14 + $0x228] sm:$0xff] }
 0x4ec   :  { %2764 = vmatprep.subr.bf16.mxu1 %v3325_v56  ;;  %2790 = vmatprep.subr.bf16.mxu0 %v2789_v52  ;;  %v2768_v13 = vpack.c.bf16 %v1991_v57, %v1986_v53  ;;  %v2349_v39 = vld [vmem:[#allocation17 + $0x40] sm:$0xff]  ;;  %v2041_v52 = vld [vmem:[#allocation14 + $0x3b8] sm:$0xff] }
 0x4ed   :  { %v2795_v34 = vpack.c.bf16 %v2351_v8, %v2349_v39  ;;  %2559 = vmatprep.mubr.msk.f32.mxu0 %vm2069_vm9, %v4228_v49  ;;  %v2365_v25 = vld [vmem:[#allocation17 + $0xc0] sm:$0xff]  ;;  %v2783_v7 = vpack.c.bf16 %v2041_v52, %v2036_v23  ;;  %v1482_v57 = vld [vmem:[#allocation7 + $0x80] sm:$0xff]  ;;  %v1707_v39 = vld [vmem:[#allocation7 + $0x98] sm:$0xff] }
 0x4ee   :  { %2766 = vmatpush1.bf16.msra.mxu1 %v2765_v62  ;;  %2792 = vmatpush1.bf16.msra.mxu0 %v2791_v44  ;;  %v2811_v45 = vpack.c.bf16 %v2367_v27, %v2365_v25  ;;  %v2369_v62 = vld [vmem:[#allocation17 + $0xe0] sm:$0xff] }
 0x4ef   :  { %1527 = vperm.xlu1 %2840, %v1456_v48   ;;  %1741 = vperm.xlu0 %2841, %v1453_v12   ;;  %v4233_v48 = vld [vmem:[#allocation2 + $0x10] sm:$0xff]  ;;  %v2815_v44 = vpack.c.bf16 %v2371_v42, %v2369_v62  ;;  %v1709_v62 = vld [vmem:[#allocation7 + $0xb8] sm:$0xff] }
 0x4f0   :  { %2767 = vmatprep.subr.bf16.mxu1 %v3325_v56  ;;  %2794 = vmatprep.subr.bf16.mxu0 %v2793_v2  ;;  %v2360_v12 = vld [vmem:[#allocation17 + $0x98] sm:$0xff] }
 0x4f1   :  { %2147 = vmatmul.mubr.f32.gmra.mrb[2].mxu1 %v4233_v48  ;;  %v2801_v10 = vpack.c.bf16 %v2360_v12, %v2358_v20  ;;  %2224 = vmatmul.mubr.f32.gmra.mrb[4].mxu0 %v4233_v48  ;;  %v1484_v20 = vld [vmem:[#allocation7 + $0xa0] sm:$0xff] }
 0x4f2   :  { %2769 = vmatpush1.bf16.msra.mxu1 %v2768_v13  ;;  %2796 = vmatpush1.bf16.msra.mxu0 %v2795_v34  ;;  %v1706_v13 = vld [vmem:[#allocation7 + $0x88] sm:$0xff] }
 0x4f3   :  { %1751 = vperm.xlu1 %2840, %v1457_v5   ;;  %1786 = vperm.xlu0 %2841, %v1471_v35   ;;  %v2016_v5 = vld [vmem:[#allocation14 + $0x2f0] sm:$0xff]  ;;  %v2361_v35 = vld [vmem:[#allocation17 + $0xa0] sm:$0xff] }
 0x4f4   :  { %2770 = vmatprep.subr.bf16.mxu1 %v3325_v56  ;;  %2798 = vmatprep.subr.bf16.mxu0 %v2797_v58  ;;  %v2807_v0 = vpack.c.bf16 %v2363_v38, %v2361_v35 }
 0x4f5   :  { %2560 = vmatprep.mubr.msk.f32.mxu1 %vm2069_vm9, %v4193_v6  ;;  %v2777_v6 = vpack.c.bf16 %v2021_v14, %v2016_v5  ;;  %2481 = vmatprep.mubr.f32.mxu0 %v3326_v46  ;;  %v1485_v14 = vld [vmem:[#allocation7 + $0xb0] sm:$0xff] }
 0x4f6   :  { %2772 = vmatpush1.bf16.msra.mxu1 %v2771_v61  ;;  %2800 = vmatpush1.bf16.msra.mxu0 %v2799_v59 }
 0x4f7   :  { %1567 = vperm.xlu1 %2840, %v1472_v51   ;;  %1791 = vperm.xlu0 %2841, %v1473_v16   ;;  %v2372_v51 = vld [vmem:[#allocation17 + $0xf8] sm:$0xff]  ;;  %v2780_v16 = vpack.c.bf16 %v2031_v31, %v2026_v50 }
 0x4f8   :  { %2773 = vmatprep.subr.bf16.mxu1 %v3325_v56  ;;  %2802 = vmatprep.subr.bf16.mxu0 %v2801_v10  ;;  %v2813_v55 = vpack.c.bf16 %v2372_v51, %v2370_v40  ;;  %v1487_v10 = vld [vmem:[#allocation7 + $0xd0] sm:$0xff] }
 0x4f9   :  { %v1475_v51 = vld [vmem:[#allocation7 + $0x10] sm:$0xff] }
 0x4fa   :  { %2775 = vmatpush1.bf16.msra.mxu1 %v2774_v9  ;;  %2804 = vmatpush1.bf16.msra.mxu0 %v2803_v32 }
 0x4fb   :  { %2776 = vmatprep.subr.bf16.mxu1 %v3325_v56  ;;  %2806 = vmatprep.subr.bf16.mxu0 %v2805_v60 }
 0x4fe   :  { %2778 = vmatpush1.bf16.msra.mxu1 %v2777_v6  ;;  %2808 = vmatpush1.bf16.msra.mxu0 %v2807_v0 }
 0x4ff   :  { %2779 = vmatprep.subr.bf16.mxu1 %v3325_v56  ;;  %2810 = vmatprep.subr.bf16.mxu0 %v2809_v24 }
 0x502   :  { %2781 = vmatpush1.bf16.msra.mxu1 %v2780_v16  ;;  %2812 = vmatpush1.bf16.msra.mxu0 %v2811_v45 }
 0x503   :  { %2782 = vmatprep.subr.bf16.mxu1 %v3325_v56  ;;  %2814 = vmatprep.subr.bf16.mxu0 %v2813_v55 }
 0x506   :  { %2784 = vmatpush1.bf16.msra.mxu1 %v2783_v7  ;;  %2816 = vmatpush1.bf16.msra.mxu0 %v2815_v44 }
 0x509   :  { %2295 = vmatmul.mubr.f32.vlgmr.msra.gmra.mrb[4].mxu1 %v4201_v63 }
 0x50a   :  { %2561 = vmatprep.mubr.msk.f32.mxu1 %vm2069_vm9, %v4228_v49 }
 0x50d   :  { %2300 = vmatmul.mubr.f32.gmra.mrb[6].mxu1 %v4233_v48 }
 0x53a   :  { %v1538_v15 = vpop.permute.xlu1 %1537  ;;  %v1533_v2 = vpop.permute.xlu0 %1532 }
 0x53b   :  { %v1579_v53 = vmul.f32 %v1538_v15, %v1483_v43  ;;  %v1578_v8 = vmul.f32 %v1533_v2, %v1482_v57 }
 0x53d   :  { %v1640_v22 = vrot.slane %v1579_v53, 4  ;;  %v1634_v30 = vrot.slane %v1578_v8, 4 }
 0x53e   :  { %v1757_v34 = vpop.permute.xlu1 %1756  ;;  %v1762_v56 = vpop.permute.xlu0 %1761 }
 0x53f   :  { %v1802_v29 = vmul.f32 %v1757_v34, %v1706_v13  ;;  %v1803_v58 = vmul.f32 %v1762_v56, %v1707_v39  ;;  %v1641_v19 = vadd.f32 %v1640_v22, %v1579_v53  ;;  %v1635_v21 = vadd.f32 %v1634_v30, %v1578_v8  ;;  %v1698_v56 = vld [vmem:[#allocation7 + $0x8] sm:$0xff] }
 0x540   :  { %v1710_v22 = vld [vmem:[#allocation7 + $0xc8] sm:$0xff] }
 0x541   :  { %v1858_v47 = vrot.slane %v1802_v29, 4  ;;  %v1864_v63 = vrot.slane %v1803_v58, 4  ;;  %v1642_v41 = vrot.slane %v1641_v19, 2  ;;  %v1636_v6 = vrot.slane %v1635_v21, 2 }
 0x542   :  { %v1553_v49 = vpop.permute.xlu1 %1552  ;;  %v1543_v61 = vpop.permute.xlu0 %1542 }
 0x543   :  { %v1859_v59 = vadd.f32 %v1858_v47, %v1802_v29  ;;  %v1865_v48 = vadd.f32 %v1864_v63, %v1803_v58  ;;  %v1582_v12 = vmul.f32 %v1553_v49, %v1486_v54  ;;  %v1580_v32 = vmul.f32 %v1543_v61, %v1484_v20 }
 0x544   :  { %v1643_v25 = vadd.f32 %v1642_v41, %v1641_v19  ;;  %v1637_v23 = vadd.f32 %v1636_v6, %v1635_v21 }
 0x545   :  { %v1860_v1 = vrot.slane %v1859_v59, 2  ;;  %v1866_v4 = vrot.slane %v1865_v48, 2  ;;  %v1658_v35 = vrot.slane %v1582_v12, 4  ;;  %v1646_v24 = vrot.slane %v1580_v32, 4 }
 0x546   :  { %v1558_v9 = vpop.permute.xlu1 %1557  ;;  %v1767_v33 = vpop.permute.xlu0 %1766  ;;  %v1644_v2 = vrot.slane %v1643_v25, 1  ;;  %v1638_v29 = vrot.slane %v1637_v23, 1 }
 0x547   :  { %v1583_v60 = vmul.f32 %v1558_v9, %v1487_v10  ;;  %v1804_v5 = vmul.f32 %v1767_v33, %v1708_v26  ;;  %v1861_v27 = vadd.f32 %v1860_v1, %v1859_v59  ;;  %v1867_v40 = vadd.f32 %v1866_v4, %v1865_v48  ;;  %v1476_v9 = vld [vmem:[#allocation7 + $0x20] sm:$0xff]  ;;  %v1711_v33 = vld [vmem:[#allocation7 + $0xd8] sm:$0xff] }
 0x548   :  { %v1659_v16 = vadd.f32 %v1658_v35, %v1582_v12  ;;  %v1647_v7 = vadd.f32 %v1646_v24, %v1580_v32  ;;  %v1645_v19 = vadd.f32 %v1644_v2, %v1643_v25 }
 0x549   :  { %v1870_v38 = vrot.slane %v1804_v5, 4  ;;  %v1664_v50 = vrot.slane %v1583_v60, 4  ;;  %v1862_v53 = vrot.slane %v1861_v27, 1  ;;  %v1868_v57 = vrot.slane %v1867_v40, 1 }
 0x54a   :  { %v1563_v28 = vpop.permute.xlu1 %1562  ;;  %v1548_v0 = vpop.permute.xlu0 %1547  ;;  %v1660_v13 = vrot.slane %v1659_v16, 2  ;;  %v1648_v30 = vrot.slane %v1647_v7, 2 }
 0x54b   :  { %v1581_v31 = vmul.f32 %v1548_v0, %v1485_v14  ;;  %v1584_v45 = vmul.f32 %v1563_v28, %v1488_v17  ;;  %v1871_v55 = vadd.f32 %v1870_v38, %v1804_v5  ;;  %v1665_v44 = vadd.f32 %v1664_v50, %v1583_v60  ;;  %v1477_v50 = vld [vmem:[#allocation7 + $0x30] sm:$0xff] }
 0x54c   :  { %v1863_v12 = vadd.f32 %v1862_v53, %v1861_v27  ;;  %v1869_v10 = vadd.f32 %v1868_v57, %v1867_v40  ;;  %v1661_v26 = vadd.f32 %v1660_v13, %v1659_v16  ;;  %v1639_v14 = vadd.f32 %v1638_v29, %v1637_v23  ;;  %v1478_v13 = vld [vmem:[#allocation7 + $0x40] sm:$0xff] }
 0x54d   :  { %v1652_v43 = vrot.slane %v1581_v31, 4  ;;  %v1670_v39 = vrot.slane %v1584_v45, 4  ;;  %v1872_v58 = vrot.slane %v1871_v55, 2  ;;  %v1666_v54 = vrot.slane %v1665_v44, 2 }
 0x54e   :  { %v1498_v52 = vpop.permute.xlu1 %1497  ;;  %v1772_v42 = vpop.permute.xlu0 %1771  ;;  %v1649_v35 = vadd.f32 %v1648_v30, %v1647_v7  ;;  %v4250_v25 = vadd.f32 %v1863_v12, %v1639_v14  ;;  %v4252_v27 = vadd.f32 %v1869_v10, %v1645_v19  ;;  %v1662_v40 = vrot.slane %v1661_v26, 1  ;;  %v1699_v30 = vld [vmem:[#allocation7 + $0x18] sm:$0xff] }
 0x54f   :  { %v1571_v15 = vmul.f32 %v1498_v52, %v1475_v51  ;;  %v1805_v34 = vmul.f32 %v1772_v42, %v1709_v62  ;;  %v1653_v49 = vadd.f32 %v1652_v43, %v1581_v31  ;;  %v1671_v21 = vadd.f32 %v1670_v39, %v1584_v45  ;;  %v1474_v31 = vld [vmem:[#allocation7] sm:$0xff] }
 0x550   :  { %v1873_v41 = vadd.f32 %v1872_v58, %v1871_v55  ;;  %v1667_v6 = vadd.f32 %v1666_v54, %v1665_v44  ;;  %v4254_v39 = vadd.f32 %v1662_v40, %v1661_v26 }
 0x551   :  { %v1592_v8 = vrot.slane %v1571_v15, 4  ;;  %v1876_v61 = vrot.slane %v1805_v34, 4  ;;  %v1654_v38 = vrot.slane %v1653_v49, 2  ;;  %v1672_v51 = vrot.slane %v1671_v21, 2 }
 0x552   :  { %v1717_v47 = vpop.permute.xlu1 %1716  ;;  %v1777_v63 = vpop.permute.xlu0 %1776  ;;  %v1874_v16 = vrot.slane %v1873_v41, 1  ;;  %v1668_v2 = vrot.slane %v1667_v6, 1 }
 0x553   :  { %v1593_v59 = vadd.f32 %v1592_v8, %v1571_v15  ;;  %v1794_v48 = vmul.f32 %v1717_v47, %v1698_v56  ;;  %v1806_v20 = vmul.f32 %v1777_v63, %v1710_v22  ;;  %v1877_v32 = vadd.f32 %v1876_v61, %v1805_v34 }
 0x554   :  { %v1650_v15 = vrot.slane %v1649_v35, 1  ;;  %v1655_v53 = vadd.f32 %v1654_v38, %v1653_v49  ;;  %v1875_v22 = vadd.f32 %v1874_v16, %v1873_v41  ;;  %v4256_v29 = vadd.f32 %v1672_v51, %v1671_v21  ;;  %v1479_v21 = vld [vmem:[#allocation7 + $0x50] sm:$0xff] }
 0x555   :  { %v1810_v1 = vrot.slane %v1794_v48, 4  ;;  %v1882_v4 = vrot.slane %v1806_v20, 4  ;;  %v1594_v17 = vrot.slane %v1593_v59, 2  ;;  %v1878_v45 = vrot.slane %v1877_v32, 2 }
 0x556   :  { %v1503_v60 = vpop.permute.xlu1 %1502  ;;  %v1782_v5 = vpop.permute.xlu0 %1781  ;;  %v1651_v49 = vadd.f32 %v1650_v15, %v1649_v35  ;;  %v1656_v12 = vrot.slane %v1655_v53, 1 }
 0x557   :  { %v1811_v28 = vadd.f32 %v1810_v1, %v1794_v48  ;;  %v1572_v0 = vmul.f32 %v1503_v60, %v1476_v9  ;;  %v1807_v24 = vmul.f32 %v1782_v5, %v1711_v33  ;;  %v1883_v55 = vadd.f32 %v1882_v4, %v1806_v20  ;;  %v1700_v1 = vld [vmem:[#allocation7 + $0x28] sm:$0xff] }
 0x558   :  { %v1595_v57 = vadd.f32 %v1594_v17, %v1593_v59  ;;  %v1879_v58 = vadd.f32 %v1878_v45, %v1877_v32  ;;  %v4258_v59 = vadd.f32 %v1668_v2, %v1667_v6  ;;  %v4260_v32 = vadd.f32 %v1875_v22, %v1651_v49  ;;  %v1704_v22 = vld [vmem:[#allocation7 + $0x68] sm:$0xff] }
 0x559   :  { %v1598_v52 = vrot.slane %v1572_v0, 4  ;;  %v1812_v42 = vrot.slane %v1811_v28, 2  ;;  %v1888_v7 = vrot.slane %v1807_v24, 4  ;;  %v1884_v47 = vrot.slane %v1883_v55, 2 }
 0x55a   :  { %v1508_v23 = vpop.permute.xlu1 %1507  ;;  %v1493_v62 = vpop.permute.xlu0 %1492  ;;  %v1596_v10 = vrot.slane %v1595_v57, 1  ;;  %v1674_v4 = vrot.slane %v4256_v29, 1  ;;  %v1880_v60 = vrot.slane %v1879_v58, 1 }
 0x55b   :  { %v1573_v44 = vmul.f32 %v1508_v23, %v1477_v50  ;;  %v1570_v43 = vmul.f32 %v1493_v62, %v1474_v31  ;;  %v1599_v8 = vadd.f32 %v1598_v52, %v1572_v0  ;;  %v1813_v61 = vadd.f32 %v1812_v42, %v1811_v28  ;;  %v1480_v52 = vld [vmem:[#allocation7 + $0x60] sm:$0xff]  ;;  %v1701_v23 = vld [vmem:[#allocation7 + $0x38] sm:$0xff] }
 0x55c   :  { %v1889_v19 = vadd.f32 %v1888_v7, %v1807_v24  ;;  %v1885_v5 = vadd.f32 %v1884_v47, %v1883_v55  ;;  %v4263_v0 = vadd.f32 %v1656_v12, %v1655_v53  ;;  %v4265_v24 = vadd.f32 %v1596_v10, %v1595_v57  ;;  %v1702_v47 = vld [vmem:[#allocation7 + $0x48] sm:$0xff] }
 0x55d   :  { %v1604_v34 = vrot.slane %v1573_v44, 4  ;;  %v1586_v56 = vrot.slane %v1570_v43, 4  ;;  %v1600_v26 = vrot.slane %v1599_v8, 2  ;;  %v1814_v17 = vrot.slane %v1813_v61, 1 }
 0x55e   :  { %v1513_v63 = vpop.permute.xlu1 %1512  ;;  %v1722_v54 = vpop.permute.xlu0 %1721  ;;  %v1890_v35 = vrot.slane %v1889_v19, 2  ;;  %v4267_v62 = vadd.f32 %v1880_v60, %v1879_v58  ;;  %v1886_v55 = vrot.slane %v1885_v5, 1 }
 0x55f   :  { %v1587_v48 = vadd.f32 %v1586_v56, %v1570_v43  ;;  %v1574_v20 = vmul.f32 %v1513_v63, %v1478_v13  ;;  %v1605_v9 = vadd.f32 %v1604_v34, %v1573_v44  ;;  %v1795_v41 = vmul.f32 %v1722_v54, %v1699_v30 }
 0x560   :  { %v1601_v40 = vadd.f32 %v1600_v26, %v1599_v8  ;;  %v4269_v15 = vadd.f32 %v1814_v17, %v1813_v61  ;;  %v1891_v2 = vadd.f32 %v1890_v35, %v1889_v19 }
 0x561   :  { %v1610_v33 = vrot.slane %v1574_v20, 4  ;;  %v1588_v6 = vrot.slane %v1587_v48, 2  ;;  %v1816_v28 = vrot.slane %v1795_v41, 4  ;;  %v1606_v51 = vrot.slane %v1605_v9, 2 }
 0x562   :  { %v1518_v14 = vpop.permute.xlu1 %1517  ;;  %v1727_v38 = vpop.permute.xlu0 %1726  ;;  %v1602_v63 = vrot.slane %v1601_v40, 1  ;;  %v1892_v19 = vrot.slane %v1891_v2, 1 }
 0x563   :  { %v1575_v50 = vmul.f32 %v1518_v14, %v1479_v21  ;;  %v1796_v31 = vmul.f32 %v1727_v38, %v1700_v1  ;;  %v1611_v16 = vadd.f32 %v1610_v33, %v1574_v20  ;;  %v1817_v45 = vadd.f32 %v1816_v28, %v1795_v41  ;;  %v1481_v38 = vld [vmem:[#allocation7 + $0x70] sm:$0xff] }
 0x564   :  { %v1589_v53 = vadd.f32 %v1588_v6, %v1587_v48  ;;  %v1607_v30 = vadd.f32 %v1606_v51, %v1605_v9  ;;  %v4271_v33 = vadd.f32 %v1886_v55, %v1885_v5  ;;  %v1603_v17 = vadd.f32 %v1602_v63, %v1601_v40  ;;  %v1705_v40 = vld [vmem:[#allocation7 + $0x78] sm:$0xff] }
 0x565   :  { %v1616_v42 = vrot.slane %v1575_v50, 4  ;;  %v1822_v7 = vrot.slane %v1796_v31, 4  ;;  %v1818_v57 = vrot.slane %v1817_v45, 2  ;;  %v1612_v58 = vrot.slane %v1611_v16, 2 }
 0x566   :  { %v1523_v44 = vpop.permute.xlu1 %1522  ;;  %v1732_v43 = vpop.permute.xlu0 %1731  ;;  %v1590_v21 = vrot.slane %v1589_v53, 1  ;;  %v1608_v9 = vrot.slane %v1607_v30, 1  ;;  %v4273_v5 = vadd.f32 %v1892_v19, %v1891_v2 }
 0x567   :  { %v1617_v13 = vadd.f32 %v1616_v42, %v1575_v50  ;;  %v1823_v34 = vadd.f32 %v1822_v7, %v1796_v31  ;;  %v1576_v8 = vmul.f32 %v1523_v44, %v1480_v52  ;;  %v1797_v56 = vmul.f32 %v1732_v43, %v1701_v23  ;;  %v1703_v7 = vld [vmem:[#allocation7 + $0x58] sm:$0xff] }
 0x568   :  { %v1819_v54 = vadd.f32 %v1818_v57, %v1817_v45  ;;  %v1613_v28 = vadd.f32 %v1612_v58, %v1611_v16  ;;  %v1591_v44 = vadd.f32 %v1590_v21, %v1589_v53 }
 0x569   :  { %v1618_v20 = vrot.slane %v1617_v13, 2  ;;  %v1824_v49 = vrot.slane %v1823_v34, 2  ;;  %v1622_v12 = vrot.slane %v1576_v8, 4  ;;  %v1828_v10 = vrot.slane %v1797_v56, 4 }
 0x56a   :  { %v1747_v26 = vpop.permute.xlu1 %1746  ;;  %v1737_v61 = vpop.permute.xlu0 %1736  ;;  %v1820_v1 = vrot.slane %v1819_v54, 1  ;;  %v1906_v53 = vadd.f32 %v4269_v15, %v1591_v44 }
 0x56b   :  { %v1800_v48 = vmul.f32 %v1747_v26, %v1704_v22  ;;  %v1798_v41 = vmul.f32 %v1737_v61, %v1702_v47  ;;  %v1825_v60 = vadd.f32 %v1824_v49, %v1823_v34  ;;  %v1829_v14 = vadd.f32 %v1828_v10, %v1797_v56  ;;  %v1712_v61 = vld [vmem:[#allocation7 + $0xe8] sm:$0xff] }
 0x56c   :  { %v1619_v50 = vadd.f32 %v1618_v20, %v1617_v13  ;;  %v1623_v31 = vadd.f32 %v1622_v12, %v1576_v8  ;;  %v1821_v43 = vadd.f32 %v1820_v1, %v1819_v54  ;;  %v1609_v56 = vadd.f32 %v1608_v9, %v1607_v30 }
 0x56d   :  { %v1846_v35 = vrot.slane %v1800_v48, 4  ;;  %v1834_v6 = vrot.slane %v1798_v41, 4  ;;  %v1830_v51 = vrot.slane %v1829_v14, 2  ;;  %v1826_v57 = vrot.slane %v1825_v60, 1 }
 0x56e   :  { %v1528_v45 = vpop.permute.xlu1 %1527  ;;  %v1742_v52 = vpop.permute.xlu0 %1741  ;;  %v1614_v13 = vrot.slane %v1613_v28, 1  ;;  %v1620_v8 = vrot.slane %v1619_v50, 1  ;;  %v1624_v63 = vrot.slane %v1623_v31, 2  ;;  %v1907_v54 = vadd.f32 %v1821_v43, %v4265_v24 }
 0x56f   :  { %v1847_v23 = vadd.f32 %v1846_v35, %v1800_v48  ;;  %v1835_v55 = vadd.f32 %v1834_v6, %v1798_v41  ;;  %v1577_v42 = vmul.f32 %v1528_v45, %v1481_v38  ;;  %v1831_v34 = vadd.f32 %v1830_v51, %v1829_v14  ;;  %v1489_v14 = vld [vmem:[#allocation7 + $0xf0] sm:$0xff] }
 0x570   :  { %v1799_v58 = vmul.f32 %v1742_v52, %v1703_v7  ;;  %v1827_v19 = vadd.f32 %v1826_v57, %v1825_v60  ;;  %v1615_v38 = vadd.f32 %v1614_v13, %v1613_v28  ;;  %v1621_v9 = vadd.f32 %v1620_v8, %v1619_v50  ;;  %v1713_v7 = vld [vmem:[#allocation7 + $0xf8] sm:$0xff] }
 0x571   :  { %v1848_v22 = vrot.slane %v1847_v23, 2  ;;  %v1836_v47 = vrot.slane %v1835_v55, 2  ;;  %v1628_v16 = vrot.slane %v1577_v42, 4  ;;  %v1832_v49 = vrot.slane %v1831_v34, 1 }
 0x572   :  { %v1752_v20 = vpop.permute.xlu1 %1751  ;;  %v1787_v2 = vpop.permute.xlu0 %1786  ;;  %v1840_v30 = vrot.slane %v1799_v58, 4  ;;  %v1625_v45 = vadd.f32 %v1624_v63, %v1623_v31  ;;  %v2401_v24 = vsel %vm844_vm1, %v1907_v54, %v1906_v53  ;;  %v1908_v43 = vadd.f32 %v1827_v19, %v1603_v17 }
 0x573   :  { %v1837_v12 = vadd.f32 %v1836_v47, %v1835_v55  ;;  %v1629_v10 = vadd.f32 %v1628_v16, %v1577_v42  ;;  %v1801_v26 = vmul.f32 %v1752_v20, %v1705_v40  ;;  %v1849_v48 = vadd.f32 %v1848_v22, %v1847_v23 }
 0x574   :  { %v1841_v35 = vadd.f32 %v1840_v30, %v1799_v58  ;;  %v1808_v6 = vmul.f32 %v1787_v2, %v1712_v61  ;;  %v1833_v52 = vadd.f32 %v1832_v49, %v1831_v34  ;;  %v1626_v13 = vrot.slane %v1625_v45, 1 }
 0x575   :  { %v1838_v41 = vrot.slane %v1837_v12, 1  ;;  %v1630_v21 = vrot.slane %v1629_v10, 2  ;;  %v1852_v1 = vrot.slane %v1801_v26, 4  ;;  %v1850_v57 = vrot.slane %v1849_v48, 1 }
 0x576   :  { %v1568_v51 = vpop.permute.xlu1 %1567  ;;  %v1792_v15 = vpop.permute.xlu0 %1791  ;;  %v1842_v60 = vrot.slane %v1841_v35, 2  ;;  %v1894_v44 = vrot.slane %v1808_v6, 4  ;;  %v1909_v31 = vadd.f32 %v1833_v52, %v1609_v56  ;;  %v2402_v49 = vsel %vm846_vm2, %v1908_v43, %v2401_v24 }
 0x577   :  { %v1631_v55 = vadd.f32 %v1630_v21, %v1629_v10  ;;  %v1853_v42 = vadd.f32 %v1852_v1, %v1801_v26  ;;  %v1585_v23 = vmul.f32 %v1568_v51, %v1489_v14  ;;  %v1839_v40 = vadd.f32 %v1838_v41, %v1837_v12 }
 0x578   :  { %v1843_v28 = vadd.f32 %v1842_v60, %v1841_v35  ;;  %v1895_v50 = vadd.f32 %v1894_v44, %v1808_v6  ;;  %v1809_v16 = vmul.f32 %v1792_v15, %v1713_v7  ;;  %v1851_v10 = vadd.f32 %v1850_v57, %v1849_v48 }
 0x579   :  { %v1854_v22 = vrot.slane %v1853_v42, 2  ;;  %v1676_v47 = vrot.slane %v1585_v23, 4  ;;  %v1632_v34 = vrot.slane %v1631_v55, 1  ;;  %v1910_v26 = vadd.f32 %v1839_v40, %v1615_v38 }
 0x57a   :  { %v1844_v63 = vrot.slane %v1843_v28, 1  ;;  %v1896_v58 = vrot.slane %v1895_v50, 2  ;;  %v1900_v2 = vrot.slane %v1809_v16, 4  ;;  %v1627_v19 = vadd.f32 %v1626_v13, %v1625_v45 }
 0x57b   :  { %v1855_v8 = vadd.f32 %v1854_v22, %v1853_v42  ;;  %v1677_v20 = vadd.f32 %v1676_v47, %v1585_v23  ;;  %v2403_v30 = vsel %vm848_vm3, %v1909_v31, %v2402_v49  ;;  %v1633_v41 = vadd.f32 %v1632_v34, %v1631_v55  ;;  %v2042_v34 = vld [vmem:[#allocation16] sm:$0x1f] }
 0x57c   :  { %v1845_v61 = vadd.f32 %v1844_v63, %v1843_v28  ;;  %v1897_v12 = vadd.f32 %v1896_v58, %v1895_v50  ;;  %v1901_v54 = vadd.f32 %v1900_v2, %v1809_v16  ;;  %v1917_v6 = vadd.f32 %v4267_v62, %v4263_v0 }
 0x57d   :  { %v1856_v17 = vrot.slane %v1855_v8, 1  ;;  %v1678_v53 = vrot.slane %v1677_v20, 2  ;;  %v1912_v51 = vadd.f32 %v1851_v10, %v1627_v19  ;;  %v2404_v38 = vsel %vm850_vm4, %v1910_v26, %v2403_v30 }
 0x57e   :  { %v1911_v21 = vadd.f32 %v1845_v61, %v1621_v9  ;;  %v1898_v1 = vrot.slane %v1897_v12, 1  ;;  %v1902_v35 = vrot.slane %v1901_v54, 2  ;;  %v2408_v55 = vsel %vm844_vm1, %v4252_v27, %v4250_v25 }
 0x57f   :  { %v1857_v56 = vadd.f32 %v1856_v17, %v1855_v8  ;;  %v1679_v14 = vadd.f32 %v1678_v53, %v1677_v20  ;;  %v1675_v9 = vadd.f32 %v1674_v4, %v4256_v29  ;;  %v1918_v0 = vadd.f32 %v4271_v33, %v4254_v39 }
 0x580   :  { %v1899_v52 = vadd.f32 %v1898_v1, %v1897_v12  ;;  %v1903_v7 = vadd.f32 %v1902_v35, %v1901_v54  ;;  %v2405_v45 = vsel %vm852_vm5, %v1911_v21, %v2404_v38  ;;  %v1919_v15 = vadd.f32 %v4273_v5, %v4258_v59  ;;  %v2373_v35 = vld [vmem:[#allocation19] sm:$0x3] }
 0x581   :  { %v1913_v48 = vadd.f32 %v1857_v56, %v1633_v41  ;;  %v1680_v42 = vrot.slane %v1679_v14, 1  ;;  %v2406_v62 = vsel %vm854_vm6, %v1912_v51, %v2405_v45  ;;  %v2409_v25 = vsel %vm846_vm2, %v4260_v32, %v2408_v55 }
 0x582   :  { %v1904_v60 = vrot.slane %v1903_v7, 1  ;;  %v1920_v23 = vadd.f32 %v1899_v52, %v1675_v9  ;;  %v2410_v29 = vsel %vm848_vm3, %v1917_v6, %v2409_v25  ;;  %v2051_v8 = vrot.slane %v2042_v34, %v3827_v3 }
 0x583   :  { %v1681_v24 = vadd.f32 %v1680_v42, %v1679_v14  ;;  %v2407_v44 = vsel %vm856_vm7, %v1913_v48, %v2406_v62  ;;  %v2411_v39 = vsel %vm850_vm4, %v1918_v0, %v2410_v29  ;;  %v2047_v63 = vrot.slane %v2042_v34, %v3560_v37 }
 0x584   :  { %2482 = vmatmul.mubr.f32.vlgmr.msra.gmra.mrb[6].mxu0 %v2407_v44  ;;  %v1905_v27 = vadd.f32 %v1904_v60, %v1903_v7  ;;  %v2412_v33 = vsel %vm852_vm5, %v1919_v15, %v2411_v39  ;;  %v2055_v12 = vrot.slane %v2042_v34, %v3834_v11  ;;  %v2063_v48 = vrot.slane %v2042_v34, %v3848_v36  ;;  %v2500_v44 = vld [vmem:[#allocation5] sm:$0xff] }
 0x585   :  { %2487 = vmatprep.mubr.f32.mxu0 %v3326_v46  ;;  %v2413_v59 = vsel %vm854_vm6, %v1920_v23, %v2412_v33  ;;  %v2059_v11 = vrot.slane %v2042_v34, %v3841_v18  ;;  %v2378_v52 = vrot.slane %v2373_v35, %v3560_v37  ;;  %v2382_v42 = vrot.slane %v2373_v35, %v3827_v3 }
 0x586   :  { %v1921_v4 = vadd.f32 %v1905_v27, %v1681_v24 }
 0x588   :  { %v2414_v5 = vsel %vm856_vm7, %v1921_v4, %v2413_v59 }
 0x589   :  { %2488 = vmatmul.mubr.f32.gmra.mrb[8].mxu0 %v2414_v5 }
 0x5ac   :  { %v2142_v43 = vpop.f32.mrb[0].mxu1 }
 0x5ad   :  { %v2144_v57 = vpop.f32.mrb[1].mxu1  ;;  %v2143_v20 = vadd.f32 %v2142_v43, %v2047_v63 }
 0x5ae   :  { %v2145_v58 = vadd.f32 %v2144_v57, %v2051_v8  ;;  %v2501_v57 = vld [vmem:[#allocation5 + $0x8] sm:$0xff] }
 0x5af   :  { %v2562_v10 = vmul.f32 -1.442695, %v2143_v20 }
 0x5b0   :  { %v2563_v2 = vmul.f32 -1.442695, %v2145_v58 }
 0x5b2   :  { %2974 = vpow2.f32 %v2563_v2 }
 0x5b3   :  { %2976 = vpow2.f32 %v2562_v10 }
 0x5bc   :  { %v2219_v40 = vpop.f32.mrb[2].mxu0  ;;  %v2975_v54 = vpop.eup %2974 }
 0x5bd   :  { %v2221_v22 = vpop.f32.mrb[3].mxu0  ;;  %v2220_v53 = vadd.f32 %v2219_v40, %v2055_v12  ;;  %v2977_v19 = vpop.eup %2976  ;;  %v2324_v41 = vadd.f32 1.0, %v2975_v54 }
 0x5be   :  { %v2323_v1 = vadd.f32 1.0, %v2977_v19  ;;  %v2222_v55 = vadd.f32 %v2221_v22, %v2059_v11 }
 0x5bf   :  { %v2564_v30 = vmul.f32 -1.442695, %v2220_v53 }
 0x5c4   :  { %v2148_v32 = vpop.f32.mrb[2].mxu1  ;;  %v2225_v50 = vpop.f32.mrb[4].mxu0 }
 0x5c5   :  { %v2150_v28 = vpop.f32.mrb[3].mxu1  ;;  %v2227_v46 = vpop.f32.mrb[5].mxu0  ;;  %v2149_v26 = vadd.f32 %v2148_v32, %v2047_v63  ;;  %v2226_v21 = vadd.f32 %v2225_v50, %v2055_v12 }
 0x5c6   :  { %v2151_v49 = vadd.f32 %v2150_v28, %v2051_v8  ;;  %v2228_v3 = vadd.f32 %v2227_v46, %v2059_v11 }
 0x5c7   :  { %v2565_v61 = vmul.f32 -1.442695, %v2149_v26  ;;  %v2567_v51 = vmul.f32 -1.442695, %v2226_v21 }
 0x5c8   :  { %v2566_v17 = vmul.f32 -1.442695, %v2151_v49 }
 0x5ca   :  { %2978 = vpow2.f32 %v2566_v17 }
 0x5cb   :  { %2980 = vpow2.f32 %v2565_v61 }
 0x5cc   :  { %2982 = vpow2.f32 %v2564_v30 }
 0x5cd   :  { %2984 = vrcp.f32 %v2324_v41 }
 0x5ce   :  { %2986 = vrcp.f32 %v2323_v1 }
 0x5d4   :  { %v2979_v56 = vpop.eup %2978 }
 0x5d5   :  { %v2981_v14 = vpop.eup %2980  ;;  %v2327_v6 = vadd.f32 1.0, %v2979_v56 }
 0x5d6   :  { %v2326_v38 = vadd.f32 1.0, %v2981_v14  ;;  %v2983_v24 = vpop.eup %2982 }
 0x5d7   :  { %2988 = vrcp.f32 %v2327_v6  ;;  %v2985_v60 = vpop.eup %2984  ;;  %v2325_v27 = vadd.f32 1.0, %v2983_v24 }
 0x5d8   :  { %2990 = vpow2.f32 %v2567_v51  ;;  %v2987_v37 = vpop.eup %2986  ;;  %v2502_v4 = vmul.f32 %v2985_v60, %v2500_v44 }
 0x5d9   :  { %2992 = vrcp.f32 %v2326_v38 }
 0x5da   :  { %2994 = vrcp.f32 %v2325_v27 }
 0x5dc   :  { %v2296_v47 = vpop.f32.mrb[4].mxu1 }
 0x5dd   :  { %v2298_v16 = vpop.f32.mrb[5].mxu1  ;;  %v2297_v7 = vadd.f32 %v2296_v47, %v2063_v48 }
 0x5e0   :  { %v2301_v13 = vpop.f32.mrb[6].mxu1 }
 0x5e1   :  { %v2303_v31 = vpop.f32.mrb[7].mxu1  ;;  %v2302_v23 = vadd.f32 %v2301_v13, %v2063_v48  ;;  %v2989_v5 = vpop.eup %2988 }
 0x5e2   :  { %v2991_v40 = vpop.eup %2990  ;;  %v2503_v47 = vmul.f32 %v2989_v5, %v2501_v57 }
 0x5e3   :  { %v2993_v28 = vpop.eup %2992  ;;  %v2328_v16 = vadd.f32 1.0, %v2991_v40 }
 0x657   :  { %v2483_v45 = vpop.f32.mrb[6].mxu0 }
 0x658   :  { %v2484_v9 = vadd.f32 %v2483_v45, %v2378_v52  ;;  %v2485_v0 = vpop.f32.mrb[7].mxu0 }
 0x659   :  { %v2486_v62 = vadd.f32 %v2485_v0, %v2382_v42 }
 0x65a   :  { %v2494_v15 = vadd.f32 %v2484_v9, %v2222_v55 }
 0x65b   :  { %v2495_v36 = vadd.f32 %v2486_v62, %v2297_v7 }
 0x65c   :  { %v2489_v25 = vpop.f32.mrb[8].mxu0 }
 0x65d   :  { %v2498_v18 = vmax.f32 %v2494_v15, %v2495_v36  ;;  %v2490_v29 = vadd.f32 %v2489_v25, %v2378_v52  ;;  %v2491_v39 = vpop.f32.mrb[9].mxu0 }
 0x65e   :  { %v2492_v59 = vadd.f32 %v2491_v39, %v2382_v42 }
 0x65f   :  { %v2504_v33 = vmul.f32 %v2987_v37, %v2498_v18  ;;  %v2496_v43 = vadd.f32 %v2490_v29, %v2228_v3 }
 0x660   :  { %v2497_v32 = vadd.f32 %v2492_v59, %v2302_v23 }
 0x661   :  { %v2506_v22 = vadd.f32 %v2504_v33, %v2502_v4 }
 0x662   :  { %v2499_v50 = vmax.f32 %v2496_v43, %v2497_v32 }
 0x663   :  { %2996 = vtanh.f32 %v2506_v22  ;;  %2514 = vst [vmem:[#allocation21] sm:$0xff] %v2506_v22 }
 0x664   :  { %v2505_v46 = vmul.f32 %v2993_v28, %v2499_v50  ;;  %2998 = vrcp.f32 %v2328_v16 }
 0x666   :  { %v2507_v13 = vadd.f32 %v2505_v46, %v2503_v47 }
 0x668   :  { %3000 = vtanh.f32 %v2507_v13  ;;  %2515 = vst [vmem:[#allocation21 + $0x8] sm:$0xff] %v2507_v13 }
 0x669   :  { %3257 = shalt.err (!%p3254_p8)
}
 0x66a   :  { %s3258_s23 = scalar_lea.hbm %s4353_s12, 256 }
 0x66b   :  { %p3259_p9 = scmp.ne.s32.totalorder %s4353_s12, %s3258_s23  ;;  %p3262_p10 = scmp.lt.u32.totalorder %s3258_s23, %s4353_s12 }
 0x66d   :  { %p3264_p11 = pnand %p3262_p10, %p3259_p9 }
 0x66f   :  { %3267 = shalt.err (!%p3264_p11)
}
 0x670   :  { %2539 = dma.vmem_to_hbm [thread:$0]  %s2534_s29, 256, %s4353_s12, [#allocation22], %s3307_s13, %s3307_s13, %s3308_s14   ;;  %v2995_v31 = vpop.eup %2994 }
 0x671   :  { %v2997_v34 = vpop.eup %2996  ;;  %s3328_s28 = smov [#allocation20]  }
 0x672   :  { %v2510_v8 = vmul.f32 %v2997_v34, %v2995_v31  ;;  %s2521_s6 = sshll.u32 %s3328_s28, 4  ;;  %v2999_v63 = vpop.eup %2998  ;;  %s2522_s6 = int_to_ptr.vmem [resolvable:$true] %s2521_s6 }
 0x673   :  { %v3001_v58 = vpop.eup %3000  ;;  %s3268_s1 = scalar_lea.vmem %s2522_s6, 256  ;;  %p3273_p13 = scmp.lt.s32.totalorder %s2522_s6, %s2522_s6 }
 0x674   :  { %2512 = vst [vmem:[#allocation20] sm:$0xff] %v2510_v8  ;;  %v2511_v20 = vmul.f32 %v3001_v58, %v2999_v63  ;;  %p3269_p12 = scmp.ne.s32.totalorder %s2522_s6, %s3268_s1  ;;  %p3274_p0 = scmp.lt.s32.totalorder %s3268_s1, %s3268_s1 }
 0x676   :  { %2513 = vst [vmem:[#allocation20 + $0x8] sm:$0xff] %v2511_v20  ;;  %p3275_p1 = por %p3274_p0, %p3273_p13 }
 0x678   :  { %p3276_p2 = pnand %p3275_p1, %p3269_p12 }
 0x67a   :  { %3279 = shalt.err (!%p3276_p2)
}
 0x67b   :  { %s3280_s30 = scalar_lea.hbm %s4352_s11, 256 }
 0x67c   :  { %p3281_p3 = scmp.ne.s32.totalorder %s4352_s11, %s3280_s30  ;;  %p3284_p4 = scmp.lt.u32.totalorder %s3280_s30, %s4352_s11 }
 0x67e   :  { %p3286_p5 = pnand %p3284_p4, %p3281_p3 }
 0x680   :  { %3289 = shalt.err (!%p3286_p5)
}
 0x681   :  { %2527 = dma.vmem_to_hbm [thread:$0]  %s2522_s6, 256, %s4352_s11, [#allocation4], %s3307_s13, %s3307_s13, %s3308_s14  }
 0x682   :  { %3302 = dma.done.wait [#allocation4], 256  }
 0x683   :  { %3303 = vsyncadd [#allocation4], 4294967040 }
 0x684   :  { %3304 = dma.done.wait [#allocation22], 256  }
 0x685   :  { %3305 = vsyncadd [#allocation22], 4294967040 }
 0x686   :  { %2546 = vsyncpa [#allocation3], 1 }
 0x687   :  { %2547 = vsyncpa [#allocation6], 1 }
 0x688   :  { %2548 = vsyncpa [#allocation9], 1 }
 0x689   :  { %2549 = vsyncpa [#allocation12], 1 }
 0x68a   :  { %2550 = vsyncpa [#allocation15], 1 }
 0x68b   :  { %2551 = vsyncpa [#allocation18], 1 }
 0x68c   :  { %2552 = vsyncpa [#allocation4], 1 }
 0x68d   :  { %2553 = vsyncpa [#allocation22], 1 }

// kernel: tpu_custom_call.1
= control target key start
LH: loop header
LB: loop body
LE: loop exit
PB: predicated region body
PF: predicated region fallthrough
CT: control target
= control target key end

     0   :  { %18 = vsyncpa [#allocation3], 0  ;;  %s4341_s0 = inlined_call_operand.hbm [shape: f32[16,192], index: 0, kind: input, shape index: {}]   ;;  %s4342_s1 = inlined_call_operand.hbm [shape: f32[16,128], index: 1, kind: input, shape index: {}]   ;;  %s4343_s2 = inlined_call_operand.hbm [shape: f32[16,16,128], index: 2, kind: input, shape index: {}]   ;;  %s4344_s3 = inlined_call_operand.hbm [shape: f32[16,16,128], index: 3, kind: input, shape index: {}]   ;;  %s4345_s4 = inlined_call_operand.hbm [shape: f32[128,128], index: 4, kind: input, shape index: {}]   ;;  %s4346_s5 = inlined_call_operand.hbm [shape: f32[1,128], index: 5, kind: input, shape index: {}]   ;;  %s4347_s6 = inlined_call_operand.hbm [shape: f32[1,128], index: 6, kind: input, shape index: {}]   ;;  %s4348_s7 = inlined_call_operand.hbm [shape: f32[192,640], index: 7, kind: input, shape index: {}]   ;;  %s4349_s8 = inlined_call_operand.hbm [shape: f32[1,640], index: 8, kind: input, shape index: {}]   ;;  %s4350_s9 = inlined_call_operand.hbm [shape: f32[128,256], index: 9, kind: input, shape index: {}]   ;;  %s4351_s10 = inlined_call_operand.hbm [shape: f32[1,256], index: 10, kind: input, shape index: {}]   ;;  %s4352_s11 = inlined_call_operand.hbm [shape: f32[16,128], index: 11, kind: output, shape index: {0}]   ;;  %s4353_s12 = inlined_call_operand.hbm [shape: f32[16,128], index: 12, kind: output, shape index: {1}]  }
   0x1   :  { %19 = vsyncpa [#allocation6], 0 }
   0x2   :  { %20 = vsyncpa [#allocation9], 0 }
   0x3   :  { %21 = vsyncpa [#allocation12], 0 }
   0x4   :  { %22 = vsyncpa [#allocation15], 0 }
   0x5   :  { %23 = vsyncpa [#allocation18], 0 }
   0x6   :  { %24 = vsyncpa [#allocation4], 0 }
   0x7   :  { %25 = vsyncpa [#allocation22], 0  ;;  %s3306_s21 = smov [#allocation5]   ;;  %s3004_s25 = scalar_lea.hbm %s4342_s1, 256 }
   0x8   :  { %s43_s22 = sshll.u32 %s3306_s21, 4  ;;  %p3005_p0 = scmp.ne.s32.totalorder %s4342_s1, %s3004_s25  ;;  %s44_s22 = int_to_ptr.vmem [resolvable:$true] %s43_s22 }
   0x9   :  { %p3008_p1 = scmp.lt.u32.totalorder %s3004_s25, %s4342_s1 }
   0xb   :  { %p3010_p2 = pnand %p3008_p1, %p3005_p0 }
   0xd   :  { %3013 = shalt.err (!%p3010_p2)
}
   0xe   :  { %s3014_s30 = scalar_lea.vmem %s44_s22, 256  ;;  %p3019_p4 = scmp.lt.s32.totalorder %s44_s22, %s44_s22 }
   0xf   :  { %p3015_p3 = scmp.ne.s32.totalorder %s44_s22, %s3014_s30  ;;  %p3020_p5 = scmp.lt.s32.totalorder %s3014_s30, %s3014_s30 }
  0x11   :  { %p3021_p6 = por %p3020_p5, %p3019_p4 }
  0x13   :  { %p3022_p7 = pnand %p3021_p6, %p3015_p3 }
  0x15   :  { %3025 = shalt.err (!%p3022_p7)
}
  0x16   :  { %s3307_s13 = smov 128   ;;  %s3308_s14 = smov 8  }
  0x17   :  { %49 = dma.hbm_to_vmem [thread:$0]  %s4342_s1, 256, %s44_s22, [#allocation6], %s3307_s13, %s3307_s13, %s3308_s14  }
  0x18   :  { %s3309_s17 = smov [#allocation8]   ;;  %s3310_s19 = smov [#allocation11]  }
  0x19   :  { %s67_s18 = sshll.u32 %s3309_s17, 4  ;;  %s92_s20 = sshll.u32 %s3310_s19, 4  ;;  %s68_s18 = int_to_ptr.vmem [resolvable:$true] %s67_s18  ;;  %s93_s20 = int_to_ptr.vmem [resolvable:$true] %s92_s20 }
  0x1a   :  { %s3026_s24 = scalar_lea.hbm %s4344_s3, 4096 }
  0x1b   :  { %p3027_p8 = scmp.ne.s32.totalorder %s4344_s3, %s3026_s24  ;;  %p3030_p9 = scmp.lt.u32.totalorder %s3026_s24, %s4344_s3 }
  0x1d   :  { %p3032_p10 = pnand %p3030_p9, %p3027_p8 }
  0x1f   :  { %3035 = shalt.err (!%p3032_p10)
}
  0x20   :  { %s3036_s1 = scalar_lea.vmem %s68_s18, 4096  ;;  %p3041_p12 = scmp.lt.s32.totalorder %s68_s18, %s68_s18 }
  0x21   :  { %p3037_p11 = scmp.ne.s32.totalorder %s68_s18, %s3036_s1  ;;  %p3042_p13 = scmp.lt.s32.totalorder %s3036_s1, %s3036_s1 }
  0x23   :  { %p3043_p0 = por %p3042_p13, %p3041_p12 }
  0x25   :  { %p3044_p1 = pnand %p3043_p0, %p3037_p11 }
  0x27   :  { %3047 = shalt.err (!%p3044_p1)
}
  0x28   :  { %73 = dma.hbm_to_vmem [thread:$0]  %s4344_s3, 4096, %s68_s18, [#allocation9], %s3307_s13, %s3307_s13, %s3308_s14  }
  0x29   :  { %s3048_s16 = scalar_lea.hbm %s4346_s5, 16 }
  0x2a   :  { %p3049_p2 = scmp.ne.s32.totalorder %s4346_s5, %s3048_s16  ;;  %p3052_p3 = scmp.lt.u32.totalorder %s3048_s16, %s4346_s5 }
  0x2c   :  { %p3054_p4 = pnand %p3052_p3, %p3049_p2 }
  0x2e   :  { %3057 = shalt.err (!%p3054_p4)
}
  0x2f   :  { %s3058_s24 = scalar_lea.vmem %s93_s20, 16  ;;  %s3062_s25 = scalar_lea.vmem %s93_s20, 32 }
  0x30   :  { %p3059_p5 = scmp.ne.s32.totalorder %s93_s20, %s3058_s24  ;;  %p3063_p6 = scmp.lt.s32.totalorder %s93_s20, %s93_s20 }
  0x31   :  { %p3064_p7 = scmp.lt.s32.totalorder %s3062_s25, %s3058_s24 }
  0x33   :  { %p3065_p8 = por %p3064_p7, %p3063_p6 }
  0x35   :  { %p3066_p9 = pnand %p3065_p8, %p3059_p5 }
  0x37   :  { %3069 = shalt.err (!%p3066_p9)
}
  0x38   :  { %95 = dma.hbm_to_vmem [thread:$0]  %s4346_s5, 16, %s93_s20, [#allocation12]  }
  0x39   :  { %s3311_s26 = smov [#allocation14]   ;;  %s3070_s22 = scalar_lea.hbm %s4348_s7, 15360 }
  0x3a   :  { %s111_s27 = sshll.u32 %s3311_s26, 4  ;;  %p3071_p10 = scmp.ne.s32.totalorder %s4348_s7, %s3070_s22  ;;  %s112_s27 = int_to_ptr.vmem [resolvable:$true] %s111_s27 }
  0x3b   :  { %p3074_p11 = scmp.lt.u32.totalorder %s3070_s22, %s4348_s7 }
  0x3d   :  { %p3076_p12 = pnand %p3074_p11, %p3071_p10 }
  0x3f   :  { %3079 = shalt.err (!%p3076_p12)
}
  0x40   :  { %s3080_s17 = scalar_lea.vmem %s112_s27, 15360  ;;  %p3085_p0 = scmp.lt.s32.totalorder %s112_s27, %s112_s27 }
  0x41   :  { %p3081_p13 = scmp.ne.s32.totalorder %s112_s27, %s3080_s17  ;;  %p3086_p1 = scmp.lt.s32.totalorder %s3080_s17, %s3080_s17 }
  0x43   :  { %p3087_p2 = por %p3086_p1, %p3085_p0 }
  0x45   :  { %p3088_p3 = pnand %p3087_p2, %p3081_p13 }
  0x47   :  { %3091 = shalt.err (!%p3088_p3)
}
  0x48   :  { %s3312_s5 = smov 640   ;;  %s3313_s20 = smov 40  }
  0x49   :  { %117 = dma.hbm_to_vmem [thread:$0]  %s4348_s7, 15360, %s112_s27, [#allocation15], %s3312_s5, %s3312_s5, %s3313_s20  }
  0x4a   :  { %s3314_s23 = smov [#allocation17]   ;;  %s3315_s25 = smov [#allocation2]  }
  0x4b   :  { %s133_s24 = sshll.u32 %s3314_s23, 4  ;;  %s31_s3 = sshll.u32 %s3315_s25, 4  ;;  %s134_s24 = int_to_ptr.vmem [resolvable:$true] %s133_s24  ;;  %s3448_s3 = int_to_ptr.vmem [resolvable:$true] %s31_s3 }
  0x4c   :  { %s3092_s28 = scalar_lea.hbm %s4350_s9, 4096 }
  0x4d   :  { %p3093_p4 = scmp.ne.s32.totalorder %s4350_s9, %s3092_s28  ;;  %p3096_p5 = scmp.lt.u32.totalorder %s3092_s28, %s4350_s9 }
  0x4f   :  { %p3098_p6 = pnand %p3096_p5, %p3093_p4 }
  0x51   :  { %3101 = shalt.err (!%p3098_p6)
}
  0x52   :  { %s3102_s7 = scalar_lea.vmem %s134_s24, 4096  ;;  %p3107_p8 = scmp.lt.s32.totalorder %s134_s24, %s134_s24 }
  0x53   :  { %p3103_p7 = scmp.ne.s32.totalorder %s134_s24, %s3102_s7  ;;  %p3108_p9 = scmp.lt.s32.totalorder %s3102_s7, %s3102_s7 }
  0x55   :  { %p3109_p10 = por %p3108_p9, %p3107_p8 }
  0x57   :  { %p3110_p11 = pnand %p3109_p10, %p3103_p7 }
  0x59   :  { %3113 = shalt.err (!%p3110_p11)
}
  0x5a   :  { %s3316_s27 = smov 256   ;;  %s3317_s15 = smov 16  }
  0x5b   :  { %139 = dma.hbm_to_vmem [thread:$0]  %s4350_s9, 4096, %s134_s24, [#allocation18], %s3316_s27, %s3316_s27, %s3317_s15  }
  0x5c   :  { %s3114_s19 = scalar_lea.hbm %s4341_s0, 512 }
  0x5d   :  { %p3115_p12 = scmp.ne.s32.totalorder %s4341_s0, %s3114_s19  ;;  %p3118_p13 = scmp.lt.u32.totalorder %s3114_s19, %s4341_s0 }
  0x5f   :  { %p3120_p0 = pnand %p3118_p13, %p3115_p12 }
  0x61   :  { %3123 = shalt.err (!%p3120_p0)
}
  0x62   :  { %s3124_s26 = scalar_lea.vmem %s3448_s3, 512  ;;  %p3129_p2 = scmp.lt.s32.totalorder %s3448_s3, %s3448_s3 }
  0x63   :  { %p3125_p1 = scmp.ne.s32.totalorder %s3448_s3, %s3124_s26  ;;  %p3130_p3 = scmp.lt.s32.totalorder %s3124_s26, %s3124_s26 }
  0x65   :  { %p3131_p4 = por %p3130_p3, %p3129_p2 }
  0x67   :  { %p3132_p5 = pnand %p3131_p4, %p3125_p1 }
  0x69   :  { %3135 = shalt.err (!%p3132_p5)
}
  0x6a   :  { %37 = dma.hbm_to_vmem [thread:$0]  %s4341_s0, 512, %s3448_s3, [#allocation3], %s3316_s27, %s3316_s27, %s3317_s15  }
  0x6b   :  { %s3318_s28 = smov [#allocation7]   ;;  %s3319_s22 = smov [#allocation10]  }
  0x6c   :  { %s55_s1 = sshll.u32 %s3318_s28, 4  ;;  %s79_s29 = sshll.u32 %s3319_s22, 4  ;;  %s56_s1 = int_to_ptr.vmem [resolvable:$true] %s55_s1  ;;  %s3479_s29 = int_to_ptr.vmem [resolvable:$true] %s79_s29 }
  0x6d   :  { %s3136_s16 = scalar_lea.hbm %s4343_s2, 4096 }
  0x6e   :  { %p3137_p6 = scmp.ne.s32.totalorder %s4343_s2, %s3136_s16  ;;  %p3140_p7 = scmp.lt.u32.totalorder %s3136_s16, %s4343_s2 }
  0x70   :  { %p3142_p8 = pnand %p3140_p7, %p3137_p6 }
  0x72   :  { %3145 = shalt.err (!%p3142_p8)
}
  0x73   :  { %s3146_s0 = scalar_lea.vmem %s56_s1, 4096  ;;  %p3151_p10 = scmp.lt.s32.totalorder %s56_s1, %s56_s1 }
  0x74   :  { %p3147_p9 = scmp.ne.s32.totalorder %s56_s1, %s3146_s0  ;;  %p3152_p11 = scmp.lt.s32.totalorder %s3146_s0, %s3146_s0 }
  0x76   :  { %p3153_p12 = por %p3152_p11, %p3151_p10 }
  0x78   :  { %p3154_p13 = pnand %p3153_p12, %p3147_p9 }
  0x7a   :  { %3157 = shalt.err (!%p3154_p13)
}
  0x7b   :  { %61 = dma.hbm_to_vmem [thread:$0]  %s4343_s2, 4096, %s56_s1, [#allocation6], %s3307_s13, %s3307_s13, %s3308_s14  }
  0x7c   :  { %s3158_s23 = scalar_lea.hbm %s4345_s4, 2048 }
  0x7d   :  { %p3159_p0 = scmp.ne.s32.totalorder %s4345_s4, %s3158_s23  ;;  %p3162_p1 = scmp.lt.u32.totalorder %s3158_s23, %s4345_s4 }
  0x7f   :  { %p3164_p2 = pnand %p3162_p1, %p3159_p0 }
  0x81   :  { %3167 = shalt.err (!%p3164_p2)
}
  0x82   :  { %s3168_s24 = scalar_lea.vmem %s3479_s29, 2048  ;;  %p3173_p4 = scmp.lt.s32.totalorder %s3479_s29, %s3479_s29 }
  0x83   :  { %p3169_p3 = scmp.ne.s32.totalorder %s3479_s29, %s3168_s24  ;;  %p3174_p5 = scmp.lt.s32.totalorder %s3168_s24, %s3168_s24 }
  0x85   :  { %p3175_p6 = por %p3174_p5, %p3173_p4 }
  0x87   :  { %p3176_p7 = pnand %p3175_p6, %p3169_p3 }
  0x89   :  { %3179 = shalt.err (!%p3176_p7)
}
  0x8a   :  { %85 = dma.hbm_to_vmem [thread:$0]  %s4345_s4, 2048, %s3479_s29, [#allocation9], %s3307_s13, %s3307_s13, %s3308_s14  }
  0x8b   :  { %s3320_s1 = smov [#allocation13]   ;;  %s3321_s30 = smov [#allocation16]  }
  0x8c   :  { %s102_s22 = sshll.u32 %s3320_s1, 4  ;;  %s124_s7 = sshll.u32 %s3321_s30, 4  ;;  %s103_s22 = int_to_ptr.vmem [resolvable:$true] %s102_s22  ;;  %s125_s7 = int_to_ptr.vmem [resolvable:$true] %s124_s7 }
  0x8d   :  { %s3180_s5 = scalar_lea.hbm %s4347_s6, 16 }
  0x8e   :  { %p3181_p8 = scmp.ne.s32.totalorder %s4347_s6, %s3180_s5  ;;  %p3184_p9 = scmp.lt.u32.totalorder %s3180_s5, %s4347_s6 }
  0x90   :  { %p3186_p10 = pnand %p3184_p9, %p3181_p8 }
  0x92   :  { %3189 = shalt.err (!%p3186_p10)
}
  0x93   :  { %s3190_s4 = scalar_lea.vmem %s103_s22, 16  ;;  %s3194_s29 = scalar_lea.vmem %s103_s22, 32 }
  0x94   :  { %p3191_p11 = scmp.ne.s32.totalorder %s103_s22, %s3190_s4  ;;  %p3195_p12 = scmp.lt.s32.totalorder %s103_s22, %s103_s22 }
  0x95   :  { %p3196_p13 = scmp.lt.s32.totalorder %s3194_s29, %s3190_s4 }
  0x97   :  { %p3197_p0 = por %p3196_p13, %p3195_p12 }
  0x99   :  { %p3198_p1 = pnand %p3197_p0, %p3191_p11 }
  0x9b   :  { %3201 = shalt.err (!%p3198_p1)
}
  0x9c   :  { %105 = dma.hbm_to_vmem [thread:$0]  %s4347_s6, 16, %s103_s22, [#allocation12]  }
  0x9d   :  { %s3202_s25 = scalar_lea.hbm %s4349_s8, 80 }
  0x9e   :  { %p3203_p2 = scmp.ne.s32.totalorder %s4349_s8, %s3202_s25  ;;  %p3206_p3 = scmp.lt.u32.totalorder %s3202_s25, %s4349_s8 }
  0xa0   :  { %p3208_p4 = pnand %p3206_p3, %p3203_p2 }
  0xa2   :  { %3211 = shalt.err (!%p3208_p4)
}
  0xa3   :  { %s3212_s2 = scalar_lea.vmem %s125_s7, 80  ;;  %s3216_s28 = scalar_lea.vmem %s125_s7, 96 }
  0xa4   :  { %p3213_p5 = scmp.ne.s32.totalorder %s125_s7, %s3212_s2  ;;  %p3217_p6 = scmp.lt.s32.totalorder %s125_s7, %s125_s7 }
  0xa5   :  { %p3218_p7 = scmp.lt.s32.totalorder %s3216_s28, %s3212_s2 }
  0xa7   :  { %p3219_p8 = por %p3218_p7, %p3217_p6 }
  0xa9   :  { %p3220_p9 = pnand %p3219_p8, %p3213_p5 }
  0xab   :  { %3223 = shalt.err (!%p3220_p9)
}
  0xac   :  { %127 = dma.hbm_to_vmem [thread:$0]  %s4349_s8, 80, %s125_s7, [#allocation15]  }
  0xad   :  { %s3322_s22 = smov [#allocation19]   ;;  %s3224_s5 = scalar_lea.hbm %s4351_s10, 32 }
  0xae   :  { %s146_s30 = sshll.u32 %s3322_s22, 4  ;;  %p3225_p10 = scmp.ne.s32.totalorder %s4351_s10, %s3224_s5  ;;  %s147_s30 = int_to_ptr.vmem [resolvable:$true] %s146_s30 }
  0xaf   :  { %p3228_p11 = scmp.lt.u32.totalorder %s3224_s5, %s4351_s10 }
  0xb1   :  { %p3230_p12 = pnand %p3228_p11, %p3225_p10 }
  0xb3   :  { %3233 = shalt.err (!%p3230_p12)
}
  0xb4   :  { %s3234_s4 = scalar_lea.vmem %s147_s30, 32  ;;  %p3239_p0 = scmp.lt.s32.totalorder %s147_s30, %s147_s30 }
  0xb5   :  { %p3235_p13 = scmp.ne.s32.totalorder %s147_s30, %s3234_s4  ;;  %p3240_p1 = scmp.lt.s32.totalorder %s3234_s4, %s3234_s4 }
  0xb7   :  { %p3241_p2 = por %p3240_p1, %p3239_p0 }
  0xb9   :  { %p3242_p3 = pnand %p3241_p2, %p3235_p13 }
  0xbb   :  { %3245 = shalt.err (!%p3242_p3)
}
  0xbc   :  { %149 = dma.hbm_to_vmem [thread:$0]  %s4351_s10, 32, %s147_s30, [#allocation18]  }
  0xbd   :  { %3290 = dma.done.wait [#allocation3], 512  }
  0xbe   :  { %3291 = vsyncadd [#allocation3], 4294966784 }
  0xbf   :  { %3292 = dma.done.wait [#allocation6], 4352  }
  0xc0   :  { %3293 = vsyncadd [#allocation6], 4294962944 }
  0xc1   :  { %3294 = dma.done.wait [#allocation9], 6144  }
  0xc2   :  { %3295 = vsyncadd [#allocation9], 4294961152 }
  0xc3   :  { %3296 = dma.done.wait [#allocation12], 32  }
  0xc4   :  { %3297 = vsyncadd [#allocation12], 4294967264 }
  0xc5   :  { %3298 = dma.done.wait [#allocation15], 15440  }
  0xc6   :  { %3299 = vsyncadd [#allocation15], 4294951856 }
  0xc7   :  { %3300 = dma.done.wait [#allocation18], 4128  }
  0xc8   :  { %3301 = vsyncadd [#allocation18], 4294963168  ;;  %v187_v0 = vld [vmem:[#allocation10] sm:$0xff]  ;;  %v188_v1 = vld [vmem:[#allocation10 + $0x8] sm:$0xff]  ;;  %v3323_v26 = vmov 1966171168   ;;  %v323_v28 = vlaneseq }
  0xc9   :  { %v189_v2 = vld [vmem:[#allocation10 + $0x10] sm:$0xff]  ;;  %v2621_v3 = vpack.c.bf16 %v188_v1, %v187_v0  ;;  %v190_v4 = vld [vmem:[#allocation10 + $0x18] sm:$0xff]  ;;  %v191_v6 = vld [vmem:[#allocation10 + $0x20] sm:$0xff]  ;;  %v321_v27 = vunpack.c.l.s4 %v3323_v26  ;;  %vm707_vm0 = vcmask 130112   ;;  %vm844_vm1 = vcmask 1041409   ;;  %s3327_s10 = smov [#allocation21]  }
  0xca   :  { %v2625_v5 = vpack.c.bf16 %v190_v4, %v189_v2  ;;  %v192_v7 = vld [vmem:[#allocation10 + $0x28] sm:$0xff]  ;;  %v183_v9 = vld [vmem:[#allocation2] sm:$0xff]  ;;  %v194_v11 = vld [vmem:[#allocation10 + $0x38] sm:$0xff]  ;;  %v3553_v30 = vshrl.u32 %v323_v28, 7  ;;  %vm846_vm2 = vcmask 1042434   ;;  %vm848_vm3 = vcmask 1043459  }
  0xcb   :  { %2622 = vmatprep.subr.bf16.mxu0 %v2621_v3  ;;  %v2629_v8 = vpack.c.bf16 %v192_v7, %v191_v6  ;;  %v193_v10 = vld [vmem:[#allocation10 + $0x30] sm:$0xff]  ;;  %2618 = vmatprep.mubr.f32.mxu0 %v183_v9  ;;  %v195_v13 = vld [vmem:[#allocation10 + $0x40] sm:$0xff]  ;;  %v196_v14 = vld [vmem:[#allocation10 + $0x48] sm:$0xff]  ;;  %v322_v29 = vunpack.c.0.s8 %v321_v27  ;;  %vm850_vm4 = vcmask 1044484   ;;  %vm852_vm5 = vcmask 1045509   ;;  %s2533_s29 = sshll.u32 %s3327_s10, 4  ;;  %s2534_s29 = int_to_ptr.vmem [resolvable:$true] %s2533_s29 }
  0xcc   :  { %2624 = vmatpush3.bf16.msra.mxu0 %v2621_v3  ;;  %v2633_v12 = vpack.c.bf16 %v194_v11, %v193_v10  ;;  %v2637_v15 = vpack.c.bf16 %v196_v14, %v195_v13  ;;  %v197_v16 = vld [vmem:[#allocation10 + $0x50] sm:$0xff]  ;;  %v198_v17 = vld [vmem:[#allocation10 + $0x58] sm:$0xff]  ;;  %v199_v19 = vld [vmem:[#allocation10 + $0x60] sm:$0xff]  ;;  %v3560_v37 = vsub.s32 0, %v3553_v30  ;;  %vm854_vm6 = vcmask 1046534   ;;  %s3246_s27 = scalar_lea.vmem %s2534_s29, 256  ;;  %p3251_p5 = scmp.lt.s32.totalorder %s2534_s29, %s2534_s29 }
  0xcd   :  { %2626 = vmatprep.subr.bf16.mxu0 %v2625_v5  ;;  %v2641_v18 = vpack.c.bf16 %v198_v17, %v197_v16  ;;  %v200_v20 = vld [vmem:[#allocation10 + $0x68] sm:$0xff]  ;;  %v201_v22 = vld [vmem:[#allocation10 + $0x70] sm:$0xff]  ;;  %v202_v23 = vld [vmem:[#allocation10 + $0x78] sm:$0xff]  ;;  %v3556_v32 = vsub.s32 %v322_v29, %v3553_v30  ;;  %vm856_vm7 = vcmask 1047559   ;;  %vm867_vm8 = vcmask 130048   ;;  %p3247_p4 = scmp.ne.s32.totalorder %s2534_s29, %s3246_s27  ;;  %p3252_p6 = scmp.lt.s32.totalorder %s3246_s27, %s3246_s27 }
  0xce   :  { %v2645_v21 = vpack.c.bf16 %v200_v20, %v199_v19  ;;  %v2649_v24 = vpack.c.bf16 %v202_v23, %v201_v22  ;;  %v185_v25 = vld [vmem:[#allocation2 + $0x10] sm:$0xff]  ;;  %v302_v46 = vld [vmem:[#allocation8 + $0x88] sm:$0xff]  ;;  %v304_v50 = vld [vmem:[#allocation8 + $0x98] sm:$0xff]  ;;  %vm2069_vm9 = vcmask 523264  }
  0xcf   :  { %v2554_v31 = vld [vmem:[#allocation11] ss:$0 sm:$0xff]  ;;  %v306_v58 = vld [vmem:[#allocation8 + $0xa8] sm:$0xff]  ;;  %v3584_v9 = vld [vmem:[#allocation13] ss:$0 sm:$0xff]  ;;  %p3253_p7 = por %p3252_p6, %p3251_p5 }
  0xd0   :  { %2628 = vmatpush3.bf16.msra.mxu0 %v2625_v5  ;;  %v301_v43 = vld [vmem:[#allocation8 + $0x80] sm:$0xff]  ;;  %v310_v62 = vld [vmem:[#allocation8 + $0xc8] sm:$0xff]  ;;  %v303_v5 = vld [vmem:[#allocation8 + $0x90] sm:$0xff] }
  0xd1   :  { %2630 = vmatprep.subr.bf16.mxu0 %v2629_v8  ;;  %v285_v61 = vld [vmem:[#allocation8] sm:$0xff]  ;;  %v286_v1 = vld [vmem:[#allocation8 + $0x8] sm:$0xff]  ;;  %v288_v19 = vld [vmem:[#allocation8 + $0x18] sm:$0xff]  ;;  %p3254_p8 = pnand %p3253_p7, %p3247_p4 }
  0xd2   :  { %v305_v14 = vld [vmem:[#allocation8 + $0xa0] sm:$0xff]  ;;  %v290_v29 = vld [vmem:[#allocation8 + $0x28] sm:$0xff] }
  0xd3   :  { %v309_v23 = vld [vmem:[#allocation8 + $0xc0] sm:$0xff] }
  0xd4   :  { %2632 = vmatpush3.bf16.msra.mxu0 %v2629_v8  ;;  %v287_v8 = vld [vmem:[#allocation8 + $0x10] sm:$0xff] }
  0xd5   :  { %2634 = vmatprep.subr.bf16.mxu0 %v2633_v12 }
  0xd8   :  { %2636 = vmatpush3.bf16.msra.mxu0 %v2633_v12 }
  0xd9   :  { %2638 = vmatprep.subr.bf16.mxu0 %v2637_v15 }
  0xdc   :  { %2640 = vmatpush3.bf16.msra.mxu0 %v2637_v15 }
  0xdd   :  { %2642 = vmatprep.subr.bf16.mxu0 %v2641_v18 }
  0xe0   :  { %2644 = vmatpush3.bf16.msra.mxu0 %v2641_v18 }
  0xe1   :  { %2646 = vmatprep.subr.bf16.mxu0 %v2645_v21 }
  0xe4   :  { %2648 = vmatpush3.bf16.msra.mxu0 %v2645_v21 }
  0xe5   :  { %2650 = vmatprep.subr.bf16.mxu0 %v2649_v24 }
  0xe8   :  { %2652 = vmatpush3.bf16.msra.mxu0 %v2649_v24 }
  0xeb   :  { %2619 = vmatmul.mubr.f32.vlgmr.msra.gmra.mrb[0].mxu0 %v185_v25 }
 0x1be   :  { %v2620_v33 = vpop.f32.mrb[0].mxu0 }
 0x1bf   :  { %v282_v34 = vadd.f32 %v2620_v33, %v2554_v31  ;;  %v276_v35 = vpop.f32.mrb[1].mxu0 }
 0x1c0   :  { %v277_v38 = vadd.f32 %v2554_v31, %v276_v35 }
 0x1c1   :  { %v375_v36 = vrot.slane %v282_v34, %v3556_v32  ;;  %v368_v39 = vcombine.high %v282_v34, %v282_v34 }
 0x1c2   :  { %v326_v45 = vrot.slane %v277_v38, %v3556_v32  ;;  %v319_v4 = vcombine.high %v277_v38, %v277_v38  ;;  %v289_v38 = vld [vmem:[#allocation8 + $0x20] sm:$0xff] }
 0x1c3   :  { %v383_v40 = vcombine.high %v375_v36, %v375_v36  ;;  %v391_v41 = vrot.slane %v375_v36, %v3556_v32  ;;  %v382_v47 = vrot.slane %v368_v39, %v3556_v32 }
 0x1c4   :  { %v342_v53 = vrot.slane %v326_v45, %v3556_v32  ;;  %v334_v57 = vcombine.high %v326_v45, %v326_v45  ;;  %v3587_v12 = vrot.slane %v319_v4, %v3556_v32 }
 0x1c5   :  { %v3564_v42 = vrot.slane %v383_v40, %v3556_v32  ;;  %v452_v44 = vrot.slane %v391_v41, %v3560_v37  ;;  %v413_v48 = vcombine.high %v391_v41, %v391_v41  ;;  %v3573_v54 = vrot.slane %v382_v47, %v3556_v32 }
 0x1c6   :  { %v420_v59 = vrot.slane %v342_v53, %v3560_v37  ;;  %v3580_v0 = vrot.slane %v334_v57, %v3556_v32  ;;  %v364_v15 = vcombine.high %v342_v53, %v342_v53  ;;  %v384_v18 = vcombine.high %v382_v47, %v382_v47 }
 0x1c7   :  { %v456_v49 = vrot.slane %v3564_v42, %v3560_v37  ;;  %v513_v51 = vadd.f32 %v452_v44, %v301_v43  ;;  %v514_v52 = vadd.f32 %v452_v44, %v302_v46  ;;  %v460_v55 = vrot.slane %v413_v48, %v3560_v37  ;;  %v294_v44 = vld [vmem:[#allocation8 + $0x48] sm:$0xff] }
 0x1c8   :  { %v468_v60 = vrot.slane %v3573_v54, %v3560_v37  ;;  %v497_v2 = vadd.f32 %v420_v59, %v285_v61  ;;  %v424_v6 = vrot.slane %v3580_v0, %v3560_v37  ;;  %v498_v7 = vadd.f32 %v420_v59, %v286_v1 }
 0x1c9   :  { %v516_v56 = vadd.f32 %v456_v49, %v304_v50  ;;  %2842 = vtanh.f32 %v513_v51  ;;  %v518_v63 = vadd.f32 %v460_v55, %v306_v58  ;;  %v515_v11 = vadd.f32 %v456_v49, %v303_v5  ;;  %v293_v49 = vld [vmem:[#allocation8 + $0x40] sm:$0xff]  ;;  %v315_v58 = vld [vmem:[#allocation8 + $0xf0] sm:$0xff] }
 0x1ca   :  { %2844 = vtanh.f32 %v514_v52  ;;  %v522_v3 = vadd.f32 %v468_v60, %v310_v62  ;;  %v499_v16 = vadd.f32 %v424_v6, %v287_v8  ;;  %v517_v22 = vadd.f32 %v460_v55, %v305_v14  ;;  %v308_v52 = vld [vmem:[#allocation8 + $0xb8] sm:$0xff] }
 0x1cb   :  { %2846 = vtanh.f32 %v516_v56  ;;  %v3593_v24 = vrot.slane %v3587_v12, %v3556_v32  ;;  %v428_v25 = vrot.slane %v364_v15, %v3560_v37  ;;  %v500_v26 = vadd.f32 %v424_v6, %v288_v19  ;;  %v314_v15 = vld [vmem:[#allocation8 + $0xe8] sm:$0xff]  ;;  %v313_v19 = vld [vmem:[#allocation8 + $0xe0] sm:$0xff] }
 0x1cc   :  { %2848 = vtanh.f32 %v518_v63  ;;  %v412_v27 = vrot.slane %v384_v18, %v3556_v32  ;;  %v521_v34 = vadd.f32 %v468_v60, %v309_v23  ;;  %v415_v36 = vcombine.high %v3564_v42, %v3564_v42  ;;  %v307_v60 = vld [vmem:[#allocation8 + $0xb0] sm:$0xff]  ;;  %v292_v23 = vld [vmem:[#allocation8 + $0x38] sm:$0xff] }
 0x1cd   :  { %2850 = vtanh.f32 %v497_v2  ;;  %v436_v39 = vrot.slane %v3593_v24, %v3560_v37  ;;  %v502_v40 = vadd.f32 %v428_v25, %v290_v29  ;;  %v501_v48 = vadd.f32 %v428_v25, %v289_v38  ;;  %v312_v2 = vld [vmem:[#allocation8 + $0xd8] sm:$0xff] }
 0x1ce   :  { %2852 = vtanh.f32 %v522_v3  ;;  %v416_v43 = vcombine.high %v412_v27, %v412_v27  ;;  %v464_v42 = vrot.slane %v415_v36, %v3560_v37  ;;  %v414_v61 = vcombine.high %v3573_v54, %v3573_v54  ;;  %v311_v54 = vld [vmem:[#allocation8 + $0xd0] sm:$0xff]  ;;  %v296_v36 = vld [vmem:[#allocation8 + $0x58] sm:$0xff] }
 0x1cf   :  { %2854 = vtanh.f32 %v498_v7  ;;  %v506_v50 = vadd.f32 %v436_v39, %v294_v44  ;;  %v505_v59 = vadd.f32 %v436_v39, %v293_v49  ;;  %v472_v62 = vrot.slane %v412_v27, %v3560_v37 }
 0x1d0   :  { %2856 = vtanh.f32 %v515_v11  ;;  %v3606_v53 = vrot.slane %v416_v43, %v3560_v37  ;;  %v520_v63 = vadd.f32 %v464_v42, %v308_v52  ;;  %v519_v7 = vadd.f32 %v464_v42, %v307_v60  ;;  %v298_v42 = vld [vmem:[#allocation8 + $0x68] sm:$0xff] }
 0x1d1   :  { %2858 = vtanh.f32 %v499_v16  ;;  %v335_v8 = vcombine.high %v3587_v12, %v3587_v12  ;;  %v524_v11 = vadd.f32 %v472_v62, %v312_v2  ;;  %v523_v12 = vadd.f32 %v472_v62, %v311_v54  ;;  %v299_v2 = vld [vmem:[#allocation8 + $0x70] sm:$0xff] }
 0x1d2   :  { %2860 = vtanh.f32 %v517_v22  ;;  %v527_v5 = vadd.f32 %v3606_v53, %v315_v58 }
 0x1d3   :  { %v2843_v10 = vpop.eup %2842  ;;  %2862 = vtanh.f32 %v500_v26 }
 0x1d4   :  { %v2845_v13 = vpop.eup %2844  ;;  %v584_v17 = vmul.f32 %v2843_v10, %v3584_v9  ;;  %2864 = vtanh.f32 %v521_v34  ;;  %v476_v10 = vrot.slane %v414_v61, %v3560_v37  ;;  %v300_v61 = vld [vmem:[#allocation8 + $0x78] sm:$0xff] }
 0x1d5   :  { %v585_v20 = vmul.f32 %v2845_v13, %v3584_v9  ;;  %v2847_v21 = vpop.eup %2846  ;;  %2866 = vtanh.f32 %v502_v40  ;;  %v366_v13 = vcombine.high %v3580_v0, %v3580_v0 }
 0x1d6   :  { %632 = vadd.xlane.f32.xlu0 %v584_v17  ;;  %v587_v31 = vmul.f32 %v2847_v21, %v3584_v9  ;;  %v2849_v33 = vpop.eup %2848  ;;  %2868 = vtanh.f32 %v501_v48  ;;  %v363_v21 = vrot.slane %v335_v8, %v3556_v32  ;;  %v525_v29 = vadd.f32 %v476_v10, %v313_v19 }
 0x1d7   :  { %634 = vadd.xlane.f32.xlu1 %v585_v20  ;;  %v2851_v35 = vpop.eup %2850  ;;  %v589_v46 = vmul.f32 %v2849_v33, %v3584_v9  ;;  %2870 = vtanh.f32 %v506_v50  ;;  %v526_v20 = vadd.f32 %v476_v10, %v314_v15  ;;  %v432_v22 = vrot.slane %v366_v13, %v3560_v37 }
 0x1d8   :  { %v2853_v41 = vpop.eup %2852  ;;  %v568_v45 = vmul.f32 %v2851_v35, %v3584_v9  ;;  %2872 = vtanh.f32 %v505_v59  ;;  %v365_v33 = vcombine.high %v3593_v24, %v3593_v24  ;;  %v440_v32 = vrot.slane %v363_v21, %v3560_v37 }
 0x1d9   :  { %v2855_v47 = vpop.eup %2854  ;;  %v593_v56 = vmul.f32 %v2853_v41, %v3584_v9  ;;  %2874 = vtanh.f32 %v520_v63  ;;  %v504_v34 = vadd.f32 %v432_v22, %v292_v23  ;;  %v367_v43 = vcombine.high %v363_v21, %v363_v21 }
 0x1da   :  { %600 = vadd.xlane.f32.xlu0 %v568_v45  ;;  %v2857_v51 = vpop.eup %2856  ;;  %v569_v55 = vmul.f32 %v2855_v47, %v3584_v9  ;;  %2876 = vtanh.f32 %v527_v5  ;;  %v295_v45 = vld [vmem:[#allocation8 + $0x50] sm:$0xff]  ;;  %v444_v24 = vrot.slane %v365_v33, %v3560_v37 }
 0x1db   :  { %638 = vadd.xlane.f32.xlu1 %v587_v31  ;;  %v2859_v57 = vpop.eup %2858  ;;  %v586_v3 = vmul.f32 %v2857_v51, %v3584_v9  ;;  %2878 = vtanh.f32 %v519_v7  ;;  %v291_v31 = vld [vmem:[#allocation8 + $0x30] sm:$0xff]  ;;  %v507_v52 = vadd.f32 %v440_v32, %v295_v45 }
 0x1dc   :  { %v2861_v1 = vpop.eup %2860  ;;  %v570_v4 = vmul.f32 %v2859_v57, %v3584_v9  ;;  %2880 = vtanh.f32 %v524_v11  ;;  %v503_v44 = vadd.f32 %v432_v22, %v291_v31  ;;  %v510_v57 = vadd.f32 %v444_v24, %v298_v42 }
 0x1dd   :  { %v2863_v6 = vpop.eup %2862  ;;  %v588_v16 = vmul.f32 %v2861_v1, %v3584_v9  ;;  %2882 = vtanh.f32 %v523_v12 }
 0x1de   :  { %602 = vadd.xlane.f32.xlu0 %v569_v55  ;;  %v2865_v14 = vpop.eup %2864  ;;  %v571_v17 = vmul.f32 %v2863_v6, %v3584_v9  ;;  %2884 = vtanh.f32 %v526_v20  ;;  %v297_v55 = vld [vmem:[#allocation8 + $0x60] sm:$0xff]  ;;  %v316_v6 = vld [vmem:[#allocation8 + $0xf8] sm:$0xff] }
 0x1df   :  { %642 = vadd.xlane.f32.xlu1 %v589_v46  ;;  %v2867_v18 = vpop.eup %2866  ;;  %v592_v25 = vmul.f32 %v2865_v14, %v3584_v9  ;;  %2886 = vtanh.f32 %v525_v29  ;;  %v508_v46 = vadd.f32 %v440_v32, %v296_v36  ;;  %v509_v63 = vadd.f32 %v444_v24, %v297_v55 }
 0x1e0   :  { %v2869_v0 = vpop.eup %2868  ;;  %v573_v26 = vmul.f32 %v2867_v18, %v3584_v9  ;;  %2888 = vtanh.f32 %v504_v34  ;;  %v528_v54 = vadd.f32 %v3606_v53, %v316_v6 }
 0x1e1   :  { %v2871_v27 = vpop.eup %2870  ;;  %v572_v38 = vmul.f32 %v2869_v0, %v3584_v9  ;;  %2890 = vtanh.f32 %v503_v44 }
 0x1e2   :  { %636 = vadd.xlane.f32.xlu0 %v586_v3  ;;  %v2873_v35 = vpop.eup %2872  ;;  %v577_v39 = vmul.f32 %v2871_v27, %v3584_v9  ;;  %2892 = vtanh.f32 %v508_v46 }
 0x1e3   :  { %650 = vadd.xlane.f32.xlu1 %v593_v56  ;;  %v2875_v40 = vpop.eup %2874  ;;  %v576_v49 = vmul.f32 %v2873_v35, %v3584_v9  ;;  %v448_v56 = vrot.slane %v367_v43, %v3560_v37  ;;  %2894 = vtanh.f32 %v507_v52 }
 0x1e4   :  { %v2877_v41 = vpop.eup %2876  ;;  %v591_v50 = vmul.f32 %v2875_v40, %v3584_v9  ;;  %2896 = vtanh.f32 %v510_v57 }
 0x1e5   :  { %v3634_v47 = vmul.f32 %v2877_v41, %v3584_v9  ;;  %v2879_v48 = vpop.eup %2878  ;;  %v512_v1 = vadd.f32 %v448_v56, %v300_v61  ;;  %2898 = vtanh.f32 %v509_v63  ;;  %v511_v8 = vadd.f32 %v448_v56, %v299_v2 }
 0x1e6   :  { %640 = vadd.xlane.f32.xlu0 %v588_v16  ;;  %v2881_v51 = vpop.eup %2880  ;;  %v590_v59 = vmul.f32 %v2879_v48, %v3584_v9  ;;  %v697_v48 = vand.u32 127, %v323_v28 }
 0x1e7   :  { %604 = vadd.xlane.f32.xlu1 %v570_v4  ;;  %v2883_v58 = vpop.eup %2882  ;;  %v595_v60 = vmul.f32 %v2881_v51, %v3584_v9  ;;  %2900 = vtanh.f32 %v512_v1 }
 0x1e8   :  { %v2885_v62 = vpop.eup %2884  ;;  %v594_v4 = vmul.f32 %v2883_v58, %v3584_v9  ;;  %2902 = vtanh.f32 %v511_v8  ;;  %v3703_v55 = vsub.s32 %v697_v48, %v3553_v30 }
 0x1e9   :  { %v2887_v3 = vpop.eup %2886  ;;  %v597_v5 = vmul.f32 %v2885_v62, %v3584_v9  ;;  %2904 = vtanh.f32 %v528_v54 }
 0x1ea   :  { %648 = vadd.xlane.f32.xlu0 %v592_v25  ;;  %v2889_v7 = vpop.eup %2888  ;;  %v596_v11 = vmul.f32 %v2887_v3, %v3584_v9 }
 0x1eb   :  { %606 = vadd.xlane.f32.xlu1 %v571_v17  ;;  %v2891_v10 = vpop.eup %2890  ;;  %v575_v13 = vmul.f32 %v2889_v7, %v3584_v9 }
 0x1ec   :  { %v2893_v14 = vpop.eup %2892  ;;  %v574_v16 = vmul.f32 %v2891_v10, %v3584_v9 }
 0x1ed   :  { %v2895_v15 = vpop.eup %2894  ;;  %v579_v17 = vmul.f32 %v2893_v14, %v3584_v9 }
 0x1ee   :  { %608 = vadd.xlane.f32.xlu0 %v572_v38  ;;  %v2897_v18 = vpop.eup %2896  ;;  %v578_v53 = vmul.f32 %v2895_v15, %v3584_v9 }
 0x1ef   :  { %610 = vadd.xlane.f32.xlu1 %v573_v26  ;;  %v2899_v12 = vpop.eup %2898  ;;  %v581_v19 = vmul.f32 %v2897_v18, %v3584_v9 }
 0x1f0   :  { %v580_v22 = vmul.f32 %v2899_v12, %v3584_v9 }
 0x1f1   :  { %v2901_v20 = vpop.eup %2900 }
 0x1f2   :  { %616 = vadd.xlane.f32.xlu0 %v576_v49  ;;  %v2903_v21 = vpop.eup %2902  ;;  %v583_v0 = vmul.f32 %v2901_v20, %v3584_v9 }
 0x1f3   :  { %618 = vadd.xlane.f32.xlu1 %v577_v39  ;;  %v2905_v23 = vpop.eup %2904  ;;  %v582_v25 = vmul.f32 %v2903_v21, %v3584_v9 }
 0x1f4   :  { %v599_v26 = vmul.f32 %v2905_v23, %v3584_v9 }
 0x1f6   :  { %644 = vadd.xlane.f32.xlu0 %v590_v59 }
 0x1f7   :  { %646 = vadd.xlane.f32.xlu1 %v591_v50  ;;  %v702_v50 = vadd.s32 4294967288, %v697_v48 }
 0x1f9   :  { %v3706_v56 = vsub.s32 %v702_v50, %v3553_v30 }
 0x1fa   :  { %652 = vadd.xlane.f32.xlu0 %v594_v4 }
 0x1fb   :  { %654 = vadd.xlane.f32.xlu1 %v595_v60 }
 0x1fe   :  { %656 = vadd.xlane.f32.xlu0 %v596_v11 }
 0x1ff   :  { %658 = vadd.xlane.f32.xlu1 %v597_v5 }
 0x202   :  { %612 = vadd.xlane.f32.xlu0 %v574_v16 }
 0x203   :  { %614 = vadd.xlane.f32.xlu1 %v575_v13 }
 0x206   :  { %620 = vadd.xlane.f32.xlu0 %v578_v53 }
 0x207   :  { %622 = vadd.xlane.f32.xlu1 %v579_v17 }
 0x20a   :  { %624 = vadd.xlane.f32.xlu0 %v580_v22 }
 0x20b   :  { %626 = vadd.xlane.f32.xlu1 %v581_v19 }
 0x20e   :  { %628 = vadd.xlane.f32.xlu0 %v582_v25 }
 0x20f   :  { %630 = vadd.xlane.f32.xlu1 %v583_v0 }
 0x212   :  { %660 = vadd.xlane.f32.xlu0 %v3634_v47 }
 0x213   :  { %662 = vadd.xlane.f32.xlu1 %v599_v26 }
 0x263   :  { %v3657_v29 = vpop.xlane.xlu0 %632 }
 0x264   :  { %v3655_v27 = vpop.xlane.xlu1 %634  ;;  %v775_v59 = vrot.slane %v3657_v29, %v3703_v55 }
 0x265   :  { %v779_v28 = vrot.slane %v3655_v27, %v3706_v56 }
 0x267   :  { %v3661_v33 = vpop.xlane.xlu0 %600  ;;  %v780_v54 = vsel %vm707_vm0, %v779_v28, %v775_v59 }
 0x268   :  { %v3659_v31 = vpop.xlane.xlu1 %638  ;;  %v701_v2 = vrot.slane %v3661_v33, %v3703_v55 }
 0x269   :  { %v788_v6 = vrot.slane %v3659_v31, %v3706_v56 }
 0x26b   :  { %v3665_v34 = vpop.xlane.xlu0 %602 }
 0x26c   :  { %v3663_v32 = vpop.xlane.xlu1 %642  ;;  %v706_v60 = vrot.slane %v3665_v34, %v3706_v56 }
 0x26d   :  { %v797_v10 = vrot.slane %v3663_v32, %v3706_v56 }
 0x26e   :  { %v708_v11 = vsel %vm707_vm0, %v706_v60, %v701_v2 }
 0x26f   :  { %v3669_v36 = vpop.xlane.xlu0 %636 }
 0x270   :  { %v3667_v35 = vpop.xlane.xlu1 %650  ;;  %v784_v62 = vrot.slane %v3669_v36, %v3703_v55 }
 0x272   :  { %v789_v14 = vsel %vm707_vm0, %v788_v6, %v784_v62 }
 0x273   :  { %v3673_v38 = vpop.xlane.xlu0 %640  ;;  %v858_v26 = vsel %vm844_vm1, %v789_v14, %v780_v54 }
 0x274   :  { %v3671_v9 = vpop.xlane.xlu1 %604  ;;  %v793_v15 = vrot.slane %v3673_v38, %v3703_v55 }
 0x275   :  { %v712_v3 = vrot.slane %v3671_v9, %v3703_v55 }
 0x276   :  { %v798_v28 = vsel %vm707_vm0, %v797_v10, %v793_v15  ;;  %v815_v15 = vrot.slane %v3667_v35, %v3706_v56 }
 0x277   :  { %v3677_v40 = vpop.xlane.xlu0 %648 }
 0x278   :  { %v3675_v39 = vpop.xlane.xlu1 %606  ;;  %v811_v59 = vrot.slane %v3677_v40, %v3703_v55 }
 0x279   :  { %v716_v61 = vrot.slane %v3675_v39, %v3706_v56 }
 0x27b   :  { %v3681_v43 = vpop.xlane.xlu0 %608  ;;  %v717_v13 = vsel %vm707_vm0, %v716_v61, %v712_v3 }
 0x27c   :  { %v3679_v41 = vpop.xlane.xlu1 %610  ;;  %v721_v63 = vrot.slane %v3681_v43, %v3703_v55  ;;  %v845_v20 = vsel %vm844_vm1, %v717_v13, %v708_v11  ;;  %v859_v11 = vsel %vm846_vm2, %v798_v28, %v858_v26 }
 0x27d   :  { %v725_v1 = vrot.slane %v3679_v41, %v3706_v56 }
 0x27f   :  { %v3685_v45 = vpop.xlane.xlu0 %616  ;;  %v726_v16 = vsel %vm707_vm0, %v725_v1, %v721_v63 }
 0x280   :  { %v3683_v44 = vpop.xlane.xlu1 %618  ;;  %v739_v22 = vrot.slane %v3685_v45, %v3703_v55  ;;  %v847_v48 = vsel %vm846_vm2, %v726_v16, %v845_v20  ;;  %v816_v20 = vsel %vm707_vm0, %v815_v15, %v811_v59 }
 0x281   :  { %v743_v21 = vrot.slane %v3683_v44, %v3706_v56 }
 0x283   :  { %v3689_v46 = vpop.xlane.xlu0 %644  ;;  %v744_v3 = vsel %vm707_vm0, %v743_v21, %v739_v22 }
 0x284   :  { %v3687_v24 = vpop.xlane.xlu1 %646  ;;  %v802_v18 = vrot.slane %v3689_v46, %v3703_v55 }
 0x285   :  { %v806_v17 = vrot.slane %v3687_v24, %v3706_v56 }
 0x287   :  { %v3694_v42 = vpop.xlane.xlu0 %652  ;;  %v807_v62 = vsel %vm707_vm0, %v806_v17, %v802_v18 }
 0x288   :  { %v3691_v47 = vpop.xlane.xlu1 %654  ;;  %v820_v63 = vrot.slane %v3694_v42, %v3703_v55  ;;  %v860_v16 = vsel %vm848_vm3, %v807_v62, %v859_v11  ;;  %v3834_v11 = vsub.s32 2, %v3553_v30 }
 0x289   :  { %v824_v60 = vrot.slane %v3691_v47, %v3706_v56 }
 0x28b   :  { %v3698_v51 = vpop.xlane.xlu0 %656  ;;  %v825_v18 = vsel %vm707_vm0, %v824_v60, %v820_v63  ;;  %v3324_v63 = vmov 0  }
 0x28c   :  { %v3696_v49 = vpop.xlane.xlu1 %658  ;;  %2841 = vset.pattern.permute.xlu0 %v3324_v63  ;;  %2840 = vset.pattern.permute.xlu1 %v3324_v63 }
 0x28f   :  { %v3708_v57 = vpop.xlane.xlu0 %612 }
 0x290   :  { %v3700_v52 = vpop.xlane.xlu1 %614  ;;  %v730_v5 = vrot.slane %v3708_v57, %v3703_v55 }
 0x291   :  { %v734_v4 = vrot.slane %v3700_v52, %v3706_v56 }
 0x293   :  { %v3736_v7 = vpop.xlane.xlu0 %620  ;;  %v735_v12 = vsel %vm707_vm0, %v734_v4, %v730_v5  ;;  %v833_v4 = vrot.slane %v3696_v49, %v3706_v56  ;;  %v829_v5 = vrot.slane %v3698_v51, %v3703_v55 }
 0x294   :  { %v3710_v58 = vpop.xlane.xlu1 %622  ;;  %v748_v19 = vrot.slane %v3736_v7, %v3703_v55  ;;  %v849_v61 = vsel %vm848_vm3, %v735_v12, %v847_v48 }
 0x295   :  { %v752_v53 = vrot.slane %v3710_v58, %v3706_v56  ;;  %v851_v14 = vsel %vm850_vm4, %v744_v3, %v849_v61  ;;  %v3827_v3 = vsub.s32 1, %v3553_v30 }
 0x297   :  { %v3765_v23 = vpop.xlane.xlu0 %624  ;;  %v753_v1 = vsel %vm707_vm0, %v752_v53, %v748_v19 }
 0x298   :  { %v3738_v8 = vpop.xlane.xlu1 %626  ;;  %v757_v50 = vrot.slane %v3765_v23, %v3703_v55  ;;  %v853_v17 = vsel %vm852_vm5, %v753_v1, %v851_v14 }
 0x299   :  { %v761_v0 = vrot.slane %v3738_v8, %v3706_v56 }
 0x29b   :  { %v3790_v6 = vpop.xlane.xlu0 %628  ;;  %v762_v10 = vsel %vm707_vm0, %v761_v0, %v757_v50  ;;  %v834_v0 = vsel %vm707_vm0, %v833_v4, %v829_v5  ;;  %v861_v50 = vsel %vm850_vm4, %v816_v20, %v860_v16 }
 0x29c   :  { %v3767_v25 = vpop.xlane.xlu1 %630  ;;  %v766_v13 = vrot.slane %v3790_v6, %v3703_v55  ;;  %v855_v19 = vsel %vm854_vm6, %v762_v10, %v853_v17  ;;  %v862_v28 = vsel %vm852_vm5, %v825_v18, %v861_v50  ;;  %v3841_v18 = vsub.s32 3, %v3553_v30 }
 0x29d   :  { %v770_v2 = vrot.slane %v3767_v25, %v3706_v56  ;;  %v863_v59 = vsel %vm854_vm6, %v834_v0, %v862_v28 }
 0x29f   :  { %v771_v53 = vsel %vm707_vm0, %v770_v2, %v766_v13  ;;  %v3809_v21 = vpop.xlane.xlu0 %660 }
 0x2a0   :  { %v3792_v54 = vpop.xlane.xlu1 %662  ;;  %v857_v22 = vsel %vm856_vm7, %v771_v53, %v855_v19  ;;  %v838_v26 = vrot.slane %v3809_v21, %v3703_v55 }
 0x2a1   :  { %v842_v12 = vrot.slane %v3792_v54, %v3706_v56  ;;  %v868_v48 = vsel %vm867_vm8, %v857_v22, -inf }
 0x2a2   :  { %869 = vmax.xlane.f32.xlu0 %v868_v48 }
 0x2a3   :  { %v843_v60 = vsel %vm707_vm0, %v842_v12, %v838_v26  ;;  %v3855_v26 = vsub.s32 5, %v3553_v30 }
 0x2a4   :  { %v864_v61 = vsel %vm856_vm7, %v843_v60, %v863_v59 }
 0x2a5   :  { %v871_v62 = vsel %vm867_vm8, %v864_v61, -inf }
 0x2a6   :  { %872 = vmax.xlane.f32.xlu1 %v871_v62 }
 0x333   :  { %v3822_v1 = vpop.xlane.xlu1 %872 }
 0x334   :  { %v911_v2 = vrot.slane %v3822_v1, %v3560_v37  ;;  %v915_v4 = vrot.slane %v3822_v1, %v3827_v3  ;;  %v919_v13 = vrot.slane %v3822_v1, %v3834_v11 }
 0x336   :  { %v972_v5 = vsub.f32 %v3657_v29, %v911_v2  ;;  %v973_v10 = vsub.f32 %v3655_v27, %v911_v2  ;;  %v974_v14 = vsub.f32 %v3669_v36, %v915_v4  ;;  %v975_v16 = vsub.f32 %v3659_v31, %v915_v4 }
 0x337   :  { %v923_v29 = vrot.slane %v3822_v1, %v3841_v18  ;;  %v976_v27 = vsub.f32 %v3673_v38, %v919_v13  ;;  %v977_v53 = vsub.f32 %v3663_v32, %v919_v13  ;;  %v3848_v36 = vsub.s32 4, %v3553_v30 }
 0x338   :  { %v1020_v15 = vmul.f32 1.442695, %v972_v5  ;;  %v1022_v17 = vmul.f32 1.442695, %v973_v10  ;;  %v1024_v12 = vmul.f32 1.442695, %v974_v14  ;;  %v931_v32 = vrot.slane %v3822_v1, %v3855_v26 }
 0x339   :  { %v1026_v19 = vmul.f32 1.442695, %v975_v16  ;;  %v927_v31 = vrot.slane %v3822_v1, %v3848_v36  ;;  %v978_v20 = vsub.f32 %v3689_v46, %v923_v29  ;;  %v1028_v22 = vmul.f32 1.442695, %v976_v27 }
 0x33a   :  { %2906 = vpow2.f32 %v1020_v15  ;;  %v979_v0 = vsub.f32 %v3687_v24, %v923_v29  ;;  %v1030_v38 = vmul.f32 1.442695, %v977_v53  ;;  %v3864_v24 = vsub.s32 6, %v3553_v30 }
 0x33b   :  { %2908 = vpow2.f32 %v1022_v17  ;;  %v980_v48 = vsub.f32 %v3677_v40, %v927_v31  ;;  %v1032_v50 = vmul.f32 1.442695, %v978_v20  ;;  %v981_v28 = vsub.f32 %v3667_v35, %v927_v31  ;;  %v3873_v35 = vpop.xlane.xlu0 %869 }
 0x33c   :  { %2910 = vpow2.f32 %v1024_v12  ;;  %v1034_v46 = vmul.f32 1.442695, %v979_v0  ;;  %v935_v61 = vrot.slane %v3822_v1, %v3864_v24  ;;  %v982_v40 = vsub.f32 %v3694_v42, %v931_v32 }
 0x33d   :  { %2912 = vpow2.f32 %v1026_v19  ;;  %v1036_v62 = vmul.f32 1.442695, %v980_v48  ;;  %v983_v63 = vsub.f32 %v3691_v47, %v931_v32  ;;  %v1038_v2 = vmul.f32 1.442695, %v981_v28 }
 0x33e   :  { %2914 = vpow2.f32 %v1028_v22  ;;  %v879_v10 = vrot.slane %v3873_v35, %v3560_v37  ;;  %v984_v42 = vsub.f32 %v3698_v51, %v935_v61  ;;  %v1040_v13 = vmul.f32 1.442695, %v982_v40 }
 0x33f   :  { %2916 = vpow2.f32 %v1030_v38  ;;  %v985_v14 = vsub.f32 %v3696_v49, %v935_v61  ;;  %v1042_v47 = vmul.f32 1.442695, %v983_v63  ;;  %v883_v17 = vrot.slane %v3873_v35, %v3827_v3 }
 0x340   :  { %2918 = vpow2.f32 %v1032_v50  ;;  %v957_v29 = vsub.f32 %v3665_v34, %v879_v10  ;;  %v1044_v51 = vmul.f32 1.442695, %v984_v42  ;;  %v3897_v49 = vrot.slane %v3873_v35, %v3848_v36 }
 0x341   :  { %2920 = vpow2.f32 %v1034_v46  ;;  %v956_v27 = vsub.f32 %v3661_v33, %v879_v10  ;;  %v1046_v12 = vmul.f32 1.442695, %v985_v14  ;;  %v958_v34 = vsub.f32 %v3671_v9, %v883_v17 }
 0x342   :  { %2922 = vpow2.f32 %v1036_v62  ;;  %v990_v31 = vmul.f32 1.442695, %v957_v29  ;;  %v3909_v20 = vrot.slane %v3873_v35, %v3855_v26  ;;  %v965_v33 = vsub.f32 %v3683_v44, %v3897_v49 }
 0x343   :  { %2924 = vpow2.f32 %v1038_v2  ;;  %v988_v22 = vmul.f32 1.442695, %v956_v27  ;;  %v3918_v32 = vsub.s32 7, %v3553_v30  ;;  %v887_v9 = vrot.slane %v3873_v35, %v3834_v11 }
 0x344   :  { %v3861_v60 = vpop.eup %2906  ;;  %2926 = vpow2.f32 %v1040_v13  ;;  %v959_v48 = vsub.f32 %v3675_v39, %v883_v17  ;;  %v992_v50 = vmul.f32 1.442695, %v958_v34  ;;  %v3927_v44 = vrot.slane %v3873_v35, %v3864_v24 }
 0x345   :  { %v3866_v59 = vpop.eup %2908  ;;  %1133 = vperm.xlu1 %2840, %v3861_v60   ;;  %2928 = vpow2.f32 %v1042_v47  ;;  %4370 = vst [vmem:[#allocation31_spill] sm:$0xff] %v3918_v32  ;;  %v967_v28 = vsub.f32 %v3710_v58, %v3909_v20  ;;  %v1006_v30 = vmul.f32 1.442695, %v965_v33  ;;  %v960_v39 = vsub.f32 %v3681_v43, %v887_v9 }
 0x346   :  { %1136 = vperm.xlu0 %2841, %v3866_v59   ;;  %v3876_v4 = vpop.eup %2910  ;;  %2930 = vpow2.f32 %v1044_v51  ;;  %v994_v40 = vmul.f32 1.442695, %v959_v48  ;;  %v3940_v62 = vrot.slane %v3873_v35, %v3918_v32  ;;  %v969_v58 = vsub.f32 %v3738_v8, %v3927_v44 }
 0x347   :  { %v3878_v5 = vpop.eup %2912  ;;  %2932 = vpow2.f32 %v1046_v12  ;;  %v1010_v63 = vmul.f32 1.442695, %v967_v28  ;;  %v891_v43 = vrot.slane %v3873_v35, %v3841_v18  ;;  %v961_v42 = vsub.f32 %v3679_v41, %v887_v9 }
 0x348   :  { %v3886_v15 = vpop.eup %2914  ;;  %2934 = vpow2.f32 %v990_v31  ;;  %v996_v13 = vmul.f32 1.442695, %v960_v39  ;;  %v971_v8 = vsub.f32 %v3767_v25, %v3940_v62  ;;  %v1014_v14 = vmul.f32 1.442695, %v969_v58 }
 0x349   :  { %1139 = vperm.xlu1 %2840, %v3876_v4   ;;  %v3888_v16 = vpop.eup %2916  ;;  %2936 = vpow2.f32 %v988_v22  ;;  %v939_v47 = vrot.slane %v3822_v1, %v3918_v32  ;;  %v962_v41 = vsub.f32 %v3708_v57, %v891_v43  ;;  %v998_v35 = vmul.f32 1.442695, %v961_v42 }
 0x34a   :  { %1142 = vperm.xlu0 %2841, %v3878_v5   ;;  %v3900_v53 = vpop.eup %2918  ;;  %2938 = vpow2.f32 %v992_v50  ;;  %v1018_v51 = vmul.f32 1.442695, %v971_v8  ;;  %v963_v1 = vsub.f32 %v3700_v52, %v891_v43  ;;  %v966_v48 = vsub.f32 %v3736_v7, %v3909_v20 }
 0x34b   :  { %v3902_v19 = vpop.eup %2920  ;;  %2940 = vpow2.f32 %v1006_v30  ;;  %v987_v25 = vsub.f32 %v3792_v54, %v939_v47  ;;  %v1000_v34 = vmul.f32 1.442695, %v962_v41  ;;  %v964_v54 = vsub.f32 %v3685_v45, %v3897_v49 }
 0x34c   :  { %v3913_v0 = vpop.eup %2922  ;;  %2942 = vpow2.f32 %v994_v40  ;;  %v1002_v22 = vmul.f32 1.442695, %v963_v1  ;;  %v968_v49 = vsub.f32 %v3765_v23, %v3927_v44  ;;  %v1008_v30 = vmul.f32 1.442695, %v966_v48 }
 0x34d   :  { %1145 = vperm.xlu1 %2840, %v3886_v15   ;;  %v3915_v38 = vpop.eup %2924  ;;  %2944 = vpow2.f32 %v1010_v63  ;;  %v1050_v57 = vmul.f32 1.442695, %v987_v25  ;;  %v1004_v50 = vmul.f32 1.442695, %v964_v54  ;;  %v970_v20 = vsub.f32 %v3790_v6, %v3940_v62 }
 0x34e   :  { %1148 = vperm.xlu0 %2841, %v3888_v16   ;;  %v3931_v46 = vpop.eup %2926  ;;  %2946 = vpow2.f32 %v996_v13  ;;  %v1012_v40 = vmul.f32 1.442695, %v968_v49  ;;  %v986_v44 = vsub.f32 %v3809_v21, %v939_v47 }
 0x34f   :  { %v3933_v61 = vpop.eup %2928  ;;  %2948 = vpow2.f32 %v1014_v14  ;;  %v1016_v23 = vmul.f32 1.442695, %v970_v20 }
 0x350   :  { %v3944_v2 = vpop.eup %2930  ;;  %2950 = vpow2.f32 %v998_v35  ;;  %v1048_v43 = vmul.f32 1.442695, %v986_v44 }
 0x351   :  { %1151 = vperm.xlu1 %2840, %v3900_v53   ;;  %v3946_v10 = vpop.eup %2932  ;;  %2952 = vpow2.f32 %v1018_v51 }
 0x352   :  { %1154 = vperm.xlu0 %2841, %v3902_v19   ;;  %4371 = vst [vmem:[#allocation32_spill] sm:$0xff] %v3946_v10  ;;  %v3957_v17 = vpop.eup %2934  ;;  %2954 = vpow2.f32 %v1000_v34 }
 0x353   :  { %v3959_v29 = vpop.eup %2936  ;;  %2956 = vpow2.f32 %v1050_v57 }
 0x354   :  { %v3965_v27 = vpop.eup %2938  ;;  %2958 = vpow2.f32 %v1002_v22 }
 0x355   :  { %1157 = vperm.xlu1 %2840, %v3913_v0   ;;  %v3967_v12 = vpop.eup %2940  ;;  %2960 = vpow2.f32 %v1004_v50 }
 0x356   :  { %1160 = vperm.xlu0 %2841, %v3915_v38   ;;  %4372 = vst [vmem:[#allocation33_spill] sm:$0xff] %v3967_v12  ;;  %v3972_v31 = vpop.eup %2942  ;;  %2962 = vpow2.f32 %v1008_v30 }
 0x357   :  { %4373 = vst [vmem:[#allocation34_spill] sm:$0xff] %v3972_v31  ;;  %v3974_v33 = vpop.eup %2944  ;;  %2964 = vpow2.f32 %v1012_v40 }
 0x358   :  { %4374 = vst [vmem:[#allocation35_spill] sm:$0xff] %v3974_v33  ;;  %v3980_v52 = vpop.eup %2946  ;;  %2966 = vpow2.f32 %v1016_v23 }
 0x359   :  { %1163 = vperm.xlu1 %2840, %v3931_v46   ;;  %v3982_v9 = vpop.eup %2948  ;;  %2968 = vpow2.f32 %v1048_v43 }
 0x35a   :  { %1166 = vperm.xlu0 %2841, %v3933_v61   ;;  %4375 = vst [vmem:[#allocation36_spill] sm:$0xff] %v3982_v9  ;;  %v3988_v28 = vpop.eup %2950 }
 0x35b   :  { %4376 = vst [vmem:[#allocation37_spill] sm:$0xff] %v3988_v28  ;;  %v3990_v45 = vpop.eup %2952 }
 0x35c   :  { %4377 = vst [vmem:[#allocation38_spill] sm:$0xff] %v3990_v45  ;;  %v3996_v39 = vpop.eup %2954 }
 0x35d   :  { %1169 = vperm.xlu1 %2840, %v3944_v2   ;;  %v3998_v7 = vpop.eup %2956 }
 0x35e   :  { %1172 = vperm.xlu0 %2841, %v3946_v10   ;;  %4378 = vst [vmem:[#allocation39_spill] sm:$0xff] %v3998_v7  ;;  %v4004_v58 = vpop.eup %2958 }
 0x35f   :  { %4379 = vst [vmem:[#allocation40_spill] sm:$0xff] %v4004_v58  ;;  %v4008_v63 = vpop.eup %2960 }
 0x360   :  { %4380 = vst [vmem:[#allocation41_spill] sm:$0xff] %v4008_v63  ;;  %v4011_v42 = vpop.eup %2962 }
 0x361   :  { %1088 = vperm.xlu1 %2840, %v3957_v17   ;;  %4381 = vst [vmem:[#allocation42_spill] sm:$0xff] %v4011_v42  ;;  %v4014_v6 = vpop.eup %2964 }
 0x362   :  { %1085 = vperm.xlu0 %2841, %v3959_v29   ;;  %4382 = vst [vmem:[#allocation43_spill] sm:$0xff] %v4014_v6  ;;  %v4017_v62 = vpop.eup %2966 }
 0x363   :  { %4383 = vst [vmem:[#allocation44_spill] sm:$0xff] %v4017_v62  ;;  %v4020_v21 = vpop.eup %2968 }
 0x364   :  { %4384 = vst [vmem:[#allocation45_spill] sm:$0xff] %v4020_v21 }
 0x365   :  { %1091 = vperm.xlu1 %2840, %v3965_v27  }
 0x366   :  { %1112 = vperm.xlu0 %2841, %v3967_v12  }
 0x369   :  { %1094 = vperm.xlu1 %2840, %v3972_v31  }
 0x36a   :  { %1118 = vperm.xlu0 %2841, %v3974_v33  }
 0x36d   :  { %1097 = vperm.xlu1 %2840, %v3980_v52  }
 0x36e   :  { %1124 = vperm.xlu0 %2841, %v3982_v9  }
 0x371   :  { %1100 = vperm.xlu1 %2840, %v3988_v28  }
 0x372   :  { %1130 = vperm.xlu0 %2841, %v3990_v45  }
 0x375   :  { %1103 = vperm.xlu1 %2840, %v3996_v39  }
 0x376   :  { %1178 = vperm.xlu0 %2841, %v3998_v7  }
 0x379   :  { %1106 = vperm.xlu1 %2840, %v4004_v58  }
 0x37d   :  { %1109 = vperm.xlu1 %2840, %v4008_v63  }
 0x381   :  { %1115 = vperm.xlu1 %2840, %v4011_v42  }
 0x385   :  { %1121 = vperm.xlu1 %2840, %v4014_v6  }
 0x389   :  { %1127 = vperm.xlu1 %2840, %v4017_v62  }
 0x38d   :  { %1175 = vperm.xlu1 %2840, %v4020_v21  }
 0x3c4   :  { %v1134_v13 = vpop.permute.xlu1 %1133 }
 0x3c5   :  { %v1137_v8 = vpop.permute.xlu0 %1136  ;;  %v1255_v10 = vrot.slane %v1134_v13, %v3703_v55 }
 0x3c6   :  { %v1259_v45 = vrot.slane %v1137_v8, %v3706_v56 }
 0x3c8   :  { %v1140_v14 = vpop.permute.xlu1 %1139  ;;  %v1260_v28 = vsel %vm707_vm0, %v1259_v45, %v1255_v10 }
 0x3c9   :  { %v1143_v47 = vpop.permute.xlu0 %1142  ;;  %v1264_v62 = vrot.slane %v1140_v14, %v3703_v55 }
 0x3ca   :  { %v1268_v32 = vrot.slane %v1143_v47, %v3706_v56 }
 0x3cc   :  { %v1146_v41 = vpop.permute.xlu1 %1145 }
 0x3cd   :  { %v1149_v35 = vpop.permute.xlu0 %1148  ;;  %v1273_v12 = vrot.slane %v1146_v41, %v3703_v55  ;;  %v1269_v41 = vsel %vm707_vm0, %v1268_v32, %v1264_v62 }
 0x3ce   :  { %v1277_v9 = vrot.slane %v1149_v35, %v3706_v56 }
 0x3d0   :  { %v4023_v51 = vpop.permute.xlu1 %1151  ;;  %v1278_v35 = vsel %vm707_vm0, %v1277_v9, %v1273_v12 }
 0x3d1   :  { %v4025_v25 = vpop.permute.xlu0 %1154  ;;  %v1282_v10 = vrot.slane %v4023_v51, %v3703_v55 }
 0x3d4   :  { %v4027_v1 = vpop.permute.xlu1 %1157 }
 0x3d5   :  { %v4031_v57 = vpop.permute.xlu0 %1160  ;;  %v1291_v32 = vrot.slane %v4027_v1, %v3703_v55 }
 0x3d8   :  { %v4029_v34 = vpop.permute.xlu1 %1163 }
 0x3d9   :  { %v4035_v22 = vpop.permute.xlu0 %1166 }
 0x3dc   :  { %v4033_v54 = vpop.permute.xlu1 %1169 }
 0x3dd   :  { %v4037_v49 = vpop.permute.xlu0 %1172 }
 0x3e0   :  { %v1089_v48 = vpop.permute.xlu1 %1088 }
 0x3e1   :  { %v1086_v20 = vpop.permute.xlu0 %1085  ;;  %v1187_v13 = vrot.slane %v1089_v48, %v3706_v56 }
 0x3e2   :  { %v1183_v8 = vrot.slane %v1086_v20, %v3703_v55 }
 0x3e4   :  { %v1092_v50 = vpop.permute.xlu1 %1091  ;;  %v1188_v51 = vsel %vm707_vm0, %v1187_v13, %v1183_v8 }
 0x3e5   :  { %v1113_v44 = vpop.permute.xlu0 %1112  ;;  %v1192_v14 = vrot.slane %v1092_v50, %v3703_v55 }
 0x3e6   :  { %v1223_v12 = vrot.slane %v1113_v44, %v3706_v56 }
 0x3e8   :  { %v1095_v30 = vpop.permute.xlu1 %1094 }
 0x3e9   :  { %v1119_v7 = vpop.permute.xlu0 %1118  ;;  %v1196_v6 = vrot.slane %v1095_v30, %v3706_v56 }
 0x3eb   :  { %v1197_v45 = vsel %vm707_vm0, %v1196_v6, %v1192_v14  ;;  %v1232_v6 = vrot.slane %v1119_v7, %v3706_v56 }
 0x3ec   :  { %v1098_v40 = vpop.permute.xlu1 %1097 }
 0x3ed   :  { %v1125_v58 = vpop.permute.xlu0 %1124  ;;  %v1201_v63 = vrot.slane %v1098_v40, %v3703_v55  ;;  %v1324_v40 = vsel %vm844_vm1, %v1197_v45, %v1188_v51 }
 0x3ee   :  { %v1241_v1 = vrot.slane %v1125_v58, %v3706_v56 }
 0x3f0   :  { %v1101_v23 = vpop.permute.xlu1 %1100 }
 0x3f1   :  { %v1205_v42 = vrot.slane %v1101_v23, %v3706_v56 }
 0x3f3   :  { %v1206_v9 = vsel %vm707_vm0, %v1205_v42, %v1201_v63  ;;  %v1300_v63 = vrot.slane %v4029_v34, %v3703_v55  ;;  %v1304_v42 = vrot.slane %v4035_v22, %v3706_v56 }
 0x3f4   :  { %v1104_v43 = vpop.permute.xlu1 %1103  ;;  %v1325_v7 = vsel %vm846_vm2, %v1206_v9, %v1324_v40  ;;  %v1923_v40 = vld [vmem:[#allocation14 + $0x8] sm:$0xff] }
 0x3f5   :  { %v1210_v48 = vrot.slane %v1104_v43, %v3703_v55  ;;  %v1309_v43 = vrot.slane %v4033_v54, %v3703_v55 }
 0x3f8   :  { %v1107_v21 = vpop.permute.xlu1 %1106 }
 0x3f9   :  { %v1214_v47 = vrot.slane %v1107_v21, %v3706_v56  ;;  %v1286_v21 = vrot.slane %v4025_v25, %v3706_v56  ;;  %v1295_v25 = vrot.slane %v4031_v57, %v3706_v56  ;;  %v1313_v57 = vrot.slane %v4037_v49, %v3706_v56 }
 0x3fb   :  { %v1215_v50 = vsel %vm707_vm0, %v1214_v47, %v1210_v48  ;;  %v1287_v34 = vsel %vm707_vm0, %v1286_v21, %v1282_v10  ;;  %v1296_v54 = vsel %vm707_vm0, %v1295_v25, %v1291_v32  ;;  %v1314_v9 = vsel %vm707_vm0, %v1313_v57, %v1309_v43  ;;  %v1932_v43 = vld [vmem:[#allocation14 + $0x50] sm:$0xff]  ;;  %v1937_v57 = vld [vmem:[#allocation14 + $0x78] sm:$0xff] }
 0x3fc   :  { %v1110_v33 = vpop.permute.xlu1 %1109  ;;  %v1326_v58 = vsel %vm848_vm3, %v1215_v50, %v1325_v7 }
 0x3fd   :  { %v1219_v30 = vrot.slane %v1110_v33, %v3703_v55  ;;  %v1131_v33 = vpop.permute.xlu0 %1130 }
 0x3fe   :  { %v1250_v14 = vrot.slane %v1131_v33, %v3706_v56 }
 0x3ff   :  { %v1224_v23 = vsel %vm707_vm0, %v1223_v12, %v1219_v30  ;;  %v1331_v30 = vsel %vm844_vm1, %v1269_v41, %v1260_v28 }
 0x400   :  { %v1116_v31 = vpop.permute.xlu1 %1115  ;;  %v1327_v22 = vsel %vm850_vm4, %v1224_v23, %v1326_v58  ;;  %v1332_v48 = vsel %vm846_vm2, %v1278_v35, %v1331_v30  ;;  %v1922_v23 = vld [vmem:[#allocation14] sm:$0xff]  ;;  %v1943_v58 = vld [vmem:[#allocation14 + $0xa8] sm:$0xff] }
 0x401   :  { %v1228_v20 = vrot.slane %v1116_v31, %v3703_v55  ;;  %v1179_v45 = vpop.permute.xlu0 %1178  ;;  %v1333_v21 = vsel %vm848_vm3, %v1287_v34, %v1332_v48  ;;  %v1958_v30 = vld [vmem:[#allocation14 + $0x120] sm:$0xff]  ;;  %v1924_v48 = vld [vmem:[#allocation14 + $0x10] sm:$0xff] }
 0x402   :  { %v1334_v41 = vsel %vm850_vm4, %v1296_v54, %v1333_v21  ;;  %v1322_v32 = vrot.slane %v1179_v45, %v3706_v56  ;;  %v1925_v54 = vld [vmem:[#allocation14 + $0x18] sm:$0xff]  ;;  %v1930_v45 = vld [vmem:[#allocation14 + $0x40] sm:$0xff] }
 0x403   :  { %v1233_v44 = vsel %vm707_vm0, %v1232_v6, %v1228_v20  ;;  %v1305_v20 = vsel %vm707_vm0, %v1304_v42, %v1300_v63  ;;  %v1927_v63 = vld [vmem:[#allocation14 + $0x28] sm:$0xff]  ;;  %v1938_v42 = vld [vmem:[#allocation14 + $0x80] sm:$0xff] }
 0x404   :  { %v1122_v62 = vpop.permute.xlu1 %1121  ;;  %v1328_v49 = vsel %vm852_vm5, %v1233_v44, %v1327_v22  ;;  %v1335_v51 = vsel %vm852_vm5, %v1305_v20, %v1334_v41  ;;  %v2655_v7 = vpack.c.bf16 %v1927_v63, %v1922_v23  ;;  %v1947_v22 = vld [vmem:[#allocation14 + $0xc8] sm:$0xff]  ;;  %v1929_v20 = vld [vmem:[#allocation14 + $0x38] sm:$0xff] }
 0x405   :  { %v1237_v31 = vrot.slane %v1122_v62, %v3703_v55  ;;  %v1336_v50 = vsel %vm854_vm6, %v1314_v9, %v1335_v51  ;;  %v2703_v21 = vpack.c.bf16 %v1929_v20, %v1924_v48  ;;  %v1935_v9 = vld [vmem:[#allocation14 + $0x68] sm:$0xff]  ;;  %v1934_v51 = vld [vmem:[#allocation14 + $0x60] sm:$0xff]  ;;  %v1973_v23 = vld [vmem:[#allocation14 + $0x198] sm:$0xff] }
 0x406   :  { %v1963_v41 = vld [vmem:[#allocation14 + $0x148] sm:$0xff] }
 0x407   :  { %v1242_v13 = vsel %vm707_vm0, %v1241_v1, %v1237_v31  ;;  %v1928_v1 = vld [vmem:[#allocation14 + $0x30] sm:$0xff] }
 0x408   :  { %v1128_v8 = vpop.permute.xlu1 %1127  ;;  %v1329_v10 = vsel %vm854_vm6, %v1242_v13, %v1328_v49  ;;  %v2653_v56 = vpack.c.bf16 %v1928_v1, %v1923_v40  ;;  %v1948_v13 = vld [vmem:[#allocation14 + $0xd0] sm:$0xff]  ;;  %v2701_v49 = vpack.c.bf16 %v1930_v45, %v1925_v54  ;;  %v1962_v40 = vld [vmem:[#allocation14 + $0x140] sm:$0xff]  ;;  %v1967_v1 = vld [vmem:[#allocation14 + $0x168] sm:$0xff] }
 0x409   :  { %v1246_v47 = vrot.slane %v1128_v8, %v3703_v55  ;;  %v2659_v8 = vpack.c.bf16 %v1937_v57, %v1932_v43  ;;  %v2661_v34 = vpack.c.bf16 %v1948_v13, %v1943_v58  ;;  %v2671_v63 = vpack.c.bf16 %v1967_v1, %v1962_v40  ;;  %v1982_v40 = vld [vmem:[#allocation14 + $0x1e0] sm:$0xff] }
 0x40a   :  { %2654 = vmatprep.subr.bf16.mxu1 %v2653_v56  ;;  %2702 = vmatprep.subr.bf16.mxu0 %v2701_v49  ;;  %v1978_v56 = vld [vmem:[#allocation14 + $0x1c0] sm:$0xff] }
 0x40b   :  { %v1251_v12 = vsel %vm707_vm0, %v1250_v14, %v1246_v47  ;;  %2656 = vmatpush1.bf16.msra.mxu1 %v2655_v7  ;;  %v1942_v14 = vld [vmem:[#allocation14 + $0xa0] sm:$0xff]  ;;  %v1953_v47 = vld [vmem:[#allocation14 + $0xf8] sm:$0xff]  ;;  %2704 = vmatpush1.bf16.msra.mxu0 %v2703_v21 }
 0x40c   :  { %v1176_v33 = vpop.permute.xlu1 %1175  ;;  %v1330_v28 = vsel %vm856_vm7, %v1251_v12, %v1329_v10  ;;  %v2663_v12 = vpack.c.bf16 %v1947_v22, %v1942_v14  ;;  %v1952_v10 = vld [vmem:[#allocation14 + $0xf0] sm:$0xff]  ;;  %v1977_v7 = vld [vmem:[#allocation14 + $0x1b8] sm:$0xff] }
 0x40d   :  { %v1318_v62 = vrot.slane %v1176_v33, %v3703_v55  ;;  %v1340_v35 = vsel %vm867_vm8, %v1330_v28, 0.0  ;;  %v1933_v55 = vld [vmem:[#allocation14 + $0x58] sm:$0xff]  ;;  %v2665_v33 = vpack.c.bf16 %v1958_v30, %v1953_v47 }
 0x40e   :  { %1341 = vadd.xlane.f32.xlu1 %v1340_v35  ;;  %v2657_v44 = vpack.c.bf16 %v1938_v42, %v1933_v55  ;;  %v1957_v28 = vld [vmem:[#allocation14 + $0x118] sm:$0xff]  ;;  %v2673_v55 = vpack.c.bf16 %v1978_v56, %v1973_v23  ;;  %v1972_v42 = vld [vmem:[#allocation14 + $0x190] sm:$0xff]  ;;  %v1987_v56 = vld [vmem:[#allocation14 + $0x208] sm:$0xff] }
 0x40f   :  { %v1323_v6 = vsel %vm707_vm0, %v1322_v32, %v1318_v62  ;;  %v1940_v32 = vld [vmem:[#allocation14 + $0x90] sm:$0xff] }
 0x410   :  { %v1337_v31 = vsel %vm856_vm7, %v1323_v6, %v1336_v50  ;;  %2658 = vmatprep.subr.bf16.mxu1 %v2657_v44  ;;  %v1968_v62 = vld [vmem:[#allocation14 + $0x170] sm:$0xff]  ;;  %v2705_v35 = vpack.c.bf16 %v1940_v32, %v1935_v9  ;;  %v1939_v6 = vld [vmem:[#allocation14 + $0x88] sm:$0xff]  ;;  %v2675_v44 = vpack.c.bf16 %v1977_v7, %v1972_v42  ;;  %v2679_v42 = vpack.c.bf16 %v1987_v56, %v1982_v40 }
 0x411   :  { %v1343_v25 = vsel %vm867_vm8, %v1337_v31, 0.0  ;;  %2660 = vmatpush1.bf16.msra.mxu1 %v2659_v8  ;;  %v2707_v50 = vpack.c.bf16 %v1939_v6, %v1934_v51  ;;  %v2667_v31 = vpack.c.bf16 %v1957_v28, %v1952_v10  ;;  %v1988_v6 = vld [vmem:[#allocation14 + $0x210] sm:$0xff] }
 0x412   :  { %1344 = vadd.xlane.f32.xlu0 %v1343_v25  ;;  %2662 = vmatprep.subr.bf16.mxu1 %v2661_v34  ;;  %v2669_v25 = vpack.c.bf16 %v1968_v62, %v1963_v41 }
 0x413   :  { %2706 = vmatprep.subr.bf16.mxu0 %v2705_v35 }
 0x414   :  { %2708 = vmatpush1.bf16.msra.mxu0 %v2707_v50 }
 0x415   :  { %2664 = vmatpush1.bf16.msra.mxu1 %v2663_v12 }
 0x416   :  { %2666 = vmatprep.subr.bf16.mxu1 %v2665_v33 }
 0x419   :  { %2668 = vmatpush1.bf16.msra.mxu1 %v2667_v31  ;;  %v1945_v31 = vld [vmem:[#allocation14 + $0xb8] sm:$0xff] }
 0x41a   :  { %2670 = vmatprep.subr.bf16.mxu1 %v2669_v25  ;;  %v1950_v25 = vld [vmem:[#allocation14 + $0xe0] sm:$0xff] }
 0x41b   :  { %v2709_v23 = vpack.c.bf16 %v1950_v25, %v1945_v31  ;;  %v1980_v31 = vld [vmem:[#allocation14 + $0x1d0] sm:$0xff] }
 0x41c   :  { %v2012_v25 = vld [vmem:[#allocation14 + $0x2d0] sm:$0xff] }
 0x41d   :  { %2672 = vmatpush1.bf16.msra.mxu1 %v2671_v63  ;;  %v1944_v63 = vld [vmem:[#allocation14 + $0xb0] sm:$0xff]  ;;  %2710 = vmatprep.subr.bf16.mxu0 %v2709_v23  ;;  %v1979_v23 = vld [vmem:[#allocation14 + $0x1c8] sm:$0xff] }
 0x41e   :  { %2674 = vmatprep.subr.bf16.mxu1 %v2673_v55  ;;  %v1949_v55 = vld [vmem:[#allocation14 + $0xd8] sm:$0xff] }
 0x41f   :  { %v2711_v7 = vpack.c.bf16 %v1949_v55, %v1944_v63  ;;  %v2023_v55 = vld [vmem:[#allocation14 + $0x328] sm:$0xff] }
 0x421   :  { %2676 = vmatpush1.bf16.msra.mxu1 %v2675_v44  ;;  %v1993_v44 = vld [vmem:[#allocation14 + $0x238] sm:$0xff]  ;;  %2712 = vmatpush1.bf16.msra.mxu0 %v2711_v7  ;;  %v1990_v7 = vld [vmem:[#allocation14 + $0x220] sm:$0xff] }
 0x49b   :  { %v1342_v57 = vpop.xlane.xlu1 %1341 }
 0x49f   :  { %v1345_v43 = vpop.xlane.xlu0 %1344 }
 0x4a0   :  { %2970 = vrcp.f32 %v1345_v43 }
 0x4a1   :  { %2972 = vrcp.f32 %v1342_v57 }
 0x4aa   :  { %v2971_v58 = vpop.eup %2970 }
 0x4ab   :  { %v1349_v13 = vmul.f32 %v2971_v58, %v1345_v43  ;;  %v2973_v8 = vpop.eup %2972 }
 0x4ac   :  { %v1348_v22 = vmul.f32 %v2973_v8, %v1342_v57 }
 0x4ad   :  { %v1351_v34 = vsub.f32 2.0, %v1349_v13 }
 0x4ae   :  { %v1350_v54 = vsub.f32 2.0, %v1348_v22  ;;  %v1997_v22 = vld [vmem:[#allocation14 + $0x258] sm:$0xff] }
 0x4af   :  { %v1353_v14 = vmul.f32 %v2971_v58, %v1351_v34  ;;  %v1992_v34 = vld [vmem:[#allocation14 + $0x230] sm:$0xff] }
 0x4b0   :  { %v1352_v20 = vmul.f32 %v2973_v8, %v1350_v54  ;;  %v1960_v8 = vld [vmem:[#allocation14 + $0x130] sm:$0xff]  ;;  %v2683_v54 = vpack.c.bf16 %v1997_v22, %v1992_v34  ;;  %v2033_v22 = vld [vmem:[#allocation14 + $0x378] sm:$0xff] }
 0x4b1   :  { %v1355_v47 = vmul.f32 %v1353_v14, %v1345_v43  ;;  %v1998_v43 = vld [vmem:[#allocation14 + $0x260] sm:$0xff] }
 0x4b2   :  { %v1354_v21 = vmul.f32 %v1352_v20, %v1342_v57  ;;  %v2681_v13 = vpack.c.bf16 %v1998_v43, %v1993_v44 }
 0x4b3   :  { %v1357_v30 = vsub.f32 2.0, %v1355_v47  ;;  %v1954_v47 = vld [vmem:[#allocation14 + $0x100] sm:$0xff] }
 0x4b4   :  { %v1356_v32 = vsub.f32 2.0, %v1354_v21  ;;  %v1965_v21 = vld [vmem:[#allocation14 + $0x158] sm:$0xff] }
 0x4b5   :  { %v4111_v45 = vmul.f32 %v1357_v30, %v1353_v14  ;;  %v1959_v30 = vld [vmem:[#allocation14 + $0x128] sm:$0xff] }
 0x4b7   :  { %v1401_v49 = vrot.slane %v4111_v45, %v3827_v3  ;;  %v1397_v48 = vrot.slane %v4111_v45, %v3560_v37  ;;  %v1413_v28 = vrot.slane %v4111_v45, %v3848_v36  ;;  %v1405_v41 = vrot.slane %v4111_v45, %v3834_v11 }
 0x4b8   :  { %v4129_v62 = vrot.slane %v4111_v45, %v3855_v26  ;;  %v4138_v51 = vrot.slane %v4111_v45, %v3864_v24 }
 0x4b9   :  { %v1460_v12 = vmul.f32 %v3876_v4, %v1401_v49  ;;  %v1458_v10 = vmul.f32 %v3861_v60, %v1397_v48  ;;  %v1459_v9 = vmul.f32 %v3866_v59, %v1397_v48  ;;  %v1461_v33 = vmul.f32 %v3878_v5, %v1401_v49  ;;  %v2008_v48 = vld [vmem:[#allocation14 + $0x2b0] sm:$0xff] }
 0x4ba   :  { %v1466_v4 = vmul.f32 %v3913_v0, %v1413_v28  ;;  %v1462_v60 = vmul.f32 %v3886_v15, %v1405_v41  ;;  %v4131_v59 = vmul.f32 %v1356_v32, %v1352_v20  ;;  %v1468_v5 = vmul.f32 %v3931_v46, %v4129_v62  ;;  %v1983_v0 = vld [vmem:[#allocation14 + $0x1e8] sm:$0xff] }
 0x4bb   :  { %1537 = vperm.xlu1 %2840, %v1460_v12   ;;  %1532 = vperm.xlu0 %2841, %v1458_v10   ;;  %v1463_v35 = vmul.f32 %v3888_v16, %v1405_v41  ;;  %v1409_v15 = vrot.slane %v4111_v45, %v3841_v18  ;;  %v2677_v50 = vpack.c.bf16 %v1988_v6, %v1983_v0  ;;  %v2007_v32 = vld [vmem:[#allocation14 + $0x2a8] sm:$0xff] }
 0x4bc   :  { %v1470_v46 = vmul.f32 %v3944_v2, %v4138_v51  ;;  %v4147_v1 = vrot.slane %v4131_v59, %v3827_v3  ;;  %v1955_v2 = vld [vmem:[#allocation14 + $0x108] sm:$0xff]  ;;  %v4154_v58 = vrot.slane %v4131_v59, %v3560_v37  ;;  %v2715_v49 = vpack.c.bf16 %v1959_v30, %v1954_v47  ;;  %v4385_v47 = vld [vmem:[#allocation41_spill] sm:$0xff] }
 0x4bd   :  { %v1464_v16 = vmul.f32 %v3900_v53, %v1409_v15  ;;  %2678 = vmatprep.subr.bf16.mxu1 %v2677_v50  ;;  %v1465_v57 = vmul.f32 %v3902_v19, %v1409_v15  ;;  %v2713_v14 = vpack.c.bf16 %v1960_v8, %v1955_v2  ;;  %v2003_v19 = vld [vmem:[#allocation14 + $0x288] sm:$0xff]  ;;  %v1467_v12 = vmul.f32 %v3915_v38, %v1413_v28  ;;  %v2013_v38 = vld [vmem:[#allocation14 + $0x2d8] sm:$0xff] }
 0x4be   :  { %2680 = vmatpush1.bf16.msra.mxu1 %v2679_v42  ;;  %v1444_v53 = vmul.f32 %v3965_v27, %v4147_v1  ;;  %v4158_v27 = vrot.slane %v4131_v59, %v3834_v11  ;;  %v1443_v20 = vmul.f32 %v3957_v17, %v4154_v58  ;;  %v2685_v10 = vpack.c.bf16 %v2008_v48, %v2003_v19  ;;  %v2018_v17 = vld [vmem:[#allocation14 + $0x300] sm:$0xff]  ;;  %v1975_v50 = vld [vmem:[#allocation14 + $0x1a8] sm:$0xff]  ;;  %v1985_v42 = vld [vmem:[#allocation14 + $0x1f8] sm:$0xff] }
 0x4bf   :  { %1756 = vperm.xlu1 %2840, %v1459_v9   ;;  %1761 = vperm.xlu0 %2841, %v1461_v33   ;;  %v1970_v9 = vld [vmem:[#allocation14 + $0x180] sm:$0xff]  ;;  %v4165_v15 = vrot.slane %v4131_v59, %v3841_v18  ;;  %v1469_v0 = vmul.f32 %v3933_v61, %v4129_v62  ;;  %v2689_v6 = vpack.c.bf16 %v2018_v17, %v2013_v38  ;;  %v2028_v62 = vld [vmem:[#allocation14 + $0x350] sm:$0xff]  ;;  %v1989_v8 = vld [vmem:[#allocation14 + $0x218] sm:$0xff] }
 0x4c0   :  { %2682 = vmatprep.subr.bf16.mxu1 %v2681_v13  ;;  %2714 = vmatprep.subr.bf16.mxu0 %v2713_v14  ;;  %v2002_v33 = vld [vmem:[#allocation14 + $0x280] sm:$0xff]  ;;  %v2717_v41 = vpack.c.bf16 %v1970_v9, %v1965_v21  ;;  %v1446_v28 = vmul.f32 %v3980_v52, %v4158_v27  ;;  %v2721_v40 = vpack.c.bf16 %v1980_v31, %v1975_v50  ;;  %v1984_v13 = vld [vmem:[#allocation14 + $0x1f0] sm:$0xff]  ;;  %v1999_v9 = vld [vmem:[#allocation14 + $0x268] sm:$0xff] }
 0x4c1   :  { %2716 = vmatpush1.bf16.msra.mxu0 %v2715_v49  ;;  %v1448_v52 = vmul.f32 %v3996_v39, %v4165_v15  ;;  %v4175_v61 = vrot.slane %v4131_v59, %v3848_v36  ;;  %v1442_v44 = vmul.f32 %v3959_v29, %v4154_v58  ;;  %v2693_v43 = vpack.c.bf16 %v2028_v62, %v2023_v55  ;;  %v2038_v29 = vld [vmem:[#allocation14 + $0x3a0] sm:$0xff]  ;;  %v1995_v58 = vld [vmem:[#allocation14 + $0x248] sm:$0xff]  ;;  %v2000_v48 = vld [vmem:[#allocation14 + $0x270] sm:$0xff] }
 0x4c2   :  { %2684 = vmatpush1.bf16.msra.mxu1 %v2683_v54  ;;  %2718 = vmatprep.subr.bf16.mxu0 %v2717_v41  ;;  %v2725_v2 = vpack.c.bf16 %v1990_v7, %v1985_v42  ;;  %v2727_v34 = vpack.c.bf16 %v1989_v8, %v1984_v13  ;;  %v4181_v14 = vrot.slane %v4131_v59, %v3855_v26  ;;  %v4386_v54 = vld [vmem:[#allocation34_spill] sm:$0xff]  ;;  %v2004_v17 = vld [vmem:[#allocation14 + $0x290] sm:$0xff]  ;;  %v1931_v50 = vld [vmem:[#allocation14 + $0x48] sm:$0xff] }
 0x4c3   :  { %1552 = vperm.xlu1 %2840, %v1466_v4   ;;  %1542 = vperm.xlu0 %2841, %v1462_v60   ;;  %v1964_v4 = vld [vmem:[#allocation14 + $0x150] sm:$0xff]  ;;  %v1969_v60 = vld [vmem:[#allocation14 + $0x178] sm:$0xff]  ;;  %v1450_v30 = vmul.f32 %v4385_v47, %v4175_v61  ;;  %v1445_v49 = vmul.f32 %v4386_v54, %v4147_v1  ;;  %v2697_v19 = vpack.c.bf16 %v2038_v29, %v2033_v22  ;;  %v1994_v21 = vld [vmem:[#allocation14 + $0x240] sm:$0xff] }
 0x4c4   :  { %2686 = vmatprep.subr.bf16.mxu1 %v2685_v10  ;;  %v2729_v10 = vpack.c.bf16 %v2000_v48, %v1995_v58  ;;  %v1389_v41 = vrot.slane %v4131_v59, %v3864_v24  ;;  %v2010_v1 = vld [vmem:[#allocation14 + $0x2c0] sm:$0xff]  ;;  %v2019_v62 = vld [vmem:[#allocation14 + $0x308] sm:$0xff]  ;;  %v1936_v42 = vld [vmem:[#allocation14 + $0x70] sm:$0xff] }
 0x4c5   :  { %v4392_v13 = vld [vmem:[#allocation33_spill] sm:$0xff]  ;;  %v4393_v8 = vld [vmem:[#allocation31_spill] sm:$0xff]  ;;  %v2024_v29 = vld [vmem:[#allocation14 + $0x330] sm:$0xff] }
 0x4c6   :  { %v2029_v58 = vld [vmem:[#allocation14 + $0x358] sm:$0xff]  ;;  %v1946_v47 = vld [vmem:[#allocation14 + $0xc0] sm:$0xff]  ;;  %v1951_v54 = vld [vmem:[#allocation14 + $0xe8] sm:$0xff] }
 0x4c7   :  { %1557 = vperm.xlu1 %2840, %v1468_v5   ;;  %1766 = vperm.xlu0 %2841, %v1463_v35   ;;  %v2687_v5 = vpack.c.bf16 %v2007_v32, %v2002_v33  ;;  %v2719_v35 = vpack.c.bf16 %v1969_v60, %v1964_v4  ;;  %v2731_v33 = vpack.c.bf16 %v1999_v9, %v1994_v21  ;;  %v2005_v32 = vld [vmem:[#allocation14 + $0x298] sm:$0xff]  ;;  %v4387_v4 = vld [vmem:[#allocation42_spill] sm:$0xff]  ;;  %v2039_v21 = vld [vmem:[#allocation14 + $0x3a8] sm:$0xff] }
 0x4c8   :  { %v1452_v60 = vmul.f32 %v4387_v4, %v4181_v14  ;;  %v2733_v38 = vpack.c.bf16 %v2010_v1, %v2005_v32  ;;  %v1956_v9 = vld [vmem:[#allocation14 + $0x110] sm:$0xff]  ;;  %v2344_v4 = vld [vmem:[#allocation17 + $0x18] sm:$0xff] }
 0x4c9   :  { %2688 = vmatpush1.bf16.msra.mxu1 %v2687_v5  ;;  %2720 = vmatpush1.bf16.msra.mxu0 %v2719_v35  ;;  %v4388_v5 = vld [vmem:[#allocation37_spill] sm:$0xff]  ;;  %v2342_v1 = vld [vmem:[#allocation17 + $0x8] sm:$0xff] }
 0x4ca   :  { %2690 = vmatprep.subr.bf16.mxu1 %v2689_v6  ;;  %2722 = vmatprep.subr.bf16.mxu0 %v2721_v40  ;;  %v1447_v35 = vmul.f32 %v4388_v5, %v4158_v27  ;;  %v4193_v6 = vld [vmem:[#allocation2 + $0x8] sm:$0xff]  ;;  %v4389_v40 = vld [vmem:[#allocation43_spill] sm:$0xff] }
 0x4cb   :  { %1562 = vperm.xlu1 %2840, %v1470_v46   ;;  %1547 = vperm.xlu0 %2841, %v1464_v16   ;;  %v2017_v46 = vld [vmem:[#allocation14 + $0x2f8] sm:$0xff]  ;;  %v1974_v16 = vld [vmem:[#allocation14 + $0x1a0] sm:$0xff]  ;;  %v2020_v27 = vld [vmem:[#allocation14 + $0x310] sm:$0xff] }
 0x4cc   :  { %v2691_v56 = vpack.c.bf16 %v2017_v46, %v2012_v25  ;;  %v2723_v63 = vpack.c.bf16 %v1979_v23, %v1974_v16  ;;  %2556 = vmatprep.mubr.msk.f32.mxu1 %vm2069_vm9, %v4193_v6  ;;  %v2015_v25 = vld [vmem:[#allocation14 + $0x2e8] sm:$0xff]  ;;  %v1454_v46 = vmul.f32 %v4389_v40, %v1389_v41  ;;  %v4390_v16 = vld [vmem:[#allocation40_spill] sm:$0xff]  ;;  %2558 = vmatprep.mubr.msk.f32.mxu0 %vm2069_vm9, %v4193_v6  ;;  %v4398_v40 = vld [vmem:[#allocation45_spill] sm:$0xff] }
 0x4cd   :  { %v1449_v23 = vmul.f32 %v4390_v16, %v4165_v15  ;;  %v2737_v55 = vpack.c.bf16 %v2020_v27, %v2015_v25  ;;  %v2025_v15 = vld [vmem:[#allocation14 + $0x338] sm:$0xff]  ;;  %v2346_v27 = vld [vmem:[#allocation17 + $0x28] sm:$0xff] }
 0x4ce   :  { %2692 = vmatpush1.bf16.msra.mxu1 %v2691_v56  ;;  %2724 = vmatpush1.bf16.msra.mxu0 %v2723_v63  ;;  %v3325_v56 = vmov 0.0|0.0   ;;  %v4201_v63 = vld [vmem:[#allocation2] sm:$0xff] }
 0x4cf   :  { %1497 = vperm.xlu1 %2840, %v1444_v53   ;;  %1771 = vperm.xlu0 %2841, %v1465_v57   ;;  %v2022_v53 = vld [vmem:[#allocation14 + $0x320] sm:$0xff]  ;;  %v2027_v57 = vld [vmem:[#allocation14 + $0x348] sm:$0xff] }
 0x4d0   :  { %v2695_v39 = vpack.c.bf16 %v2027_v57, %v2022_v53  ;;  %2694 = vmatprep.subr.bf16.mxu1 %v2693_v43  ;;  %2726 = vmatprep.subr.bf16.mxu0 %v2725_v2  ;;  %v2030_v2 = vld [vmem:[#allocation14 + $0x360] sm:$0xff]  ;;  %v4391_v53 = vld [vmem:[#allocation36_spill] sm:$0xff] }
 0x4d1   :  { %v1455_v57 = vmul.f32 %v4391_v53, %v1389_v41  ;;  %v2741_v22 = vpack.c.bf16 %v2030_v2, %v2025_v15  ;;  %v1961_v41 = vld [vmem:[#allocation14 + $0x138] sm:$0xff]  ;;  %v1986_v53 = vld [vmem:[#allocation14 + $0x200] sm:$0xff] }
 0x4d2   :  { %2696 = vmatpush1.bf16.msra.mxu1 %v2695_v39  ;;  %2728 = vmatpush1.bf16.msra.mxu0 %v2727_v34  ;;  %v1451_v39 = vmul.f32 %v4392_v13, %v4175_v61  ;;  %v1393_v34 = vrot.slane %v4131_v59, %v4393_v8  ;;  %v2035_v61 = vld [vmem:[#allocation14 + $0x388] sm:$0xff]  ;;  %v4394_v59 = vld [vmem:[#allocation44_spill] sm:$0xff]  ;;  %v2759_v32 = vpack.c.bf16 %v1961_v41, %v1956_v9  ;;  %v2352_v15 = vld [vmem:[#allocation17 + $0x58] sm:$0xff] }
 0x4d3   :  { %1716 = vperm.xlu1 %2840, %v1443_v20   ;;  %1776 = vperm.xlu0 %2841, %v1467_v12   ;;  %v2032_v20 = vld [vmem:[#allocation14 + $0x370] sm:$0xff]  ;;  %v2037_v12 = vld [vmem:[#allocation14 + $0x398] sm:$0xff] }
 0x4d4   :  { %v2699_v26 = vpack.c.bf16 %v2037_v12, %v2032_v20  ;;  %2698 = vmatprep.subr.bf16.mxu1 %v2697_v19  ;;  %2730 = vmatprep.subr.bf16.mxu0 %v2729_v10  ;;  %v2040_v19 = vld [vmem:[#allocation14 + $0x3b0] sm:$0xff]  ;;  %v1456_v48 = vmul.f32 %v4394_v59, %v1393_v34  ;;  %v4395_v20 = vld [vmem:[#allocation35_spill] sm:$0xff] }
 0x4d5   :  { %v1453_v12 = vmul.f32 %v4395_v20, %v4181_v14  ;;  %v2745_v10 = vpack.c.bf16 %v2040_v19, %v2035_v61  ;;  %v4397_v14 = vld [vmem:[#allocation32_spill] sm:$0xff] }
 0x4d6   :  { %2700 = vmatpush1.bf16.msra.mxu1 %v2699_v26  ;;  %2732 = vmatpush1.bf16.msra.mxu0 %v2731_v33  ;;  %v2034_v26 = vld [vmem:[#allocation14 + $0x380] sm:$0xff]  ;;  %v2355_v19 = vld [vmem:[#allocation17 + $0x70] sm:$0xff]  ;;  %v2358_v20 = vld [vmem:[#allocation17 + $0x88] sm:$0xff] }
 0x4d7   :  { %1502 = vperm.xlu1 %2840, %v1446_v28   ;;  %1781 = vperm.xlu0 %2841, %v1469_v0   ;;  %v2009_v28 = vld [vmem:[#allocation14 + $0x2b8] sm:$0xff]  ;;  %v1926_v0 = vld [vmem:[#allocation14 + $0x20] sm:$0xff]  ;;  %v2747_v33 = vpack.c.bf16 %v2039_v21, %v2034_v26  ;;  %v2011_v21 = vld [vmem:[#allocation14 + $0x2c8] sm:$0xff] }
 0x4d8   :  { %v2735_v24 = vpack.c.bf16 %v2009_v28, %v2004_v17  ;;  %v2750_v31 = vpack.c.bf16 %v1931_v50, %v1926_v0  ;;  %2734 = vmatprep.subr.bf16.mxu0 %v2733_v38  ;;  %2749 = vmatprep.subr.bf16.mxu1 %v3325_v56  ;;  %v1425_v38 = vrot.slane %v4111_v45, %v4393_v8  ;;  %v1966_v28 = vld [vmem:[#allocation14 + $0x160] sm:$0xff]  ;;  %v1971_v0 = vld [vmem:[#allocation14 + $0x188] sm:$0xff]  ;;  %v2343_v50 = vld [vmem:[#allocation17 + $0x10] sm:$0xff] }
 0x4d9   :  { %2141 = vmatmul.mubr.f32.vlgmr.msra.gmra.mrb[0].mxu1 %v4201_v63  ;;  %v2785_v17 = vpack.c.bf16 %v2344_v4, %v2342_v1  ;;  %v2348_v45 = vld [vmem:[#allocation17 + $0x38] sm:$0xff]  ;;  %v2351_v8 = vld [vmem:[#allocation17 + $0x50] sm:$0xff]  ;;  %v2362_v1 = vld [vmem:[#allocation17 + $0xa8] sm:$0xff] }
 0x4da   :  { %2736 = vmatpush1.bf16.msra.mxu0 %v2735_v24  ;;  %2751 = vmatpush1.bf16.msra.mxu1 %v2750_v31  ;;  %v2341_v24 = vld [vmem:[#allocation17] sm:$0xff]  ;;  %v2762_v31 = vpack.c.bf16 %v1971_v0, %v1966_v28  ;;  %v2359_v41 = vld [vmem:[#allocation17 + $0x90] sm:$0xff]  ;;  %v2364_v4 = vld [vmem:[#allocation17 + $0xb8] sm:$0xff] }
 0x4db   :  { %1507 = vperm.xlu1 %2840, %v1448_v52   ;;  %1492 = vperm.xlu0 %2841, %v1442_v44   ;;  %v2014_v52 = vld [vmem:[#allocation14 + $0x2e0] sm:$0xff]  ;;  %v1941_v44 = vld [vmem:[#allocation14 + $0x98] sm:$0xff]  ;;  %v2787_v25 = vpack.c.bf16 %v2343_v50, %v2341_v24 }
 0x4dc   :  { %v2739_v7 = vpack.c.bf16 %v2019_v62, %v2014_v52  ;;  %v2753_v43 = vpack.c.bf16 %v1941_v44, %v1936_v42  ;;  %2738 = vmatprep.subr.bf16.mxu0 %v2737_v55  ;;  %2752 = vmatprep.subr.bf16.mxu1 %v3325_v56  ;;  %v1981_v55 = vld [vmem:[#allocation14 + $0x1d8] sm:$0xff]  ;;  %v2789_v52 = vpack.c.bf16 %v2348_v45, %v2346_v27  ;;  %v2345_v42 = vld [vmem:[#allocation17 + $0x20] sm:$0xff] }
 0x4dd   :  { %v2006_v26 = vld [vmem:[#allocation14 + $0x2a0] sm:$0xff]  ;;  %v2367_v27 = vld [vmem:[#allocation17 + $0xd0] sm:$0xff] }
 0x4de   :  { %2740 = vmatpush1.bf16.msra.mxu0 %v2739_v7  ;;  %2754 = vmatpush1.bf16.msra.mxu1 %v2753_v43  ;;  %v2347_v7 = vld [vmem:[#allocation17 + $0x30] sm:$0xff]  ;;  %v2350_v43 = vld [vmem:[#allocation17 + $0x48] sm:$0xff]  ;;  %v2774_v9 = vpack.c.bf16 %v2011_v21, %v2006_v26  ;;  %v2368_v28 = vld [vmem:[#allocation17 + $0xd8] sm:$0xff] }
 0x4df   :  { %1512 = vperm.xlu1 %2840, %v1450_v30   ;;  %1721 = vperm.xlu0 %2841, %v1445_v49   ;;  %v2743_v30 = vpack.c.bf16 %v2029_v58, %v2024_v29  ;;  %v2756_v49 = vpack.c.bf16 %v1951_v54, %v1946_v47  ;;  %v2791_v44 = vpack.c.bf16 %v2347_v7, %v2345_v42  ;;  %v2356_v29 = vld [vmem:[#allocation17 + $0x78] sm:$0xff]  ;;  %v1996_v47 = vld [vmem:[#allocation14 + $0x250] sm:$0xff]  ;;  %v2353_v54 = vld [vmem:[#allocation17 + $0x60] sm:$0xff] }
 0x4e0   :  { %2742 = vmatprep.subr.bf16.mxu0 %v2741_v22  ;;  %2755 = vmatprep.subr.bf16.mxu1 %v3325_v56  ;;  %v2793_v2 = vpack.c.bf16 %v2352_v15, %v2350_v43  ;;  %v2354_v22 = vld [vmem:[#allocation17 + $0x68] sm:$0xff]  ;;  %v2799_v59 = vpack.c.bf16 %v2355_v19, %v2353_v54  ;;  %v2026_v50 = vld [vmem:[#allocation14 + $0x340] sm:$0xff]  ;;  %v2371_v42 = vld [vmem:[#allocation17 + $0xf0] sm:$0xff] }
 0x4e1   :  { %v2797_v58 = vpack.c.bf16 %v2356_v29, %v2354_v22  ;;  %v1483_v43 = vld [vmem:[#allocation7 + $0x90] sm:$0xff]  ;;  %v1486_v54 = vld [vmem:[#allocation7 + $0xc0] sm:$0xff]  ;;  %v1708_v26 = vld [vmem:[#allocation7 + $0xa8] sm:$0xff] }
 0x4e2   :  { %2744 = vmatpush1.bf16.msra.mxu0 %v2743_v30  ;;  %2757 = vmatpush1.bf16.msra.mxu1 %v2756_v49  ;;  %v2001_v30 = vld [vmem:[#allocation14 + $0x278] sm:$0xff]  ;;  %v4228_v49 = vld [vmem:[#allocation2 + $0x18] sm:$0xff] }
 0x4e3   :  { %1517 = vperm.xlu1 %2840, %v1452_v60   ;;  %1726 = vperm.xlu0 %2841, %v1447_v35   ;;  %v4396_v60 = vld [vmem:[#allocation38_spill] sm:$0xff]  ;;  %v1471_v35 = vmul.f32 %v4397_v14, %v4138_v51  ;;  %v1472_v51 = vmul.f32 %v4398_v40, %v1425_v38  ;;  %v2771_v61 = vpack.c.bf16 %v2001_v30, %v1996_v47  ;;  %v2021_v14 = vld [vmem:[#allocation14 + $0x318] sm:$0xff]  ;;  %v2370_v40 = vld [vmem:[#allocation17 + $0xe8] sm:$0xff] }
 0x4e4   :  { %2746 = vmatprep.subr.bf16.mxu0 %v2745_v10  ;;  %2758 = vmatprep.subr.bf16.mxu1 %v3325_v56  ;;  %v1457_v5 = vmul.f32 %v4396_v60, %v1393_v34  ;;  %v2805_v60 = vpack.c.bf16 %v2364_v4, %v2362_v1 }
 0x4e5   :  { %2557 = vmatprep.mubr.msk.f32.mxu1 %vm2069_vm9, %v4228_v49 }
 0x4e6   :  { %2748 = vmatpush1.bf16.msra.mxu0 %v2747_v33  ;;  %2760 = vmatpush1.bf16.msra.mxu1 %v2759_v32  ;;  %v2357_v33 = vld [vmem:[#allocation17 + $0x80] sm:$0xff] }
 0x4e7   :  { %1522 = vperm.xlu1 %2840, %v1454_v46   ;;  %1731 = vperm.xlu0 %2841, %v1449_v23   ;;  %v4399_v46 = vld [vmem:[#allocation39_spill] sm:$0xff]  ;;  %v1976_v23 = vld [vmem:[#allocation14 + $0x1b0] sm:$0xff]  ;;  %v2803_v32 = vpack.c.bf16 %v2359_v41, %v2357_v33 }
 0x4e8   :  { %2761 = vmatprep.subr.bf16.mxu1 %v3325_v56  ;;  %2786 = vmatprep.subr.bf16.mxu0 %v2785_v17  ;;  %v1473_v16 = vmul.f32 %v4399_v46, %v1425_v38  ;;  %v2765_v62 = vpack.c.bf16 %v1981_v55, %v1976_v23  ;;  %v2363_v38 = vld [vmem:[#allocation17 + $0xb0] sm:$0xff]  ;;  %v2366_v17 = vld [vmem:[#allocation17 + $0xc8] sm:$0xff]  ;;  %v3326_v46 = vmov 0.0  }
 0x4e9   :  { %2218 = vmatmul.mubr.f32.vlgmr.msra.gmra.mrb[2].mxu0 %v4201_v63  ;;  %v2809_v24 = vpack.c.bf16 %v2368_v28, %v2366_v17  ;;  %v2036_v23 = vld [vmem:[#allocation14 + $0x390] sm:$0xff]  ;;  %v1488_v17 = vld [vmem:[#allocation7 + $0xe0] sm:$0xff] }
 0x4ea   :  { %2763 = vmatpush1.bf16.msra.mxu1 %v2762_v31  ;;  %2788 = vmatpush1.bf16.msra.mxu0 %v2787_v25  ;;  %v2031_v31 = vld [vmem:[#allocation14 + $0x368] sm:$0xff] }
 0x4eb   :  { %1746 = vperm.xlu1 %2840, %v1455_v57   ;;  %1736 = vperm.xlu0 %2841, %v1451_v39   ;;  %v1991_v57 = vld [vmem:[#allocation14 + $0x228] sm:$0xff] }
 0x4ec   :  { %2764 = vmatprep.subr.bf16.mxu1 %v3325_v56  ;;  %2790 = vmatprep.subr.bf16.mxu0 %v2789_v52  ;;  %v2768_v13 = vpack.c.bf16 %v1991_v57, %v1986_v53  ;;  %v2349_v39 = vld [vmem:[#allocation17 + $0x40] sm:$0xff]  ;;  %v2041_v52 = vld [vmem:[#allocation14 + $0x3b8] sm:$0xff] }
 0x4ed   :  { %v2795_v34 = vpack.c.bf16 %v2351_v8, %v2349_v39  ;;  %2559 = vmatprep.mubr.msk.f32.mxu0 %vm2069_vm9, %v4228_v49  ;;  %v2365_v25 = vld [vmem:[#allocation17 + $0xc0] sm:$0xff]  ;;  %v2783_v7 = vpack.c.bf16 %v2041_v52, %v2036_v23  ;;  %v1482_v57 = vld [vmem:[#allocation7 + $0x80] sm:$0xff]  ;;  %v1707_v39 = vld [vmem:[#allocation7 + $0x98] sm:$0xff] }
 0x4ee   :  { %2766 = vmatpush1.bf16.msra.mxu1 %v2765_v62  ;;  %2792 = vmatpush1.bf16.msra.mxu0 %v2791_v44  ;;  %v2811_v45 = vpack.c.bf16 %v2367_v27, %v2365_v25  ;;  %v2369_v62 = vld [vmem:[#allocation17 + $0xe0] sm:$0xff] }
 0x4ef   :  { %1527 = vperm.xlu1 %2840, %v1456_v48   ;;  %1741 = vperm.xlu0 %2841, %v1453_v12   ;;  %v4233_v48 = vld [vmem:[#allocation2 + $0x10] sm:$0xff]  ;;  %v2815_v44 = vpack.c.bf16 %v2371_v42, %v2369_v62  ;;  %v1709_v62 = vld [vmem:[#allocation7 + $0xb8] sm:$0xff] }
 0x4f0   :  { %2767 = vmatprep.subr.bf16.mxu1 %v3325_v56  ;;  %2794 = vmatprep.subr.bf16.mxu0 %v2793_v2  ;;  %v2360_v12 = vld [vmem:[#allocation17 + $0x98] sm:$0xff] }
 0x4f1   :  { %2147 = vmatmul.mubr.f32.gmra.mrb[2].mxu1 %v4233_v48  ;;  %v2801_v10 = vpack.c.bf16 %v2360_v12, %v2358_v20  ;;  %2224 = vmatmul.mubr.f32.gmra.mrb[4].mxu0 %v4233_v48  ;;  %v1484_v20 = vld [vmem:[#allocation7 + $0xa0] sm:$0xff] }
 0x4f2   :  { %2769 = vmatpush1.bf16.msra.mxu1 %v2768_v13  ;;  %2796 = vmatpush1.bf16.msra.mxu0 %v2795_v34  ;;  %v1706_v13 = vld [vmem:[#allocation7 + $0x88] sm:$0xff] }
 0x4f3   :  { %1751 = vperm.xlu1 %2840, %v1457_v5   ;;  %1786 = vperm.xlu0 %2841, %v1471_v35   ;;  %v2016_v5 = vld [vmem:[#allocation14 + $0x2f0] sm:$0xff]  ;;  %v2361_v35 = vld [vmem:[#allocation17 + $0xa0] sm:$0xff] }
 0x4f4   :  { %2770 = vmatprep.subr.bf16.mxu1 %v3325_v56  ;;  %2798 = vmatprep.subr.bf16.mxu0 %v2797_v58  ;;  %v2807_v0 = vpack.c.bf16 %v2363_v38, %v2361_v35 }
 0x4f5   :  { %2560 = vmatprep.mubr.msk.f32.mxu1 %vm2069_vm9, %v4193_v6  ;;  %v2777_v6 = vpack.c.bf16 %v2021_v14, %v2016_v5  ;;  %2481 = vmatprep.mubr.f32.mxu0 %v3326_v46  ;;  %v1485_v14 = vld [vmem:[#allocation7 + $0xb0] sm:$0xff] }
 0x4f6   :  { %2772 = vmatpush1.bf16.msra.mxu1 %v2771_v61  ;;  %2800 = vmatpush1.bf16.msra.mxu0 %v2799_v59 }
 0x4f7   :  { %1567 = vperm.xlu1 %2840, %v1472_v51   ;;  %1791 = vperm.xlu0 %2841, %v1473_v16   ;;  %v2372_v51 = vld [vmem:[#allocation17 + $0xf8] sm:$0xff]  ;;  %v2780_v16 = vpack.c.bf16 %v2031_v31, %v2026_v50 }
 0x4f8   :  { %2773 = vmatprep.subr.bf16.mxu1 %v3325_v56  ;;  %2802 = vmatprep.subr.bf16.mxu0 %v2801_v10  ;;  %v2813_v55 = vpack.c.bf16 %v2372_v51, %v2370_v40  ;;  %v1487_v10 = vld [vmem:[#allocation7 + $0xd0] sm:$0xff] }
 0x4f9   :  { %v1475_v51 = vld [vmem:[#allocation7 + $0x10] sm:$0xff] }
 0x4fa   :  { %2775 = vmatpush1.bf16.msra.mxu1 %v2774_v9  ;;  %2804 = vmatpush1.bf16.msra.mxu0 %v2803_v32 }
 0x4fb   :  { %2776 = vmatprep.subr.bf16.mxu1 %v3325_v56  ;;  %2806 = vmatprep.subr.bf16.mxu0 %v2805_v60 }
 0x4fe   :  { %2778 = vmatpush1.bf16.msra.mxu1 %v2777_v6  ;;  %2808 = vmatpush1.bf16.msra.mxu0 %v2807_v0 }
 0x4ff   :  { %2779 = vmatprep.subr.bf16.mxu1 %v3325_v56  ;;  %2810 = vmatprep.subr.bf16.mxu0 %v2809_v24 }
 0x502   :  { %2781 = vmatpush1.bf16.msra.mxu1 %v2780_v16  ;;  %2812 = vmatpush1.bf16.msra.mxu0 %v2811_v45 }
 0x503   :  { %2782 = vmatprep.subr.bf16.mxu1 %v3325_v56  ;;  %2814 = vmatprep.subr.bf16.mxu0 %v2813_v55 }
 0x506   :  { %2784 = vmatpush1.bf16.msra.mxu1 %v2783_v7  ;;  %2816 = vmatpush1.bf16.msra.mxu0 %v2815_v44 }
 0x509   :  { %2295 = vmatmul.mubr.f32.vlgmr.msra.gmra.mrb[4].mxu1 %v4201_v63 }
 0x50a   :  { %2561 = vmatprep.mubr.msk.f32.mxu1 %vm2069_vm9, %v4228_v49 }
 0x50d   :  { %2300 = vmatmul.mubr.f32.gmra.mrb[6].mxu1 %v4233_v48 }
 0x53a   :  { %v1538_v15 = vpop.permute.xlu1 %1537  ;;  %v1533_v2 = vpop.permute.xlu0 %1532 }
 0x53b   :  { %v1579_v53 = vmul.f32 %v1538_v15, %v1483_v43  ;;  %v1578_v8 = vmul.f32 %v1533_v2, %v1482_v57 }
 0x53d   :  { %v1640_v22 = vrot.slane %v1579_v53, 4  ;;  %v1634_v30 = vrot.slane %v1578_v8, 4 }
 0x53e   :  { %v1757_v34 = vpop.permute.xlu1 %1756  ;;  %v1762_v56 = vpop.permute.xlu0 %1761 }
 0x53f   :  { %v1802_v29 = vmul.f32 %v1757_v34, %v1706_v13  ;;  %v1803_v58 = vmul.f32 %v1762_v56, %v1707_v39  ;;  %v1641_v19 = vadd.f32 %v1640_v22, %v1579_v53  ;;  %v1635_v21 = vadd.f32 %v1634_v30, %v1578_v8  ;;  %v1698_v56 = vld [vmem:[#allocation7 + $0x8] sm:$0xff] }
 0x540   :  { %v1710_v22 = vld [vmem:[#allocation7 + $0xc8] sm:$0xff] }
 0x541   :  { %v1858_v47 = vrot.slane %v1802_v29, 4  ;;  %v1864_v63 = vrot.slane %v1803_v58, 4  ;;  %v1642_v41 = vrot.slane %v1641_v19, 2  ;;  %v1636_v6 = vrot.slane %v1635_v21, 2 }
 0x542   :  { %v1553_v49 = vpop.permute.xlu1 %1552  ;;  %v1543_v61 = vpop.permute.xlu0 %1542 }
 0x543   :  { %v1859_v59 = vadd.f32 %v1858_v47, %v1802_v29  ;;  %v1865_v48 = vadd.f32 %v1864_v63, %v1803_v58  ;;  %v1582_v12 = vmul.f32 %v1553_v49, %v1486_v54  ;;  %v1580_v32 = vmul.f32 %v1543_v61, %v1484_v20 }
 0x544   :  { %v1643_v25 = vadd.f32 %v1642_v41, %v1641_v19  ;;  %v1637_v23 = vadd.f32 %v1636_v6, %v1635_v21 }
 0x545   :  { %v1860_v1 = vrot.slane %v1859_v59, 2  ;;  %v1866_v4 = vrot.slane %v1865_v48, 2  ;;  %v1658_v35 = vrot.slane %v1582_v12, 4  ;;  %v1646_v24 = vrot.slane %v1580_v32, 4 }
 0x546   :  { %v1558_v9 = vpop.permute.xlu1 %1557  ;;  %v1767_v33 = vpop.permute.xlu0 %1766  ;;  %v1644_v2 = vrot.slane %v1643_v25, 1  ;;  %v1638_v29 = vrot.slane %v1637_v23, 1 }
 0x547   :  { %v1583_v60 = vmul.f32 %v1558_v9, %v1487_v10  ;;  %v1804_v5 = vmul.f32 %v1767_v33, %v1708_v26  ;;  %v1861_v27 = vadd.f32 %v1860_v1, %v1859_v59  ;;  %v1867_v40 = vadd.f32 %v1866_v4, %v1865_v48  ;;  %v1476_v9 = vld [vmem:[#allocation7 + $0x20] sm:$0xff]  ;;  %v1711_v33 = vld [vmem:[#allocation7 + $0xd8] sm:$0xff] }
 0x548   :  { %v1659_v16 = vadd.f32 %v1658_v35, %v1582_v12  ;;  %v1647_v7 = vadd.f32 %v1646_v24, %v1580_v32  ;;  %v1645_v19 = vadd.f32 %v1644_v2, %v1643_v25 }
 0x549   :  { %v1870_v38 = vrot.slane %v1804_v5, 4  ;;  %v1664_v50 = vrot.slane %v1583_v60, 4  ;;  %v1862_v53 = vrot.slane %v1861_v27, 1  ;;  %v1868_v57 = vrot.slane %v1867_v40, 1 }
 0x54a   :  { %v1563_v28 = vpop.permute.xlu1 %1562  ;;  %v1548_v0 = vpop.permute.xlu0 %1547  ;;  %v1660_v13 = vrot.slane %v1659_v16, 2  ;;  %v1648_v30 = vrot.slane %v1647_v7, 2 }
 0x54b   :  { %v1581_v31 = vmul.f32 %v1548_v0, %v1485_v14  ;;  %v1584_v45 = vmul.f32 %v1563_v28, %v1488_v17  ;;  %v1871_v55 = vadd.f32 %v1870_v38, %v1804_v5  ;;  %v1665_v44 = vadd.f32 %v1664_v50, %v1583_v60  ;;  %v1477_v50 = vld [vmem:[#allocation7 + $0x30] sm:$0xff] }
 0x54c   :  { %v1863_v12 = vadd.f32 %v1862_v53, %v1861_v27  ;;  %v1869_v10 = vadd.f32 %v1868_v57, %v1867_v40  ;;  %v1661_v26 = vadd.f32 %v1660_v13, %v1659_v16  ;;  %v1639_v14 = vadd.f32 %v1638_v29, %v1637_v23  ;;  %v1478_v13 = vld [vmem:[#allocation7 + $0x40] sm:$0xff] }
 0x54d   :  { %v1652_v43 = vrot.slane %v1581_v31, 4  ;;  %v1670_v39 = vrot.slane %v1584_v45, 4  ;;  %v1872_v58 = vrot.slane %v1871_v55, 2  ;;  %v1666_v54 = vrot.slane %v1665_v44, 2 }
 0x54e   :  { %v1498_v52 = vpop.permute.xlu1 %1497  ;;  %v1772_v42 = vpop.permute.xlu0 %1771  ;;  %v1649_v35 = vadd.f32 %v1648_v30, %v1647_v7  ;;  %v4250_v25 = vadd.f32 %v1863_v12, %v1639_v14  ;;  %v4252_v27 = vadd.f32 %v1869_v10, %v1645_v19  ;;  %v1662_v40 = vrot.slane %v1661_v26, 1  ;;  %v1699_v30 = vld [vmem:[#allocation7 + $0x18] sm:$0xff] }
 0x54f   :  { %v1571_v15 = vmul.f32 %v1498_v52, %v1475_v51  ;;  %v1805_v34 = vmul.f32 %v1772_v42, %v1709_v62  ;;  %v1653_v49 = vadd.f32 %v1652_v43, %v1581_v31  ;;  %v1671_v21 = vadd.f32 %v1670_v39, %v1584_v45  ;;  %v1474_v31 = vld [vmem:[#allocation7] sm:$0xff] }
 0x550   :  { %v1873_v41 = vadd.f32 %v1872_v58, %v1871_v55  ;;  %v1667_v6 = vadd.f32 %v1666_v54, %v1665_v44  ;;  %v4254_v39 = vadd.f32 %v1662_v40, %v1661_v26 }
 0x551   :  { %v1592_v8 = vrot.slane %v1571_v15, 4  ;;  %v1876_v61 = vrot.slane %v1805_v34, 4  ;;  %v1654_v38 = vrot.slane %v1653_v49, 2  ;;  %v1672_v51 = vrot.slane %v1671_v21, 2 }
 0x552   :  { %v1717_v47 = vpop.permute.xlu1 %1716  ;;  %v1777_v63 = vpop.permute.xlu0 %1776  ;;  %v1874_v16 = vrot.slane %v1873_v41, 1  ;;  %v1668_v2 = vrot.slane %v1667_v6, 1 }
 0x553   :  { %v1593_v59 = vadd.f32 %v1592_v8, %v1571_v15  ;;  %v1794_v48 = vmul.f32 %v1717_v47, %v1698_v56  ;;  %v1806_v20 = vmul.f32 %v1777_v63, %v1710_v22  ;;  %v1877_v32 = vadd.f32 %v1876_v61, %v1805_v34 }
 0x554   :  { %v1650_v15 = vrot.slane %v1649_v35, 1  ;;  %v1655_v53 = vadd.f32 %v1654_v38, %v1653_v49  ;;  %v1875_v22 = vadd.f32 %v1874_v16, %v1873_v41  ;;  %v4256_v29 = vadd.f32 %v1672_v51, %v1671_v21  ;;  %v1479_v21 = vld [vmem:[#allocation7 + $0x50] sm:$0xff] }
 0x555   :  { %v1810_v1 = vrot.slane %v1794_v48, 4  ;;  %v1882_v4 = vrot.slane %v1806_v20, 4  ;;  %v1594_v17 = vrot.slane %v1593_v59, 2  ;;  %v1878_v45 = vrot.slane %v1877_v32, 2 }
 0x556   :  { %v1503_v60 = vpop.permute.xlu1 %1502  ;;  %v1782_v5 = vpop.permute.xlu0 %1781  ;;  %v1651_v49 = vadd.f32 %v1650_v15, %v1649_v35  ;;  %v1656_v12 = vrot.slane %v1655_v53, 1 }
 0x557   :  { %v1811_v28 = vadd.f32 %v1810_v1, %v1794_v48  ;;  %v1572_v0 = vmul.f32 %v1503_v60, %v1476_v9  ;;  %v1807_v24 = vmul.f32 %v1782_v5, %v1711_v33  ;;  %v1883_v55 = vadd.f32 %v1882_v4, %v1806_v20  ;;  %v1700_v1 = vld [vmem:[#allocation7 + $0x28] sm:$0xff] }
 0x558   :  { %v1595_v57 = vadd.f32 %v1594_v17, %v1593_v59  ;;  %v1879_v58 = vadd.f32 %v1878_v45, %v1877_v32  ;;  %v4258_v59 = vadd.f32 %v1668_v2, %v1667_v6  ;;  %v4260_v32 = vadd.f32 %v1875_v22, %v1651_v49  ;;  %v1704_v22 = vld [vmem:[#allocation7 + $0x68] sm:$0xff] }
 0x559   :  { %v1598_v52 = vrot.slane %v1572_v0, 4  ;;  %v1812_v42 = vrot.slane %v1811_v28, 2  ;;  %v1888_v7 = vrot.slane %v1807_v24, 4  ;;  %v1884_v47 = vrot.slane %v1883_v55, 2 }
 0x55a   :  { %v1508_v23 = vpop.permute.xlu1 %1507  ;;  %v1493_v62 = vpop.permute.xlu0 %1492  ;;  %v1596_v10 = vrot.slane %v1595_v57, 1  ;;  %v1674_v4 = vrot.slane %v4256_v29, 1  ;;  %v1880_v60 = vrot.slane %v1879_v58, 1 }
 0x55b   :  { %v1573_v44 = vmul.f32 %v1508_v23, %v1477_v50  ;;  %v1570_v43 = vmul.f32 %v1493_v62, %v1474_v31  ;;  %v1599_v8 = vadd.f32 %v1598_v52, %v1572_v0  ;;  %v1813_v61 = vadd.f32 %v1812_v42, %v1811_v28  ;;  %v1480_v52 = vld [vmem:[#allocation7 + $0x60] sm:$0xff]  ;;  %v1701_v23 = vld [vmem:[#allocation7 + $0x38] sm:$0xff] }
 0x55c   :  { %v1889_v19 = vadd.f32 %v1888_v7, %v1807_v24  ;;  %v1885_v5 = vadd.f32 %v1884_v47, %v1883_v55  ;;  %v4263_v0 = vadd.f32 %v1656_v12, %v1655_v53  ;;  %v4265_v24 = vadd.f32 %v1596_v10, %v1595_v57  ;;  %v1702_v47 = vld [vmem:[#allocation7 + $0x48] sm:$0xff] }
 0x55d   :  { %v1604_v34 = vrot.slane %v1573_v44, 4  ;;  %v1586_v56 = vrot.slane %v1570_v43, 4  ;;  %v1600_v26 = vrot.slane %v1599_v8, 2  ;;  %v1814_v17 = vrot.slane %v1813_v61, 1 }
 0x55e   :  { %v1513_v63 = vpop.permute.xlu1 %1512  ;;  %v1722_v54 = vpop.permute.xlu0 %1721  ;;  %v1890_v35 = vrot.slane %v1889_v19, 2  ;;  %v4267_v62 = vadd.f32 %v1880_v60, %v1879_v58  ;;  %v1886_v55 = vrot.slane %v1885_v5, 1 }
 0x55f   :  { %v1587_v48 = vadd.f32 %v1586_v56, %v1570_v43  ;;  %v1574_v20 = vmul.f32 %v1513_v63, %v1478_v13  ;;  %v1605_v9 = vadd.f32 %v1604_v34, %v1573_v44  ;;  %v1795_v41 = vmul.f32 %v1722_v54, %v1699_v30 }
 0x560   :  { %v1601_v40 = vadd.f32 %v1600_v26, %v1599_v8  ;;  %v4269_v15 = vadd.f32 %v1814_v17, %v1813_v61  ;;  %v1891_v2 = vadd.f32 %v1890_v35, %v1889_v19 }
 0x561   :  { %v1610_v33 = vrot.slane %v1574_v20, 4  ;;  %v1588_v6 = vrot.slane %v1587_v48, 2  ;;  %v1816_v28 = vrot.slane %v1795_v41, 4  ;;  %v1606_v51 = vrot.slane %v1605_v9, 2 }
 0x562   :  { %v1518_v14 = vpop.permute.xlu1 %1517  ;;  %v1727_v38 = vpop.permute.xlu0 %1726  ;;  %v1602_v63 = vrot.slane %v1601_v40, 1  ;;  %v1892_v19 = vrot.slane %v1891_v2, 1 }
 0x563   :  { %v1575_v50 = vmul.f32 %v1518_v14, %v1479_v21  ;;  %v1796_v31 = vmul.f32 %v1727_v38, %v1700_v1  ;;  %v1611_v16 = vadd.f32 %v1610_v33, %v1574_v20  ;;  %v1817_v45 = vadd.f32 %v1816_v28, %v1795_v41  ;;  %v1481_v38 = vld [vmem:[#allocation7 + $0x70] sm:$0xff] }
 0x564   :  { %v1589_v53 = vadd.f32 %v1588_v6, %v1587_v48  ;;  %v1607_v30 = vadd.f32 %v1606_v51, %v1605_v9  ;;  %v4271_v33 = vadd.f32 %v1886_v55, %v1885_v5  ;;  %v1603_v17 = vadd.f32 %v1602_v63, %v1601_v40  ;;  %v1705_v40 = vld [vmem:[#allocation7 + $0x78] sm:$0xff] }
 0x565   :  { %v1616_v42 = vrot.slane %v1575_v50, 4  ;;  %v1822_v7 = vrot.slane %v1796_v31, 4  ;;  %v1818_v57 = vrot.slane %v1817_v45, 2  ;;  %v1612_v58 = vrot.slane %v1611_v16, 2 }
 0x566   :  { %v1523_v44 = vpop.permute.xlu1 %1522  ;;  %v1732_v43 = vpop.permute.xlu0 %1731  ;;  %v1590_v21 = vrot.slane %v1589_v53, 1  ;;  %v1608_v9 = vrot.slane %v1607_v30, 1  ;;  %v4273_v5 = vadd.f32 %v1892_v19, %v1891_v2 }
 0x567   :  { %v1617_v13 = vadd.f32 %v1616_v42, %v1575_v50  ;;  %v1823_v34 = vadd.f32 %v1822_v7, %v1796_v31  ;;  %v1576_v8 = vmul.f32 %v1523_v44, %v1480_v52  ;;  %v1797_v56 = vmul.f32 %v1732_v43, %v1701_v23  ;;  %v1703_v7 = vld [vmem:[#allocation7 + $0x58] sm:$0xff] }
 0x568   :  { %v1819_v54 = vadd.f32 %v1818_v57, %v1817_v45  ;;  %v1613_v28 = vadd.f32 %v1612_v58, %v1611_v16  ;;  %v1591_v44 = vadd.f32 %v1590_v21, %v1589_v53 }
 0x569   :  { %v1618_v20 = vrot.slane %v1617_v13, 2  ;;  %v1824_v49 = vrot.slane %v1823_v34, 2  ;;  %v1622_v12 = vrot.slane %v1576_v8, 4  ;;  %v1828_v10 = vrot.slane %v1797_v56, 4 }
 0x56a   :  { %v1747_v26 = vpop.permute.xlu1 %1746  ;;  %v1737_v61 = vpop.permute.xlu0 %1736  ;;  %v1820_v1 = vrot.slane %v1819_v54, 1  ;;  %v1906_v53 = vadd.f32 %v4269_v15, %v1591_v44 }
 0x56b   :  { %v1800_v48 = vmul.f32 %v1747_v26, %v1704_v22  ;;  %v1798_v41 = vmul.f32 %v1737_v61, %v1702_v47  ;;  %v1825_v60 = vadd.f32 %v1824_v49, %v1823_v34  ;;  %v1829_v14 = vadd.f32 %v1828_v10, %v1797_v56  ;;  %v1712_v61 = vld [vmem:[#allocation7 + $0xe8] sm:$0xff] }
 0x56c   :  { %v1619_v50 = vadd.f32 %v1618_v20, %v1617_v13  ;;  %v1623_v31 = vadd.f32 %v1622_v12, %v1576_v8  ;;  %v1821_v43 = vadd.f32 %v1820_v1, %v1819_v54  ;;  %v1609_v56 = vadd.f32 %v1608_v9, %v1607_v30 }
 0x56d   :  { %v1846_v35 = vrot.slane %v1800_v48, 4  ;;  %v1834_v6 = vrot.slane %v1798_v41, 4  ;;  %v1830_v51 = vrot.slane %v1829_v14, 2  ;;  %v1826_v57 = vrot.slane %v1825_v60, 1 }
 0x56e   :  { %v1528_v45 = vpop.permute.xlu1 %1527  ;;  %v1742_v52 = vpop.permute.xlu0 %1741  ;;  %v1614_v13 = vrot.slane %v1613_v28, 1  ;;  %v1620_v8 = vrot.slane %v1619_v50, 1  ;;  %v1624_v63 = vrot.slane %v1623_v31, 2  ;;  %v1907_v54 = vadd.f32 %v1821_v43, %v4265_v24 }
 0x56f   :  { %v1847_v23 = vadd.f32 %v1846_v35, %v1800_v48  ;;  %v1835_v55 = vadd.f32 %v1834_v6, %v1798_v41  ;;  %v1577_v42 = vmul.f32 %v1528_v45, %v1481_v38  ;;  %v1831_v34 = vadd.f32 %v1830_v51, %v1829_v14  ;;  %v1489_v14 = vld [vmem:[#allocation7 + $0xf0] sm:$0xff] }
 0x570   :  { %v1799_v58 = vmul.f32 %v1742_v52, %v1703_v7  ;;  %v1827_v19 = vadd.f32 %v1826_v57, %v1825_v60  ;;  %v1615_v38 = vadd.f32 %v1614_v13, %v1613_v28  ;;  %v1621_v9 = vadd.f32 %v1620_v8, %v1619_v50  ;;  %v1713_v7 = vld [vmem:[#allocation7 + $0xf8] sm:$0xff] }
 0x571   :  { %v1848_v22 = vrot.slane %v1847_v23, 2  ;;  %v1836_v47 = vrot.slane %v1835_v55, 2  ;;  %v1628_v16 = vrot.slane %v1577_v42, 4  ;;  %v1832_v49 = vrot.slane %v1831_v34, 1 }
 0x572   :  { %v1752_v20 = vpop.permute.xlu1 %1751  ;;  %v1787_v2 = vpop.permute.xlu0 %1786  ;;  %v1840_v30 = vrot.slane %v1799_v58, 4  ;;  %v1625_v45 = vadd.f32 %v1624_v63, %v1623_v31  ;;  %v2401_v24 = vsel %vm844_vm1, %v1907_v54, %v1906_v53  ;;  %v1908_v43 = vadd.f32 %v1827_v19, %v1603_v17 }
 0x573   :  { %v1837_v12 = vadd.f32 %v1836_v47, %v1835_v55  ;;  %v1629_v10 = vadd.f32 %v1628_v16, %v1577_v42  ;;  %v1801_v26 = vmul.f32 %v1752_v20, %v1705_v40  ;;  %v1849_v48 = vadd.f32 %v1848_v22, %v1847_v23 }
 0x574   :  { %v1841_v35 = vadd.f32 %v1840_v30, %v1799_v58  ;;  %v1808_v6 = vmul.f32 %v1787_v2, %v1712_v61  ;;  %v1833_v52 = vadd.f32 %v1832_v49, %v1831_v34  ;;  %v1626_v13 = vrot.slane %v1625_v45, 1 }
 0x575   :  { %v1838_v41 = vrot.slane %v1837_v12, 1  ;;  %v1630_v21 = vrot.slane %v1629_v10, 2  ;;  %v1852_v1 = vrot.slane %v1801_v26, 4  ;;  %v1850_v57 = vrot.slane %v1849_v48, 1 }
 0x576   :  { %v1568_v51 = vpop.permute.xlu1 %1567  ;;  %v1792_v15 = vpop.permute.xlu0 %1791  ;;  %v1842_v60 = vrot.slane %v1841_v35, 2  ;;  %v1894_v44 = vrot.slane %v1808_v6, 4  ;;  %v1909_v31 = vadd.f32 %v1833_v52, %v1609_v56  ;;  %v2402_v49 = vsel %vm846_vm2, %v1908_v43, %v2401_v24 }
 0x577   :  { %v1631_v55 = vadd.f32 %v1630_v21, %v1629_v10  ;;  %v1853_v42 = vadd.f32 %v1852_v1, %v1801_v26  ;;  %v1585_v23 = vmul.f32 %v1568_v51, %v1489_v14  ;;  %v1839_v40 = vadd.f32 %v1838_v41, %v1837_v12 }
 0x578   :  { %v1843_v28 = vadd.f32 %v1842_v60, %v1841_v35  ;;  %v1895_v50 = vadd.f32 %v1894_v44, %v1808_v6  ;;  %v1809_v16 = vmul.f32 %v1792_v15, %v1713_v7  ;;  %v1851_v10 = vadd.f32 %v1850_v57, %v1849_v48 }
 0x579   :  { %v1854_v22 = vrot.slane %v1853_v42, 2  ;;  %v1676_v47 = vrot.slane %v1585_v23, 4  ;;  %v1632_v34 = vrot.slane %v1631_v55, 1  ;;  %v1910_v26 = vadd.f32 %v1839_v40, %v1615_v38 }
 0x57a   :  { %v1844_v63 = vrot.slane %v1843_v28, 1  ;;  %v1896_v58 = vrot.slane %v1895_v50, 2  ;;  %v1900_v2 = vrot.slane %v1809_v16, 4  ;;  %v1627_v19 = vadd.f32 %v1626_v13, %v1625_v45 }
 0x57b   :  { %v1855_v8 = vadd.f32 %v1854_v22, %v1853_v42  ;;  %v1677_v20 = vadd.f32 %v1676_v47, %v1585_v23  ;;  %v2403_v30 = vsel %vm848_vm3, %v1909_v31, %v2402_v49  ;;  %v1633_v41 = vadd.f32 %v1632_v34, %v1631_v55  ;;  %v2042_v34 = vld [vmem:[#allocation16] sm:$0x1f] }
 0x57c   :  { %v1845_v61 = vadd.f32 %v1844_v63, %v1843_v28  ;;  %v1897_v12 = vadd.f32 %v1896_v58, %v1895_v50  ;;  %v1901_v54 = vadd.f32 %v1900_v2, %v1809_v16  ;;  %v1917_v6 = vadd.f32 %v4267_v62, %v4263_v0 }
 0x57d   :  { %v1856_v17 = vrot.slane %v1855_v8, 1  ;;  %v1678_v53 = vrot.slane %v1677_v20, 2  ;;  %v1912_v51 = vadd.f32 %v1851_v10, %v1627_v19  ;;  %v2404_v38 = vsel %vm850_vm4, %v1910_v26, %v2403_v30 }
 0x57e   :  { %v1911_v21 = vadd.f32 %v1845_v61, %v1621_v9  ;;  %v1898_v1 = vrot.slane %v1897_v12, 1  ;;  %v1902_v35 = vrot.slane %v1901_v54, 2  ;;  %v2408_v55 = vsel %vm844_vm1, %v4252_v27, %v4250_v25 }
 0x57f   :  { %v1857_v56 = vadd.f32 %v1856_v17, %v1855_v8  ;;  %v1679_v14 = vadd.f32 %v1678_v53, %v1677_v20  ;;  %v1675_v9 = vadd.f32 %v1674_v4, %v4256_v29  ;;  %v1918_v0 = vadd.f32 %v4271_v33, %v4254_v39 }
 0x580   :  { %v1899_v52 = vadd.f32 %v1898_v1, %v1897_v12  ;;  %v1903_v7 = vadd.f32 %v1902_v35, %v1901_v54  ;;  %v2405_v45 = vsel %vm852_vm5, %v1911_v21, %v2404_v38  ;;  %v1919_v15 = vadd.f32 %v4273_v5, %v4258_v59  ;;  %v2373_v35 = vld [vmem:[#allocation19] sm:$0x3] }
 0x581   :  { %v1913_v48 = vadd.f32 %v1857_v56, %v1633_v41  ;;  %v1680_v42 = vrot.slane %v1679_v14, 1  ;;  %v2406_v62 = vsel %vm854_vm6, %v1912_v51, %v2405_v45  ;;  %v2409_v25 = vsel %vm846_vm2, %v4260_v32, %v2408_v55 }
 0x582   :  { %v1904_v60 = vrot.slane %v1903_v7, 1  ;;  %v1920_v23 = vadd.f32 %v1899_v52, %v1675_v9  ;;  %v2410_v29 = vsel %vm848_vm3, %v1917_v6, %v2409_v25  ;;  %v2051_v8 = vrot.slane %v2042_v34, %v3827_v3 }
 0x583   :  { %v1681_v24 = vadd.f32 %v1680_v42, %v1679_v14  ;;  %v2407_v44 = vsel %vm856_vm7, %v1913_v48, %v2406_v62  ;;  %v2411_v39 = vsel %vm850_vm4, %v1918_v0, %v2410_v29  ;;  %v2047_v63 = vrot.slane %v2042_v34, %v3560_v37 }
 0x584   :  { %2482 = vmatmul.mubr.f32.vlgmr.msra.gmra.mrb[6].mxu0 %v2407_v44  ;;  %v1905_v27 = vadd.f32 %v1904_v60, %v1903_v7  ;;  %v2412_v33 = vsel %vm852_vm5, %v1919_v15, %v2411_v39  ;;  %v2055_v12 = vrot.slane %v2042_v34, %v3834_v11  ;;  %v2063_v48 = vrot.slane %v2042_v34, %v3848_v36  ;;  %v2500_v44 = vld [vmem:[#allocation5] sm:$0xff] }
 0x585   :  { %2487 = vmatprep.mubr.f32.mxu0 %v3326_v46  ;;  %v2413_v59 = vsel %vm854_vm6, %v1920_v23, %v2412_v33  ;;  %v2059_v11 = vrot.slane %v2042_v34, %v3841_v18  ;;  %v2378_v52 = vrot.slane %v2373_v35, %v3560_v37  ;;  %v2382_v42 = vrot.slane %v2373_v35, %v3827_v3 }
 0x586   :  { %v1921_v4 = vadd.f32 %v1905_v27, %v1681_v24 }
 0x588   :  { %v2414_v5 = vsel %vm856_vm7, %v1921_v4, %v2413_v59 }
 0x589   :  { %2488 = vmatmul.mubr.f32.gmra.mrb[8].mxu0 %v2414_v5 }
 0x5ac   :  { %v2142_v43 = vpop.f32.mrb[0].mxu1 }
 0x5ad   :  { %v2144_v57 = vpop.f32.mrb[1].mxu1  ;;  %v2143_v20 = vadd.f32 %v2142_v43, %v2047_v63 }
 0x5ae   :  { %v2145_v58 = vadd.f32 %v2144_v57, %v2051_v8  ;;  %v2501_v57 = vld [vmem:[#allocation5 + $0x8] sm:$0xff] }
 0x5af   :  { %v2562_v10 = vmul.f32 -1.442695, %v2143_v20 }
 0x5b0   :  { %v2563_v2 = vmul.f32 -1.442695, %v2145_v58 }
 0x5b2   :  { %2974 = vpow2.f32 %v2563_v2 }
 0x5b3   :  { %2976 = vpow2.f32 %v2562_v10 }
 0x5bc   :  { %v2219_v40 = vpop.f32.mrb[2].mxu0  ;;  %v2975_v54 = vpop.eup %2974 }
 0x5bd   :  { %v2221_v22 = vpop.f32.mrb[3].mxu0  ;;  %v2220_v53 = vadd.f32 %v2219_v40, %v2055_v12  ;;  %v2977_v19 = vpop.eup %2976  ;;  %v2324_v41 = vadd.f32 1.0, %v2975_v54 }
 0x5be   :  { %v2323_v1 = vadd.f32 1.0, %v2977_v19  ;;  %v2222_v55 = vadd.f32 %v2221_v22, %v2059_v11 }
 0x5bf   :  { %v2564_v30 = vmul.f32 -1.442695, %v2220_v53 }
 0x5c4   :  { %v2148_v32 = vpop.f32.mrb[2].mxu1  ;;  %v2225_v50 = vpop.f32.mrb[4].mxu0 }
 0x5c5   :  { %v2150_v28 = vpop.f32.mrb[3].mxu1  ;;  %v2227_v46 = vpop.f32.mrb[5].mxu0  ;;  %v2149_v26 = vadd.f32 %v2148_v32, %v2047_v63  ;;  %v2226_v21 = vadd.f32 %v2225_v50, %v2055_v12 }
 0x5c6   :  { %v2151_v49 = vadd.f32 %v2150_v28, %v2051_v8  ;;  %v2228_v3 = vadd.f32 %v2227_v46, %v2059_v11 }
 0x5c7   :  { %v2565_v61 = vmul.f32 -1.442695, %v2149_v26  ;;  %v2567_v51 = vmul.f32 -1.442695, %v2226_v21 }
 0x5c8   :  { %v2566_v17 = vmul.f32 -1.442695, %v2151_v49 }
 0x5ca   :  { %2978 = vpow2.f32 %v2566_v17 }
 0x5cb   :  { %2980 = vpow2.f32 %v2565_v61 }
 0x5cc   :  { %2982 = vpow2.f32 %v2564_v30 }
 0x5cd   :  { %2984 = vrcp.f32 %v2324_v41 }
 0x5ce   :  { %2986 = vrcp.f32 %v2323_v1 }
 0x5d4   :  { %v2979_v56 = vpop.eup %2978 }
 0x5d5   :  { %v2981_v14 = vpop.eup %2980  ;;  %v2327_v6 = vadd.f32 1.0, %v2979_v56 }
 0x5d6   :  { %v2326_v38 = vadd.f32 1.0, %v2981_v14  ;;  %v2983_v24 = vpop.eup %2982 }
 0x5d7   :  { %2988 = vrcp.f32 %v2327_v6  ;;  %v2985_v60 = vpop.eup %2984  ;;  %v2325_v27 = vadd.f32 1.0, %v2983_v24 }
 0x5d8   :  { %2990 = vpow2.f32 %v2567_v51  ;;  %v2987_v37 = vpop.eup %2986  ;;  %v2502_v4 = vmul.f32 %v2985_v60, %v2500_v44 }
 0x5d9   :  { %2992 = vrcp.f32 %v2326_v38 }
 0x5da   :  { %2994 = vrcp.f32 %v2325_v27 }
 0x5dc   :  { %v2296_v47 = vpop.f32.mrb[4].mxu1 }
 0x5dd   :  { %v2298_v16 = vpop.f32.mrb[5].mxu1  ;;  %v2297_v7 = vadd.f32 %v2296_v47, %v2063_v48 }
 0x5e0   :  { %v2301_v13 = vpop.f32.mrb[6].mxu1 }
 0x5e1   :  { %v2303_v31 = vpop.f32.mrb[7].mxu1  ;;  %v2302_v23 = vadd.f32 %v2301_v13, %v2063_v48  ;;  %v2989_v5 = vpop.eup %2988 }
 0x5e2   :  { %v2991_v40 = vpop.eup %2990  ;;  %v2503_v47 = vmul.f32 %v2989_v5, %v2501_v57 }
 0x5e3   :  { %v2993_v28 = vpop.eup %2992  ;;  %v2328_v16 = vadd.f32 1.0, %v2991_v40 }
 0x657   :  { %v2483_v45 = vpop.f32.mrb[6].mxu0 }
 0x658   :  { %v2484_v9 = vadd.f32 %v2483_v45, %v2378_v52  ;;  %v2485_v0 = vpop.f32.mrb[7].mxu0 }
 0x659   :  { %v2486_v62 = vadd.f32 %v2485_v0, %v2382_v42 }
 0x65a   :  { %v2494_v15 = vadd.f32 %v2484_v9, %v2222_v55 }
 0x65b   :  { %v2495_v36 = vadd.f32 %v2486_v62, %v2297_v7 }
 0x65c   :  { %v2489_v25 = vpop.f32.mrb[8].mxu0 }
 0x65d   :  { %v2498_v18 = vmax.f32 %v2494_v15, %v2495_v36  ;;  %v2490_v29 = vadd.f32 %v2489_v25, %v2378_v52  ;;  %v2491_v39 = vpop.f32.mrb[9].mxu0 }
 0x65e   :  { %v2492_v59 = vadd.f32 %v2491_v39, %v2382_v42 }
 0x65f   :  { %v2504_v33 = vmul.f32 %v2987_v37, %v2498_v18  ;;  %v2496_v43 = vadd.f32 %v2490_v29, %v2228_v3 }
 0x660   :  { %v2497_v32 = vadd.f32 %v2492_v59, %v2302_v23 }
 0x661   :  { %v2506_v22 = vadd.f32 %v2504_v33, %v2502_v4 }
 0x662   :  { %v2499_v50 = vmax.f32 %v2496_v43, %v2497_v32 }
 0x663   :  { %2996 = vtanh.f32 %v2506_v22  ;;  %2514 = vst [vmem:[#allocation21] sm:$0xff] %v2506_v22 }
 0x664   :  { %v2505_v46 = vmul.f32 %v2993_v28, %v2499_v50  ;;  %2998 = vrcp.f32 %v2328_v16 }
 0x666   :  { %v2507_v13 = vadd.f32 %v2505_v46, %v2503_v47 }
 0x668   :  { %3000 = vtanh.f32 %v2507_v13  ;;  %2515 = vst [vmem:[#allocation21 + $0x8] sm:$0xff] %v2507_v13 }
 0x669   :  { %3257 = shalt.err (!%p3254_p8)
}
 0x66a   :  { %s3258_s23 = scalar_lea.hbm %s4353_s12, 256 }
 0x66b   :  { %p3259_p9 = scmp.ne.s32.totalorder %s4353_s12, %s3258_s23  ;;  %p3262_p10 = scmp.lt.u32.totalorder %s3258_s23, %s4353_s12 }
 0x66d   :  { %p3264_p11 = pnand %p3262_p10, %p3259_p9 }
 0x66f   :  { %3267 = shalt.err (!%p3264_p11)
}
 0x670   :  { %2539 = dma.vmem_to_hbm [thread:$0]  %s2534_s29, 256, %s4353_s12, [#allocation22], %s3307_s13, %s3307_s13, %s3308_s14   ;;  %v2995_v31 = vpop.eup %2994 }
 0x671   :  { %v2997_v34 = vpop.eup %2996  ;;  %s3328_s28 = smov [#allocation20]  }
 0x672   :  { %v2510_v8 = vmul.f32 %v2997_v34, %v2995_v31  ;;  %s2521_s6 = sshll.u32 %s3328_s28, 4  ;;  %v2999_v63 = vpop.eup %2998  ;;  %s2522_s6 = int_to_ptr.vmem [resolvable:$true] %s2521_s6 }
 0x673   :  { %v3001_v58 = vpop.eup %3000  ;;  %s3268_s1 = scalar_lea.vmem %s2522_s6, 256  ;;  %p3273_p13 = scmp.lt.s32.totalorder %s2522_s6, %s2522_s6 }
 0x674   :  { %2512 = vst [vmem:[#allocation20] sm:$0xff] %v2510_v8  ;;  %v2511_v20 = vmul.f32 %v3001_v58, %v2999_v63  ;;  %p3269_p12 = scmp.ne.s32.totalorder %s2522_s6, %s3268_s1  ;;  %p3274_p0 = scmp.lt.s32.totalorder %s3268_s1, %s3268_s1 }
 0x676   :  { %2513 = vst [vmem:[#allocation20 + $0x8] sm:$0xff] %v2511_v20  ;;  %p3275_p1 = por %p3274_p0, %p3273_p13 }
 0x678   :  { %p3276_p2 = pnand %p3275_p1, %p3269_p12 }
 0x67a   :  { %3279 = shalt.err (!%p3276_p2)
}
 0x67b   :  { %s3280_s30 = scalar_lea.hbm %s4352_s11, 256 }
 0x67c   :  { %p3281_p3 = scmp.ne.s32.totalorder %s4352_s11, %s3280_s30  ;;  %p3284_p4 = scmp.lt.u32.totalorder %s3280_s30, %s4352_s11 }
 0x67e   :  { %p3286_p5 = pnand %p3284_p4, %p3281_p3 }
 0x680   :  { %3289 = shalt.err (!%p3286_p5)
}
 0x681   :  { %2527 = dma.vmem_to_hbm [thread:$0]  %s2522_s6, 256, %s4352_s11, [#allocation4], %s3307_s13, %s3307_s13, %s3308_s14  }
 0x682   :  { %3302 = dma.done.wait [#allocation4], 256  }
 0x683   :  { %3303 = vsyncadd [#allocation4], 4294967040 }
 0x684   :  { %3304 = dma.done.wait [#allocation22], 256  }
 0x685   :  { %3305 = vsyncadd [#allocation22], 4294967040 }
 0x686   :  { %2546 = vsyncpa [#allocation3], 1 }
 0x687   :  { %2547 = vsyncpa [#allocation6], 1 }
 0x688   :  { %2548 = vsyncpa [#allocation9], 1 }
 0x689   :  { %2549 = vsyncpa [#allocation12], 1 }
 0x68a   :  { %2550 = vsyncpa [#allocation15], 1 }
 0x68b   :  { %2551 = vsyncpa [#allocation18], 1 }
 0x68c   :  { %2552 = vsyncpa [#allocation4], 1 }
 0x68d   :  { %2553 = vsyncpa [#allocation22], 1 }

</bundles_post_ra>
